<compile_context>
chip_gen: v5e
topology: v5e:2x2
jax: 0.10.0
libtpu: 0.0.40
codegen_flags: <defaults>
</compile_context>

<pallas_src>
import functools

import numpy as np
import jax
import jax.numpy as jnp
from jax.experimental import pallas as pl
from jax.experimental.pallas import tpu as pltpu


# torchvision vgg11 feature config, channels scaled down 8x (32x32 input -> 1x1x64 features)
VGG_CFG = [8, "M", 16, "M", 32, 32, "M", 64, 64, "M", 64, 64, "M"]


def conv_layer_configs(in_ch=3, spatial=32):
    """Static per-conv-layer config (spatial size, channels, fused-pool flag)."""
    cfgs = []
    c_prev, s = in_ch, spatial
    for idx, v in enumerate(VGG_CFG):
        if v == "M":
            continue
        pool = (idx + 1 < len(VGG_CFG)) and VGG_CFG[idx + 1] == "M"
        cfgs.append(dict(H=s, W=s, Cin=c_prev, Cout=v, pool=pool))
        c_prev = v
        if pool:
            s //= 2
    return cfgs


# ----------------------------------------------------------------------------
# Single fused kernel: whole network for ONE batch element.
#   refs = [x, (bands_i, bias_i) * nconv, w1, b1, w2, b2, w3, b3,     # inputs
#           out,                                                       # output
#           act_buf_1 .. act_buf_{nconv-1}, pool_tmp]                  # VMEM scratch
# Activation layout between layers: (H+2, W*C) f32, rows 0 / H+1 are the zero padding rows,
# spatial-W and channels collapsed into the lane dim (multiples of 128).
# ----------------------------------------------------------------------------
def _vgg_hash_kernel(*refs, cfgs):
    nconv = len(cfgs)
    assert len(refs) == 3 * nconv + 8
    x_ref = refs[0]
    conv_refs = refs[1:1 + 2 * nconv]
    w1_ref, b1_ref, w2_ref, b2_ref, w3_ref, b3_ref = refs[1 + 2 * nconv:7 + 2 * nconv]
    o_ref = refs[7 + 2 * nconv]
    act_bufs = refs[8 + 2 * nconv:-1]
    pool_tmp = refs[-1]

    cur = x_ref                       # (H+2, W*Cin) f32 for the current layer's input
    feat = None
    for li, cfg in enumerate(cfgs):
        bands_ref = conv_refs[2 * li]      # (nph*3, W*Cin, Wo*Cout) bf16
        bias_ref = conv_refs[2 * li + 1]   # (1, Wo*Cout) f32
        H, W, Cout, pool = cfg["H"], cfg["W"], cfg["Cout"], cfg["pool"]
        Ho = H // 2 if pool else H
        Wo = W // 2 if pool else W
        N = Wo * Cout
        nph = 2 if pool else 1

        # conv3x3 as nph*3 lane-dense MXU matmuls over row-shifted windows of the padded input
        # (bf16 operands, f32 accumulation; acc initialized from the kh=0 matmul).
        accs = [None] * nph
        for kh in range(3):
            xw = cur[kh:kh + H, :].astype(jnp.bfloat16)           # (H, W*Cin)
            for p in range(nph):
                part = jnp.dot(xw, bands_ref[p * 3 + kh],
                               preferred_element_type=jnp.float32)
                accs[p] = part if accs[p] is None else accs[p] + part

        if pool:
            # fused 2x2 max-pool: w-phase = max of the even/odd-column band matmuls;
            # h-phase = one (H, N) store + two sublane-strided reads + one maximum.
            wmax = jnp.maximum(accs[0], accs[1])                  # (H, N)
            pool_tmp[0:H, 0:N] = wmax
            pooled = jnp.maximum(pool_tmp[pl.ds(0, Ho, stride=2), 0:N],
                                 pool_tmp[pl.ds(1, Ho, stride=2), 0:N])
        else:
            pooled = accs[0]
        y = jnp.maximum(pooled + bias_ref[...], 0.0)              # bias + ReLU (f32), (Ho, N)

        if li + 1 < nconv:
            # write the next layer's input: interior rows at lane offset 0 (width = mult. of 128,
            # unmasked stores) plus the two zero border rows -- no full-tile zero fill.
            buf = act_bufs[li]
            zrow = jnp.zeros((1, N), jnp.float32)
            buf[0:1, :] = zrow
            buf[Ho + 1:Ho + 2, :] = zrow
            buf[1:Ho + 1, :] = y
            cur = buf
        else:
            feat = y                                              # (1, Cout) -- 1x1 spatial

    # classifier[0..5] + hash Linear + Tanh (nn.Dropout == identity at inference time)
    h = jnp.maximum(jnp.dot(feat.astype(jnp.bfloat16), w1_ref[...],
                            preferred_element_type=jnp.float32) + b1_ref[...], 0.0)
    h = jnp.maximum(jnp.dot(h.astype(jnp.bfloat16), w2_ref[...],
                            preferred_element_type=jnp.float32) + b2_ref[...], 0.0)
    out = jnp.tanh(jnp.dot(h.astype(jnp.bfloat16), w3_ref[...],
                           preferred_element_type=jnp.float32) + b3_ref[...])
    o_ref[...] = out.astype(o_ref.dtype)


def _const_index_map(ndim):
    def index_map(n):
        return (0,) * ndim
    return index_map


def vgg_hash_forward(kparams, cfgs, x_nchw):
    """Equivalent of VGGHash.forward (eval mode): features -> flatten -> hash_layer -> tanh."""
    Nb, Cin, H0, W0 = x_nchw.shape
    # one-time boundary glue: NCHW -> row-padded, row-flattened NHWC layout (N, H+2, W*C)
    x = jnp.transpose(x_nchw, (0, 2, 3, 1))
    x = jnp.pad(x, ((0, 0), (1, 1), (0, 0), (0, 0)))
    x = x.reshape(Nb, H0 + 2, W0 * Cin)

    operands = [x]
    for bands, bias in kparams["convs"]:
        operands += [bands, bias]
    for name in ("fc1", "fc2", "hash"):
        operands += list(kparams[name])
    hash_bit = kparams["hash"][0].shape[1]

    in_specs = [pl.BlockSpec((None, H0 + 2, W0 * Cin), lambda n: (n, 0, 0))]
    for op in operands[1:]:
        # weights/biases: full-array block, constant index map -> fetched once, kept VMEM-resident
        in_specs.append(pl.BlockSpec(op.shape, _const_index_map(op.ndim)))

    # VMEM scratch: one buffer per inter-layer activation + one shared pre-pool tmp
    scratch = []
    for cfg in cfgs[:-1]:
        Ho = cfg["H"] // 2 if cfg["pool"] else cfg["H"]
        Wo = cfg["W"] // 2 if cfg["pool"] else cfg["W"]
        scratch.append(pltpu.VMEM((Ho + 2, Wo * cfg["Cout"]), jnp.float32))
    pool_rows = max([c["H"] for c in cfgs if c["pool"]], default=8)
    pool_cols = max([(c["W"] // 2) * c["Cout"] for c in cfgs if c["pool"]], default=128)
    scratch.append(pltpu.VMEM((pool_rows, pool_cols), jnp.float32))

    out = pl.pallas_call(
        functools.partial(_vgg_hash_kernel, cfgs=tuple(cfgs)),
        out_shape=jax.ShapeDtypeStruct((Nb, 1, hash_bit), jnp.float32),
        grid_spec=pltpu.PrefetchScalarGridSpec(
            num_scalar_prefetch=0,
            grid=(Nb,),
            in_specs=in_specs,
            out_specs=pl.BlockSpec((None, 1, hash_bit), lambda n: (n, 0, 0)),
            scratch_shapes=scratch,
        ),
        compiler_params=pltpu.CompilerParams(
            dimension_semantics=("parallel",),   # v7x: the two TensorCores split the batch
            vmem_limit_bytes=32 * 1024 * 1024,
        ),
    )(*operands)
    return out.reshape(Nb, hash_bit)


# ----------------------------------------------------------------------------
# Parameters (raw) and kernel-form parameters (banded bf16 conv weights, built once at init).
# ----------------------------------------------------------------------------
def init_params(key, in_ch=3, spatial=32, hidden=128, hash_bit=32):
    params = {"convs": []}
    c_prev, s = in_ch, spatial
    for v in VGG_CFG:
        if v == "M":
            s //= 2
            continue
        key, k1, k2 = jax.random.split(key, 3)
        fan_in = 9 * c_prev
        w = jax.random.normal(k1, (3, 3, c_prev, v), jnp.float32) / jnp.sqrt(fan_in)  # HWIO
        b = 0.01 * jax.random.normal(k2, (v,), jnp.float32)
        params["convs"].append((w, b))
        c_prev = v
    flat = c_prev * s * s
    for name, (din, dout) in (("fc1", (flat, hidden)),
                              ("fc2", (hidden, hidden)),
                              ("hash", (hidden, hash_bit))):
        key, k1, k2 = jax.random.split(key, 3)
        w = jax.random.normal(k1, (din, dout), jnp.float32) / jnp.sqrt(din)
        b = 0.01 * jax.random.normal(k2, (1, dout), jnp.float32)
        params[name] = (w, b)
    return params


def build_kernel_params(params, cfgs, weight_dtype=jnp.bfloat16):
    """Fold im2col into banded weight matrices (host-side, one-time); cast weights to bf16.

    Band (w-phase ph, vertical tap kh) is a (W*Cin, Wo*Cout) matrix; the SAME-padding border
    taps (input column -1 / W) are dropped (structural zeros), so activations carry no column
    padding and every inter-layer store is lane-aligned.
    """
    kp = {"convs": []}
    for (w, b), cfg in zip(params["convs"], cfgs):
        wn, bn = np.asarray(w), np.asarray(b)
        W, Cin, Cout, pool = cfg["W"], cfg["Cin"], cfg["Cout"], cfg["pool"]
        stride = 2 if pool else 1
        Wo = W // 2 if pool else W
        nph = 2 if pool else 1
        bands = np.zeros((nph * 3, W * Cin, Wo * Cout), np.float32)
        for ph in range(nph):                  # w-phase (even / odd conv columns) when pooled
            for kh in range(3):
                for wo in range(Wo):
                    for kw in range(3):
                        wx = stride * wo + ph + kw - 1          # input column (unpadded)
                        if 0 <= wx < W:
                            bands[ph * 3 + kh,
                                  wx * Cin:(wx + 1) * Cin,
                                  wo * Cout:(wo + 1) * Cout] = wn[kh, kw]
        kp["convs"].append((jnp.asarray(bands, dtype=weight_dtype),                 # (nph*3, K, N)
                            jnp.asarray(np.tile(bn[None, :], (1, Wo)), jnp.float32)))  # (1, Wo*Cout)
    for name in ("fc1", "fc2", "hash"):
        w, b = params[name]
        kp[name] = (w.astype(weight_dtype), b.astype(jnp.float32))
    return kp


# ----------------------------------------------------------------------------
# Pure-JAX references (no Pallas).
#   weight_dtype=float32  -> exact module semantics
#   weight_dtype=bfloat16 -> same bf16-operand / f32-accumulation numerics as the kernel
# ----------------------------------------------------------------------------
def reference_forward(params, x_nchw, weight_dtype=jnp.float32):
    wd = weight_dtype
    x = jnp.transpose(x_nchw, (0, 2, 3, 1))
    ci = 0
    for v in VGG_CFG:
        if v == "M":
            Nb, H, W, C = x.shape
            x = jnp.max(x.reshape(Nb, H // 2, 2, W // 2, 2, C), axis=(2, 4))
        else:
            w, b = params["convs"][ci]
            x = jax.lax.conv_general_dilated(
                x.astype(wd), w.astype(wd), window_strides=(1, 1), padding="SAME",
                dimension_numbers=("NHWC", "HWIO", "NHWC"),
                preferred_element_type=jnp.float32)
            x = jnp.maximum(x + b, 0.0)
            ci += 1
    x = jnp.transpose(x, (0, 3, 1, 2)).reshape(x.shape[0], -1)   # torch-style NCHW flatten
    for name, act in (("fc1", "relu"), ("fc2", "relu"), ("hash", "tanh")):
        w, b = params[name]
        x = jnp.dot(x.astype(wd), w.astype(wd), preferred_element_type=jnp.float32) + b
        x = jnp.maximum(x, 0.0) if act == "relu" else jnp.tanh(x)
    return x


if __name__ == "__main__":
    key = jax.random.PRNGKey(0)
    kx, kp = jax.random.split(key)
    batch, in_ch, spatial, hash_bit = 2, 3, 32, 32
    x = jax.random.normal(kx, (batch, in_ch, spatial, spatial), jnp.float32)

    params = init_params(kp, in_ch=in_ch, spatial=spatial, hidden=128, hash_bit=hash_bit)
    cfgs = conv_layer_configs(in_ch=in_ch, spatial=spatial)
    kparams = build_kernel_params(params, cfgs)

    y = jax.block_until_ready(vgg_hash_forward(kparams, cfgs, x))
    assert y.shape == (batch, hash_bit), y.shape

    # structural check: reference with the kernel's bf16-operand / f32-accumulation numerics
    y_bf16 = jax.block_until_ready(reference_forward(params, x, weight_dtype=jnp.bfloat16))
    err_struct = float(jnp.max(jnp.abs(y - y_bf16)))
    assert err_struct < 5e-3, err_struct

    # semantic check vs the full-f32 module forward (bf16 weights cost ~1e-2 of absolute error)
    y_f32 = jax.block_until_ready(reference_forward(params, x, weight_dtype=jnp.float32))
    assert jnp.allclose(y, y_f32, atol=1e-1, rtol=5e-2), float(jnp.max(jnp.abs(y - y_f32)))

    print("KERNEL_OK")
</pallas_src>

<mosaic_0001>
module attributes {stable_mosaic.version = 11 : i64} {
  func.func @_vgg_hash_kernel(%arg0: i32, %arg1: memref<1x34x96xf32, #tpu.memory_space<vmem>>, %arg2: memref<6x96x128xbf16, #tpu.memory_space<vmem>>, %arg3: memref<1x128xf32, #tpu.memory_space<vmem>>, %arg4: memref<6x128x128xbf16, #tpu.memory_space<vmem>>, %arg5: memref<1x128xf32, #tpu.memory_space<vmem>>, %arg6: memref<3x128x256xbf16, #tpu.memory_space<vmem>>, %arg7: memref<1x256xf32, #tpu.memory_space<vmem>>, %arg8: memref<6x256x128xbf16, #tpu.memory_space<vmem>>, %arg9: memref<1x128xf32, #tpu.memory_space<vmem>>, %arg10: memref<3x128x256xbf16, #tpu.memory_space<vmem>>, %arg11: memref<1x256xf32, #tpu.memory_space<vmem>>, %arg12: memref<6x256x128xbf16, #tpu.memory_space<vmem>>, %arg13: memref<1x128xf32, #tpu.memory_space<vmem>>, %arg14: memref<3x128x128xbf16, #tpu.memory_space<vmem>>, %arg15: memref<1x128xf32, #tpu.memory_space<vmem>>, %arg16: memref<6x128x64xbf16, #tpu.memory_space<vmem>>, %arg17: memref<1x64xf32, #tpu.memory_space<vmem>>, %arg18: memref<64x128xbf16, #tpu.memory_space<vmem>>, %arg19: memref<1x128xf32, #tpu.memory_space<vmem>>, %arg20: memref<128x128xbf16, #tpu.memory_space<vmem>>, %arg21: memref<1x128xf32, #tpu.memory_space<vmem>>, %arg22: memref<128x32xbf16, #tpu.memory_space<vmem>>, %arg23: memref<1x32xf32, #tpu.memory_space<vmem>>, %arg24: memref<1x1x32xf32, #tpu.memory_space<vmem>>, %arg25: memref<18x128xf32, #tpu.memory_space<vmem>>, %arg26: memref<10x128xf32, #tpu.memory_space<vmem>>, %arg27: memref<10x256xf32, #tpu.memory_space<vmem>>, %arg28: memref<6x128xf32, #tpu.memory_space<vmem>>, %arg29: memref<6x256xf32, #tpu.memory_space<vmem>>, %arg30: memref<4x128xf32, #tpu.memory_space<vmem>>, %arg31: memref<4x128xf32, #tpu.memory_space<vmem>>, %arg32: memref<32x128xf32, #tpu.memory_space<vmem>>) attributes {dimension_semantics = [#tpu.dimension_semantics<parallel>], iteration_bounds = array<i64: 2>, scalar_prefetch = 0 : i64, scratch_operands = 8 : i64, tpu.core_type = #tpu.core_type<tc>, window_params = [{transform_indices = @transform_0, window_bounds = array<i64: 1, 34, 96>}, {pipeline_mode = #tpu.pipeline_mode<synchronous>, transform_indices = @transform_1, window_bounds = array<i64: 6, 96, 128>}, {pipeline_mode = #tpu.pipeline_mode<synchronous>, transform_indices = @transform_2, window_bounds = array<i64: 1, 128>}, {pipeline_mode = #tpu.pipeline_mode<synchronous>, transform_indices = @transform_3, window_bounds = array<i64: 6, 128, 128>}, {pipeline_mode = #tpu.pipeline_mode<synchronous>, transform_indices = @transform_4, window_bounds = array<i64: 1, 128>}, {pipeline_mode = #tpu.pipeline_mode<synchronous>, transform_indices = @transform_5, window_bounds = array<i64: 3, 128, 256>}, {pipeline_mode = #tpu.pipeline_mode<synchronous>, transform_indices = @transform_6, window_bounds = array<i64: 1, 256>}, {pipeline_mode = #tpu.pipeline_mode<synchronous>, transform_indices = @transform_7, window_bounds = array<i64: 6, 256, 128>}, {pipeline_mode = #tpu.pipeline_mode<synchronous>, transform_indices = @transform_8, window_bounds = array<i64: 1, 128>}, {pipeline_mode = #tpu.pipeline_mode<synchronous>, transform_indices = @transform_9, window_bounds = array<i64: 3, 128, 256>}, {pipeline_mode = #tpu.pipeline_mode<synchronous>, transform_indices = @transform_10, window_bounds = array<i64: 1, 256>}, {pipeline_mode = #tpu.pipeline_mode<synchronous>, transform_indices = @transform_11, window_bounds = array<i64: 6, 256, 128>}, {pipeline_mode = #tpu.pipeline_mode<synchronous>, transform_indices = @transform_12, window_bounds = array<i64: 1, 128>}, {pipeline_mode = #tpu.pipeline_mode<synchronous>, transform_indices = @transform_13, window_bounds = array<i64: 3, 128, 128>}, {pipeline_mode = #tpu.pipeline_mode<synchronous>, transform_indices = @transform_14, window_bounds = array<i64: 1, 128>}, {pipeline_mode = #tpu.pipeline_mode<synchronous>, transform_indices = @transform_15, window_bounds = array<i64: 6, 128, 64>}, {pipeline_mode = #tpu.pipeline_mode<synchronous>, transform_indices = @transform_16, window_bounds = array<i64: 1, 64>}, {pipeline_mode = #tpu.pipeline_mode<synchronous>, transform_indices = @transform_17, window_bounds = array<i64: 64, 128>}, {pipeline_mode = #tpu.pipeline_mode<synchronous>, transform_indices = @transform_18, window_bounds = array<i64: 1, 128>}, {pipeline_mode = #tpu.pipeline_mode<synchronous>, transform_indices = @transform_19, window_bounds = array<i64: 128, 128>}, {pipeline_mode = #tpu.pipeline_mode<synchronous>, transform_indices = @transform_20, window_bounds = array<i64: 1, 128>}, {pipeline_mode = #tpu.pipeline_mode<synchronous>, transform_indices = @transform_21, window_bounds = array<i64: 128, 32>}, {pipeline_mode = #tpu.pipeline_mode<synchronous>, transform_indices = @transform_22, window_bounds = array<i64: 1, 32>}, {transform_indices = @transform_23, window_bounds = array<i64: 1, 1, 32>}]} {
    %c0 = arith.constant 0 : index
    %c0_0 = arith.constant 0 : index
    %c0_1 = arith.constant 0 : index
    %0 = vector.load %arg1[%c0, %c0_0, %c0_1] : memref<1x34x96xf32, #tpu.memory_space<vmem>>, vector<1x32x96xf32>
    %1 = vector.shape_cast %0 : vector<1x32x96xf32> to vector<32x96xf32>
    %2 = arith.truncf %1 : vector<32x96xf32> to vector<32x96xbf16>
    %c0_2 = arith.constant 0 : index
    %c0_3 = arith.constant 0 : index
    %c0_4 = arith.constant 0 : index
    %3 = vector.load %arg2[%c0_2, %c0_3, %c0_4] : memref<6x96x128xbf16, #tpu.memory_space<vmem>>, vector<1x96x128xbf16>
    %4 = vector.shape_cast %3 : vector<1x96x128xbf16> to vector<96x128xbf16>
    %cst = arith.constant dense<0.000000e+00> : vector<32x128xf32>
    %5 = tpu.matmul %2, %4, %cst {dimension_numbers = #tpu.dot_dimension_numbers<[1], [0], [0], [1], [0, 0, 1, 1], [], []>} : vector<32x96xbf16>, vector<96x128xbf16>, vector<32x128xf32> -> vector<32x128xf32>
    %c3 = arith.constant 3 : index
    %c0_5 = arith.constant 0 : index
    %c0_6 = arith.constant 0 : index
    %6 = vector.load %arg2[%c3, %c0_5, %c0_6] : memref<6x96x128xbf16, #tpu.memory_space<vmem>>, vector<1x96x128xbf16>
    %7 = vector.shape_cast %6 : vector<1x96x128xbf16> to vector<96x128xbf16>
    %cst_7 = arith.constant dense<0.000000e+00> : vector<32x128xf32>
    %8 = tpu.matmul %2, %7, %cst_7 {dimension_numbers = #tpu.dot_dimension_numbers<[1], [0], [0], [1], [0, 0, 1, 1], [], []>} : vector<32x96xbf16>, vector<96x128xbf16>, vector<32x128xf32> -> vector<32x128xf32>
    %c0_8 = arith.constant 0 : index
    %c1 = arith.constant 1 : index
    %c0_9 = arith.constant 0 : index
    %9 = vector.load %arg1[%c0_8, %c1, %c0_9] : memref<1x34x96xf32, #tpu.memory_space<vmem>>, vector<1x32x96xf32>
    %10 = vector.shape_cast %9 : vector<1x32x96xf32> to vector<32x96xf32>
    %11 = arith.truncf %10 : vector<32x96xf32> to vector<32x96xbf16>
    %c1_10 = arith.constant 1 : index
    %c0_11 = arith.constant 0 : index
    %c0_12 = arith.constant 0 : index
    %12 = vector.load %arg2[%c1_10, %c0_11, %c0_12] : memref<6x96x128xbf16, #tpu.memory_space<vmem>>, vector<1x96x128xbf16>
    %13 = vector.shape_cast %12 : vector<1x96x128xbf16> to vector<96x128xbf16>
    %cst_13 = arith.constant dense<0.000000e+00> : vector<32x128xf32>
    %14 = tpu.matmul %11, %13, %cst_13 {dimension_numbers = #tpu.dot_dimension_numbers<[1], [0], [0], [1], [0, 0, 1, 1], [], []>} : vector<32x96xbf16>, vector<96x128xbf16>, vector<32x128xf32> -> vector<32x128xf32>
    %15 = arith.addf %5, %14 : vector<32x128xf32>
    %c4 = arith.constant 4 : index
    %c0_14 = arith.constant 0 : index
    %c0_15 = arith.constant 0 : index
    %16 = vector.load %arg2[%c4, %c0_14, %c0_15] : memref<6x96x128xbf16, #tpu.memory_space<vmem>>, vector<1x96x128xbf16>
    %17 = vector.shape_cast %16 : vector<1x96x128xbf16> to vector<96x128xbf16>
    %cst_16 = arith.constant dense<0.000000e+00> : vector<32x128xf32>
    %18 = tpu.matmul %11, %17, %cst_16 {dimension_numbers = #tpu.dot_dimension_numbers<[1], [0], [0], [1], [0, 0, 1, 1], [], []>} : vector<32x96xbf16>, vector<96x128xbf16>, vector<32x128xf32> -> vector<32x128xf32>
    %19 = arith.addf %8, %18 : vector<32x128xf32>
    %c0_17 = arith.constant 0 : index
    %c2 = arith.constant 2 : index
    %c0_18 = arith.constant 0 : index
    %20 = vector.load %arg1[%c0_17, %c2, %c0_18] : memref<1x34x96xf32, #tpu.memory_space<vmem>>, vector<1x32x96xf32>
    %21 = vector.shape_cast %20 : vector<1x32x96xf32> to vector<32x96xf32>
    %22 = arith.truncf %21 : vector<32x96xf32> to vector<32x96xbf16>
    %c2_19 = arith.constant 2 : index
    %c0_20 = arith.constant 0 : index
    %c0_21 = arith.constant 0 : index
    %23 = vector.load %arg2[%c2_19, %c0_20, %c0_21] : memref<6x96x128xbf16, #tpu.memory_space<vmem>>, vector<1x96x128xbf16>
    %24 = vector.shape_cast %23 : vector<1x96x128xbf16> to vector<96x128xbf16>
    %cst_22 = arith.constant dense<0.000000e+00> : vector<32x128xf32>
    %25 = tpu.matmul %22, %24, %cst_22 {dimension_numbers = #tpu.dot_dimension_numbers<[1], [0], [0], [1], [0, 0, 1, 1], [], []>} : vector<32x96xbf16>, vector<96x128xbf16>, vector<32x128xf32> -> vector<32x128xf32>
    %26 = arith.addf %15, %25 : vector<32x128xf32>
    %c5 = arith.constant 5 : index
    %c0_23 = arith.constant 0 : index
    %c0_24 = arith.constant 0 : index
    %27 = vector.load %arg2[%c5, %c0_23, %c0_24] : memref<6x96x128xbf16, #tpu.memory_space<vmem>>, vector<1x96x128xbf16>
    %28 = vector.shape_cast %27 : vector<1x96x128xbf16> to vector<96x128xbf16>
    %cst_25 = arith.constant dense<0.000000e+00> : vector<32x128xf32>
    %29 = tpu.matmul %22, %28, %cst_25 {dimension_numbers = #tpu.dot_dimension_numbers<[1], [0], [0], [1], [0, 0, 1, 1], [], []>} : vector<32x96xbf16>, vector<96x128xbf16>, vector<32x128xf32> -> vector<32x128xf32>
    %30 = arith.addf %19, %29 : vector<32x128xf32>
    %31 = arith.maximumf %26, %30 : vector<32x128xf32>
    %c0_26 = arith.constant 0 : index
    %c0_27 = arith.constant 0 : index
    %32 = vector.load %arg32[%c0_26, %c0_27] : memref<32x128xf32, #tpu.memory_space<vmem>>, vector<32x128xf32>
    tpu.vector_store %arg32[%c0_26, %c0_27], %31 {strides = array<i32>} : memref<32x128xf32, #tpu.memory_space<vmem>>, vector<32x128xf32>,
    %c0_28 = arith.constant 0 : index
    %c0_29 = arith.constant 0 : index
    %33 = tpu.strided_load %arg32[%c0_28, %c0_29] {strides = array<i32: 2, 1>} : memref<32x128xf32, #tpu.memory_space<vmem>>, vector<16x128xf32>
    %c1_30 = arith.constant 1 : index
    %c0_31 = arith.constant 0 : index
    %34 = tpu.strided_load %arg32[%c1_30, %c0_31] {strides = array<i32: 2, 1>} : memref<32x128xf32, #tpu.memory_space<vmem>>, vector<16x128xf32>
    %35 = arith.maximumf %33, %34 : vector<16x128xf32>
    %c0_32 = arith.constant 0 : index
    %c0_33 = arith.constant 0 : index
    %36 = vector.load %arg3[%c0_32, %c0_33] : memref<1x128xf32, #tpu.memory_space<vmem>>, vector<1x128xf32>
    %37 = vector.broadcast %36 : vector<1x128xf32> to vector<16x128xf32>
    %38 = arith.addf %35, %37 : vector<16x128xf32>
    %cst_34 = arith.constant 0.000000e+00 : f32
    %39 = vector.broadcast %cst_34 : f32 to vector<16x128xf32>
    %40 = arith.maximumf %38, %39 : vector<16x128xf32>
    %cst_35 = arith.constant 0.000000e+00 : f32
    %41 = vector.broadcast %cst_35 : f32 to vector<1x128xf32>
    %c0_36 = arith.constant 0 : index
    %c0_37 = arith.constant 0 : index
    %42 = vector.load %arg25[%c0_36, %c0_37] : memref<18x128xf32, #tpu.memory_space<vmem>>, vector<1x128xf32>
    tpu.vector_store %arg25[%c0_36, %c0_37], %41 {strides = array<i32>} : memref<18x128xf32, #tpu.memory_space<vmem>>, vector<1x128xf32>,
    %c17 = arith.constant 17 : index
    %c0_38 = arith.constant 0 : index
    %43 = vector.load %arg25[%c17, %c0_38] : memref<18x128xf32, #tpu.memory_space<vmem>>, vector<1x128xf32>
    tpu.vector_store %arg25[%c17, %c0_38], %41 {strides = array<i32>} : memref<18x128xf32, #tpu.memory_space<vmem>>, vector<1x128xf32>,
    %c1_39 = arith.constant 1 : index
    %c0_40 = arith.constant 0 : index
    %44 = vector.load %arg25[%c1_39, %c0_40] : memref<18x128xf32, #tpu.memory_space<vmem>>, vector<16x128xf32>
    tpu.vector_store %arg25[%c1_39, %c0_40], %40 {strides = array<i32>} : memref<18x128xf32, #tpu.memory_space<vmem>>, vector<16x128xf32>,
    %c0_41 = arith.constant 0 : index
    %c0_42 = arith.constant 0 : index
    %45 = vector.load %arg25[%c0_41, %c0_42] : memref<18x128xf32, #tpu.memory_space<vmem>>, vector<16x128xf32>
    %46 = arith.truncf %45 : vector<16x128xf32> to vector<16x128xbf16>
    %c0_43 = arith.constant 0 : index
    %c0_44 = arith.constant 0 : index
    %c0_45 = arith.constant 0 : index
    %47 = vector.load %arg4[%c0_43, %c0_44, %c0_45] : memref<6x128x128xbf16, #tpu.memory_space<vmem>>, vector<1x128x128xbf16>
    %48 = vector.shape_cast %47 : vector<1x128x128xbf16> to vector<128x128xbf16>
    %cst_46 = arith.constant dense<0.000000e+00> : vector<16x128xf32>
    %49 = tpu.matmul %46, %48, %cst_46 {dimension_numbers = #tpu.dot_dimension_numbers<[1], [0], [0], [1], [0, 0, 1, 1], [], []>} : vector<16x128xbf16>, vector<128x128xbf16>, vector<16x128xf32> -> vector<16x128xf32>
    %c3_47 = arith.constant 3 : index
    %c0_48 = arith.constant 0 : index
    %c0_49 = arith.constant 0 : index
    %50 = vector.load %arg4[%c3_47, %c0_48, %c0_49] : memref<6x128x128xbf16, #tpu.memory_space<vmem>>, vector<1x128x128xbf16>
    %51 = vector.shape_cast %50 : vector<1x128x128xbf16> to vector<128x128xbf16>
    %cst_50 = arith.constant dense<0.000000e+00> : vector<16x128xf32>
    %52 = tpu.matmul %46, %51, %cst_50 {dimension_numbers = #tpu.dot_dimension_numbers<[1], [0], [0], [1], [0, 0, 1, 1], [], []>} : vector<16x128xbf16>, vector<128x128xbf16>, vector<16x128xf32> -> vector<16x128xf32>
    %c1_51 = arith.constant 1 : index
    %c0_52 = arith.constant 0 : index
    %53 = vector.load %arg25[%c1_51, %c0_52] : memref<18x128xf32, #tpu.memory_space<vmem>>, vector<16x128xf32>
    %54 = arith.truncf %53 : vector<16x128xf32> to vector<16x128xbf16>
    %c1_53 = arith.constant 1 : index
    %c0_54 = arith.constant 0 : index
    %c0_55 = arith.constant 0 : index
    %55 = vector.load %arg4[%c1_53, %c0_54, %c0_55] : memref<6x128x128xbf16, #tpu.memory_space<vmem>>, vector<1x128x128xbf16>
    %56 = vector.shape_cast %55 : vector<1x128x128xbf16> to vector<128x128xbf16>
    %cst_56 = arith.constant dense<0.000000e+00> : vector<16x128xf32>
    %57 = tpu.matmul %54, %56, %cst_56 {dimension_numbers = #tpu.dot_dimension_numbers<[1], [0], [0], [1], [0, 0, 1, 1], [], []>} : vector<16x128xbf16>, vector<128x128xbf16>, vector<16x128xf32> -> vector<16x128xf32>
    %58 = arith.addf %49, %57 : vector<16x128xf32>
    %c4_57 = arith.constant 4 : index
    %c0_58 = arith.constant 0 : index
    %c0_59 = arith.constant 0 : index
    %59 = vector.load %arg4[%c4_57, %c0_58, %c0_59] : memref<6x128x128xbf16, #tpu.memory_space<vmem>>, vector<1x128x128xbf16>
    %60 = vector.shape_cast %59 : vector<1x128x128xbf16> to vector<128x128xbf16>
    %cst_60 = arith.constant dense<0.000000e+00> : vector<16x128xf32>
    %61 = tpu.matmul %54, %60, %cst_60 {dimension_numbers = #tpu.dot_dimension_numbers<[1], [0], [0], [1], [0, 0, 1, 1], [], []>} : vector<16x128xbf16>, vector<128x128xbf16>, vector<16x128xf32> -> vector<16x128xf32>
    %62 = arith.addf %52, %61 : vector<16x128xf32>
    %c2_61 = arith.constant 2 : index
    %c0_62 = arith.constant 0 : index
    %63 = vector.load %arg25[%c2_61, %c0_62] : memref<18x128xf32, #tpu.memory_space<vmem>>, vector<16x128xf32>
    %64 = arith.truncf %63 : vector<16x128xf32> to vector<16x128xbf16>
    %c2_63 = arith.constant 2 : index
    %c0_64 = arith.constant 0 : index
    %c0_65 = arith.constant 0 : index
    %65 = vector.load %arg4[%c2_63, %c0_64, %c0_65] : memref<6x128x128xbf16, #tpu.memory_space<vmem>>, vector<1x128x128xbf16>
    %66 = vector.shape_cast %65 : vector<1x128x128xbf16> to vector<128x128xbf16>
    %cst_66 = arith.constant dense<0.000000e+00> : vector<16x128xf32>
    %67 = tpu.matmul %64, %66, %cst_66 {dimension_numbers = #tpu.dot_dimension_numbers<[1], [0], [0], [1], [0, 0, 1, 1], [], []>} : vector<16x128xbf16>, vector<128x128xbf16>, vector<16x128xf32> -> vector<16x128xf32>
    %68 = arith.addf %58, %67 : vector<16x128xf32>
    %c5_67 = arith.constant 5 : index
    %c0_68 = arith.constant 0 : index
    %c0_69 = arith.constant 0 : index
    %69 = vector.load %arg4[%c5_67, %c0_68, %c0_69] : memref<6x128x128xbf16, #tpu.memory_space<vmem>>, vector<1x128x128xbf16>
    %70 = vector.shape_cast %69 : vector<1x128x128xbf16> to vector<128x128xbf16>
    %cst_70 = arith.constant dense<0.000000e+00> : vector<16x128xf32>
    %71 = tpu.matmul %64, %70, %cst_70 {dimension_numbers = #tpu.dot_dimension_numbers<[1], [0], [0], [1], [0, 0, 1, 1], [], []>} : vector<16x128xbf16>, vector<128x128xbf16>, vector<16x128xf32> -> vector<16x128xf32>
    %72 = arith.addf %62, %71 : vector<16x128xf32>
    %73 = arith.maximumf %68, %72 : vector<16x128xf32>
    %c0_71 = arith.constant 0 : index
    %c0_72 = arith.constant 0 : index
    %74 = vector.load %arg32[%c0_71, %c0_72] : memref<32x128xf32, #tpu.memory_space<vmem>>, vector<16x128xf32>
    tpu.vector_store %arg32[%c0_71, %c0_72], %73 {strides = array<i32>} : memref<32x128xf32, #tpu.memory_space<vmem>>, vector<16x128xf32>,
    %c0_73 = arith.constant 0 : index
    %c0_74 = arith.constant 0 : index
    %75 = tpu.strided_load %arg32[%c0_73, %c0_74] {strides = array<i32: 2, 1>} : memref<32x128xf32, #tpu.memory_space<vmem>>, vector<8x128xf32>
    %c1_75 = arith.constant 1 : index
    %c0_76 = arith.constant 0 : index
    %76 = tpu.strided_load %arg32[%c1_75, %c0_76] {strides = array<i32: 2, 1>} : memref<32x128xf32, #tpu.memory_space<vmem>>, vector<8x128xf32>
    %77 = arith.maximumf %75, %76 : vector<8x128xf32>
    %c0_77 = arith.constant 0 : index
    %c0_78 = arith.constant 0 : index
    %78 = vector.load %arg5[%c0_77, %c0_78] : memref<1x128xf32, #tpu.memory_space<vmem>>, vector<1x128xf32>
    %79 = vector.broadcast %78 : vector<1x128xf32> to vector<8x128xf32>
    %80 = arith.addf %77, %79 : vector<8x128xf32>
    %cst_79 = arith.constant 0.000000e+00 : f32
    %81 = vector.broadcast %cst_79 : f32 to vector<8x128xf32>
    %82 = arith.maximumf %80, %81 : vector<8x128xf32>
    %cst_80 = arith.constant 0.000000e+00 : f32
    %83 = vector.broadcast %cst_80 : f32 to vector<1x128xf32>
    %c0_81 = arith.constant 0 : index
    %c0_82 = arith.constant 0 : index
    %84 = vector.load %arg26[%c0_81, %c0_82] : memref<10x128xf32, #tpu.memory_space<vmem>>, vector<1x128xf32>
    tpu.vector_store %arg26[%c0_81, %c0_82], %83 {strides = array<i32>} : memref<10x128xf32, #tpu.memory_space<vmem>>, vector<1x128xf32>,
    %c9 = arith.constant 9 : index
    %c0_83 = arith.constant 0 : index
    %85 = vector.load %arg26[%c9, %c0_83] : memref<10x128xf32, #tpu.memory_space<vmem>>, vector<1x128xf32>
    tpu.vector_store %arg26[%c9, %c0_83], %83 {strides = array<i32>} : memref<10x128xf32, #tpu.memory_space<vmem>>, vector<1x128xf32>,
    %c1_84 = arith.constant 1 : index
    %c0_85 = arith.constant 0 : index
    %86 = vector.load %arg26[%c1_84, %c0_85] : memref<10x128xf32, #tpu.memory_space<vmem>>, vector<8x128xf32>
    tpu.vector_store %arg26[%c1_84, %c0_85], %82 {strides = array<i32>} : memref<10x128xf32, #tpu.memory_space<vmem>>, vector<8x128xf32>,
    %c0_86 = arith.constant 0 : index
    %c0_87 = arith.constant 0 : index
    %87 = vector.load %arg26[%c0_86, %c0_87] : memref<10x128xf32, #tpu.memory_space<vmem>>, vector<8x128xf32>
    %88 = arith.truncf %87 : vector<8x128xf32> to vector<8x128xbf16>
    %c0_88 = arith.constant 0 : index
    %c0_89 = arith.constant 0 : index
    %c0_90 = arith.constant 0 : index
    %89 = vector.load %arg6[%c0_88, %c0_89, %c0_90] : memref<3x128x256xbf16, #tpu.memory_space<vmem>>, vector<1x128x256xbf16>
    %90 = vector.shape_cast %89 : vector<1x128x256xbf16> to vector<128x256xbf16>
    %cst_91 = arith.constant dense<0.000000e+00> : vector<8x256xf32>
    %91 = tpu.matmul %88, %90, %cst_91 {dimension_numbers = #tpu.dot_dimension_numbers<[1], [0], [0], [1], [0, 0, 1, 1], [], []>} : vector<8x128xbf16>, vector<128x256xbf16>, vector<8x256xf32> -> vector<8x256xf32>
    %c1_92 = arith.constant 1 : index
    %c0_93 = arith.constant 0 : index
    %92 = vector.load %arg26[%c1_92, %c0_93] : memref<10x128xf32, #tpu.memory_space<vmem>>, vector<8x128xf32>
    %93 = arith.truncf %92 : vector<8x128xf32> to vector<8x128xbf16>
    %c1_94 = arith.constant 1 : index
    %c0_95 = arith.constant 0 : index
    %c0_96 = arith.constant 0 : index
    %94 = vector.load %arg6[%c1_94, %c0_95, %c0_96] : memref<3x128x256xbf16, #tpu.memory_space<vmem>>, vector<1x128x256xbf16>
    %95 = vector.shape_cast %94 : vector<1x128x256xbf16> to vector<128x256xbf16>
    %cst_97 = arith.constant dense<0.000000e+00> : vector<8x256xf32>
    %96 = tpu.matmul %93, %95, %cst_97 {dimension_numbers = #tpu.dot_dimension_numbers<[1], [0], [0], [1], [0, 0, 1, 1], [], []>} : vector<8x128xbf16>, vector<128x256xbf16>, vector<8x256xf32> -> vector<8x256xf32>
    %97 = arith.addf %91, %96 : vector<8x256xf32>
    %c2_98 = arith.constant 2 : index
    %c0_99 = arith.constant 0 : index
    %98 = vector.load %arg26[%c2_98, %c0_99] : memref<10x128xf32, #tpu.memory_space<vmem>>, vector<8x128xf32>
    %99 = arith.truncf %98 : vector<8x128xf32> to vector<8x128xbf16>
    %c2_100 = arith.constant 2 : index
    %c0_101 = arith.constant 0 : index
    %c0_102 = arith.constant 0 : index
    %100 = vector.load %arg6[%c2_100, %c0_101, %c0_102] : memref<3x128x256xbf16, #tpu.memory_space<vmem>>, vector<1x128x256xbf16>
    %101 = vector.shape_cast %100 : vector<1x128x256xbf16> to vector<128x256xbf16>
    %cst_103 = arith.constant dense<0.000000e+00> : vector<8x256xf32>
    %102 = tpu.matmul %99, %101, %cst_103 {dimension_numbers = #tpu.dot_dimension_numbers<[1], [0], [0], [1], [0, 0, 1, 1], [], []>} : vector<8x128xbf16>, vector<128x256xbf16>, vector<8x256xf32> -> vector<8x256xf32>
    %103 = arith.addf %97, %102 : vector<8x256xf32>
    %c0_104 = arith.constant 0 : index
    %c0_105 = arith.constant 0 : index
    %104 = vector.load %arg7[%c0_104, %c0_105] : memref<1x256xf32, #tpu.memory_space<vmem>>, vector<1x256xf32>
    %105 = vector.broadcast %104 : vector<1x256xf32> to vector<8x256xf32>
    %106 = arith.addf %103, %105 : vector<8x256xf32>
    %cst_106 = arith.constant 0.000000e+00 : f32
    %107 = vector.broadcast %cst_106 : f32 to vector<8x256xf32>
    %108 = arith.maximumf %106, %107 : vector<8x256xf32>
    %cst_107 = arith.constant 0.000000e+00 : f32
    %109 = vector.broadcast %cst_107 : f32 to vector<1x256xf32>
    %c0_108 = arith.constant 0 : index
    %c0_109 = arith.constant 0 : index
    %110 = vector.load %arg27[%c0_108, %c0_109] : memref<10x256xf32, #tpu.memory_space<vmem>>, vector<1x256xf32>
    tpu.vector_store %arg27[%c0_108, %c0_109], %109 {strides = array<i32>} : memref<10x256xf32, #tpu.memory_space<vmem>>, vector<1x256xf32>,
    %c9_110 = arith.constant 9 : index
    %c0_111 = arith.constant 0 : index
    %111 = vector.load %arg27[%c9_110, %c0_111] : memref<10x256xf32, #tpu.memory_space<vmem>>, vector<1x256xf32>
    tpu.vector_store %arg27[%c9_110, %c0_111], %109 {strides = array<i32>} : memref<10x256xf32, #tpu.memory_space<vmem>>, vector<1x256xf32>,
    %c1_112 = arith.constant 1 : index
    %c0_113 = arith.constant 0 : index
    %112 = vector.load %arg27[%c1_112, %c0_113] : memref<10x256xf32, #tpu.memory_space<vmem>>, vector<8x256xf32>
    tpu.vector_store %arg27[%c1_112, %c0_113], %108 {strides = array<i32>} : memref<10x256xf32, #tpu.memory_space<vmem>>, vector<8x256xf32>,
    %c0_114 = arith.constant 0 : index
    %c0_115 = arith.constant 0 : index
    %113 = vector.load %arg27[%c0_114, %c0_115] : memref<10x256xf32, #tpu.memory_space<vmem>>, vector<8x256xf32>
    %114 = arith.truncf %113 : vector<8x256xf32> to vector<8x256xbf16>
    %c0_116 = arith.constant 0 : index
    %c0_117 = arith.constant 0 : index
    %c0_118 = arith.constant 0 : index
    %115 = vector.load %arg8[%c0_116, %c0_117, %c0_118] : memref<6x256x128xbf16, #tpu.memory_space<vmem>>, vector<1x256x128xbf16>
    %116 = vector.shape_cast %115 : vector<1x256x128xbf16> to vector<256x128xbf16>
    %cst_119 = arith.constant dense<0.000000e+00> : vector<8x128xf32>
    %117 = tpu.matmul %114, %116, %cst_119 {dimension_numbers = #tpu.dot_dimension_numbers<[1], [0], [0], [1], [0, 0, 1, 1], [], []>} : vector<8x256xbf16>, vector<256x128xbf16>, vector<8x128xf32> -> vector<8x128xf32>
    %c3_120 = arith.constant 3 : index
    %c0_121 = arith.constant 0 : index
    %c0_122 = arith.constant 0 : index
    %118 = vector.load %arg8[%c3_120, %c0_121, %c0_122] : memref<6x256x128xbf16, #tpu.memory_space<vmem>>, vector<1x256x128xbf16>
    %119 = vector.shape_cast %118 : vector<1x256x128xbf16> to vector<256x128xbf16>
    %cst_123 = arith.constant dense<0.000000e+00> : vector<8x128xf32>
    %120 = tpu.matmul %114, %119, %cst_123 {dimension_numbers = #tpu.dot_dimension_numbers<[1], [0], [0], [1], [0, 0, 1, 1], [], []>} : vector<8x256xbf16>, vector<256x128xbf16>, vector<8x128xf32> -> vector<8x128xf32>
    %c1_124 = arith.constant 1 : index
    %c0_125 = arith.constant 0 : index
    %121 = vector.load %arg27[%c1_124, %c0_125] : memref<10x256xf32, #tpu.memory_space<vmem>>, vector<8x256xf32>
    %122 = arith.truncf %121 : vector<8x256xf32> to vector<8x256xbf16>
    %c1_126 = arith.constant 1 : index
    %c0_127 = arith.constant 0 : index
    %c0_128 = arith.constant 0 : index
    %123 = vector.load %arg8[%c1_126, %c0_127, %c0_128] : memref<6x256x128xbf16, #tpu.memory_space<vmem>>, vector<1x256x128xbf16>
    %124 = vector.shape_cast %123 : vector<1x256x128xbf16> to vector<256x128xbf16>
    %cst_129 = arith.constant dense<0.000000e+00> : vector<8x128xf32>
    %125 = tpu.matmul %122, %124, %cst_129 {dimension_numbers = #tpu.dot_dimension_numbers<[1], [0], [0], [1], [0, 0, 1, 1], [], []>} : vector<8x256xbf16>, vector<256x128xbf16>, vector<8x128xf32> -> vector<8x128xf32>
    %126 = arith.addf %117, %125 : vector<8x128xf32>
    %c4_130 = arith.constant 4 : index
    %c0_131 = arith.constant 0 : index
    %c0_132 = arith.constant 0 : index
    %127 = vector.load %arg8[%c4_130, %c0_131, %c0_132] : memref<6x256x128xbf16, #tpu.memory_space<vmem>>, vector<1x256x128xbf16>
    %128 = vector.shape_cast %127 : vector<1x256x128xbf16> to vector<256x128xbf16>
    %cst_133 = arith.constant dense<0.000000e+00> : vector<8x128xf32>
    %129 = tpu.matmul %122, %128, %cst_133 {dimension_numbers = #tpu.dot_dimension_numbers<[1], [0], [0], [1], [0, 0, 1, 1], [], []>} : vector<8x256xbf16>, vector<256x128xbf16>, vector<8x128xf32> -> vector<8x128xf32>
    %130 = arith.addf %120, %129 : vector<8x128xf32>
    %c2_134 = arith.constant 2 : index
    %c0_135 = arith.constant 0 : index
    %131 = vector.load %arg27[%c2_134, %c0_135] : memref<10x256xf32, #tpu.memory_space<vmem>>, vector<8x256xf32>
    %132 = arith.truncf %131 : vector<8x256xf32> to vector<8x256xbf16>
    %c2_136 = arith.constant 2 : index
    %c0_137 = arith.constant 0 : index
    %c0_138 = arith.constant 0 : index
    %133 = vector.load %arg8[%c2_136, %c0_137, %c0_138] : memref<6x256x128xbf16, #tpu.memory_space<vmem>>, vector<1x256x128xbf16>
    %134 = vector.shape_cast %133 : vector<1x256x128xbf16> to vector<256x128xbf16>
    %cst_139 = arith.constant dense<0.000000e+00> : vector<8x128xf32>
    %135 = tpu.matmul %132, %134, %cst_139 {dimension_numbers = #tpu.dot_dimension_numbers<[1], [0], [0], [1], [0, 0, 1, 1], [], []>} : vector<8x256xbf16>, vector<256x128xbf16>, vector<8x128xf32> -> vector<8x128xf32>
    %136 = arith.addf %126, %135 : vector<8x128xf32>
    %c5_140 = arith.constant 5 : index
    %c0_141 = arith.constant 0 : index
    %c0_142 = arith.constant 0 : index
    %137 = vector.load %arg8[%c5_140, %c0_141, %c0_142] : memref<6x256x128xbf16, #tpu.memory_space<vmem>>, vector<1x256x128xbf16>
    %138 = vector.shape_cast %137 : vector<1x256x128xbf16> to vector<256x128xbf16>
    %cst_143 = arith.constant dense<0.000000e+00> : vector<8x128xf32>
    %139 = tpu.matmul %132, %138, %cst_143 {dimension_numbers = #tpu.dot_dimension_numbers<[1], [0], [0], [1], [0, 0, 1, 1], [], []>} : vector<8x256xbf16>, vector<256x128xbf16>, vector<8x128xf32> -> vector<8x128xf32>
    %140 = arith.addf %130, %139 : vector<8x128xf32>
    %141 = arith.maximumf %136, %140 : vector<8x128xf32>
    %c0_144 = arith.constant 0 : index
    %c0_145 = arith.constant 0 : index
    %142 = vector.load %arg32[%c0_144, %c0_145] : memref<32x128xf32, #tpu.memory_space<vmem>>, vector<8x128xf32>
    tpu.vector_store %arg32[%c0_144, %c0_145], %141 {strides = array<i32>} : memref<32x128xf32, #tpu.memory_space<vmem>>, vector<8x128xf32>,
    %c0_146 = arith.constant 0 : index
    %c0_147 = arith.constant 0 : index
    %143 = tpu.strided_load %arg32[%c0_146, %c0_147] {strides = array<i32: 2, 1>} : memref<32x128xf32, #tpu.memory_space<vmem>>, vector<4x128xf32>
    %c1_148 = arith.constant 1 : index
    %c0_149 = arith.constant 0 : index
    %144 = tpu.strided_load %arg32[%c1_148, %c0_149] {strides = array<i32: 2, 1>} : memref<32x128xf32, #tpu.memory_space<vmem>>, vector<4x128xf32>
    %145 = arith.maximumf %143, %144 : vector<4x128xf32>
    %c0_150 = arith.constant 0 : index
    %c0_151 = arith.constant 0 : index
    %146 = vector.load %arg9[%c0_150, %c0_151] : memref<1x128xf32, #tpu.memory_space<vmem>>, vector<1x128xf32>
    %147 = vector.broadcast %146 : vector<1x128xf32> to vector<4x128xf32>
    %148 = arith.addf %145, %147 : vector<4x128xf32>
    %cst_152 = arith.constant 0.000000e+00 : f32
    %149 = vector.broadcast %cst_152 : f32 to vector<4x128xf32>
    %150 = arith.maximumf %148, %149 : vector<4x128xf32>
    %cst_153 = arith.constant 0.000000e+00 : f32
    %151 = vector.broadcast %cst_153 : f32 to vector<1x128xf32>
    %c0_154 = arith.constant 0 : index
    %c0_155 = arith.constant 0 : index
    %152 = vector.load %arg28[%c0_154, %c0_155] : memref<6x128xf32, #tpu.memory_space<vmem>>, vector<1x128xf32>
    tpu.vector_store %arg28[%c0_154, %c0_155], %151 {strides = array<i32>} : memref<6x128xf32, #tpu.memory_space<vmem>>, vector<1x128xf32>,
    %c5_156 = arith.constant 5 : index
    %c0_157 = arith.constant 0 : index
    %153 = vector.load %arg28[%c5_156, %c0_157] : memref<6x128xf32, #tpu.memory_space<vmem>>, vector<1x128xf32>
    tpu.vector_store %arg28[%c5_156, %c0_157], %151 {strides = array<i32>} : memref<6x128xf32, #tpu.memory_space<vmem>>, vector<1x128xf32>,
    %c1_158 = arith.constant 1 : index
    %c0_159 = arith.constant 0 : index
    %154 = vector.load %arg28[%c1_158, %c0_159] : memref<6x128xf32, #tpu.memory_space<vmem>>, vector<4x128xf32>
    tpu.vector_store %arg28[%c1_158, %c0_159], %150 {strides = array<i32>} : memref<6x128xf32, #tpu.memory_space<vmem>>, vector<4x128xf32>,
    %c0_160 = arith.constant 0 : index
    %c0_161 = arith.constant 0 : index
    %155 = vector.load %arg28[%c0_160, %c0_161] : memref<6x128xf32, #tpu.memory_space<vmem>>, vector<4x128xf32>
    %156 = arith.truncf %155 : vector<4x128xf32> to vector<4x128xbf16>
    %c0_162 = arith.constant 0 : index
    %c0_163 = arith.constant 0 : index
    %c0_164 = arith.constant 0 : index
    %157 = vector.load %arg10[%c0_162, %c0_163, %c0_164] : memref<3x128x256xbf16, #tpu.memory_space<vmem>>, vector<1x128x256xbf16>
    %158 = vector.shape_cast %157 : vector<1x128x256xbf16> to vector<128x256xbf16>
    %cst_165 = arith.constant dense<0.000000e+00> : vector<4x256xf32>
    %159 = tpu.matmul %156, %158, %cst_165 {dimension_numbers = #tpu.dot_dimension_numbers<[1], [0], [0], [1], [0, 0, 1, 1], [], []>} : vector<4x128xbf16>, vector<128x256xbf16>, vector<4x256xf32> -> vector<4x256xf32>
    %c1_166 = arith.constant 1 : index
    %c0_167 = arith.constant 0 : index
    %160 = vector.load %arg28[%c1_166, %c0_167] : memref<6x128xf32, #tpu.memory_space<vmem>>, vector<4x128xf32>
    %161 = arith.truncf %160 : vector<4x128xf32> to vector<4x128xbf16>
    %c1_168 = arith.constant 1 : index
    %c0_169 = arith.constant 0 : index
    %c0_170 = arith.constant 0 : index
    %162 = vector.load %arg10[%c1_168, %c0_169, %c0_170] : memref<3x128x256xbf16, #tpu.memory_space<vmem>>, vector<1x128x256xbf16>
    %163 = vector.shape_cast %162 : vector<1x128x256xbf16> to vector<128x256xbf16>
    %cst_171 = arith.constant dense<0.000000e+00> : vector<4x256xf32>
    %164 = tpu.matmul %161, %163, %cst_171 {dimension_numbers = #tpu.dot_dimension_numbers<[1], [0], [0], [1], [0, 0, 1, 1], [], []>} : vector<4x128xbf16>, vector<128x256xbf16>, vector<4x256xf32> -> vector<4x256xf32>
    %165 = arith.addf %159, %164 : vector<4x256xf32>
    %c2_172 = arith.constant 2 : index
    %c0_173 = arith.constant 0 : index
    %166 = vector.load %arg28[%c2_172, %c0_173] : memref<6x128xf32, #tpu.memory_space<vmem>>, vector<4x128xf32>
    %167 = arith.truncf %166 : vector<4x128xf32> to vector<4x128xbf16>
    %c2_174 = arith.constant 2 : index
    %c0_175 = arith.constant 0 : index
    %c0_176 = arith.constant 0 : index
    %168 = vector.load %arg10[%c2_174, %c0_175, %c0_176] : memref<3x128x256xbf16, #tpu.memory_space<vmem>>, vector<1x128x256xbf16>
    %169 = vector.shape_cast %168 : vector<1x128x256xbf16> to vector<128x256xbf16>
    %cst_177 = arith.constant dense<0.000000e+00> : vector<4x256xf32>
    %170 = tpu.matmul %167, %169, %cst_177 {dimension_numbers = #tpu.dot_dimension_numbers<[1], [0], [0], [1], [0, 0, 1, 1], [], []>} : vector<4x128xbf16>, vector<128x256xbf16>, vector<4x256xf32> -> vector<4x256xf32>
    %171 = arith.addf %165, %170 : vector<4x256xf32>
    %c0_178 = arith.constant 0 : index
    %c0_179 = arith.constant 0 : index
    %172 = vector.load %arg11[%c0_178, %c0_179] : memref<1x256xf32, #tpu.memory_space<vmem>>, vector<1x256xf32>
    %173 = vector.broadcast %172 : vector<1x256xf32> to vector<4x256xf32>
    %174 = arith.addf %171, %173 : vector<4x256xf32>
    %cst_180 = arith.constant 0.000000e+00 : f32
    %175 = vector.broadcast %cst_180 : f32 to vector<4x256xf32>
    %176 = arith.maximumf %174, %175 : vector<4x256xf32>
    %cst_181 = arith.constant 0.000000e+00 : f32
    %177 = vector.broadcast %cst_181 : f32 to vector<1x256xf32>
    %c0_182 = arith.constant 0 : index
    %c0_183 = arith.constant 0 : index
    %178 = vector.load %arg29[%c0_182, %c0_183] : memref<6x256xf32, #tpu.memory_space<vmem>>, vector<1x256xf32>
    tpu.vector_store %arg29[%c0_182, %c0_183], %177 {strides = array<i32>} : memref<6x256xf32, #tpu.memory_space<vmem>>, vector<1x256xf32>,
    %c5_184 = arith.constant 5 : index
    %c0_185 = arith.constant 0 : index
    %179 = vector.load %arg29[%c5_184, %c0_185] : memref<6x256xf32, #tpu.memory_space<vmem>>, vector<1x256xf32>
    tpu.vector_store %arg29[%c5_184, %c0_185], %177 {strides = array<i32>} : memref<6x256xf32, #tpu.memory_space<vmem>>, vector<1x256xf32>,
    %c1_186 = arith.constant 1 : index
    %c0_187 = arith.constant 0 : index
    %180 = vector.load %arg29[%c1_186, %c0_187] : memref<6x256xf32, #tpu.memory_space<vmem>>, vector<4x256xf32>
    tpu.vector_store %arg29[%c1_186, %c0_187], %176 {strides = array<i32>} : memref<6x256xf32, #tpu.memory_space<vmem>>, vector<4x256xf32>,
    %c0_188 = arith.constant 0 : index
    %c0_189 = arith.constant 0 : index
    %181 = vector.load %arg29[%c0_188, %c0_189] : memref<6x256xf32, #tpu.memory_space<vmem>>, vector<4x256xf32>
    %182 = arith.truncf %181 : vector<4x256xf32> to vector<4x256xbf16>
    %c0_190 = arith.constant 0 : index
    %c0_191 = arith.constant 0 : index
    %c0_192 = arith.constant 0 : index
    %183 = vector.load %arg12[%c0_190, %c0_191, %c0_192] : memref<6x256x128xbf16, #tpu.memory_space<vmem>>, vector<1x256x128xbf16>
    %184 = vector.shape_cast %183 : vector<1x256x128xbf16> to vector<256x128xbf16>
    %cst_193 = arith.constant dense<0.000000e+00> : vector<4x128xf32>
    %185 = tpu.matmul %182, %184, %cst_193 {dimension_numbers = #tpu.dot_dimension_numbers<[1], [0], [0], [1], [0, 0, 1, 1], [], []>} : vector<4x256xbf16>, vector<256x128xbf16>, vector<4x128xf32> -> vector<4x128xf32>
    %c3_194 = arith.constant 3 : index
    %c0_195 = arith.constant 0 : index
    %c0_196 = arith.constant 0 : index
    %186 = vector.load %arg12[%c3_194, %c0_195, %c0_196] : memref<6x256x128xbf16, #tpu.memory_space<vmem>>, vector<1x256x128xbf16>
    %187 = vector.shape_cast %186 : vector<1x256x128xbf16> to vector<256x128xbf16>
    %cst_197 = arith.constant dense<0.000000e+00> : vector<4x128xf32>
    %188 = tpu.matmul %182, %187, %cst_197 {dimension_numbers = #tpu.dot_dimension_numbers<[1], [0], [0], [1], [0, 0, 1, 1], [], []>} : vector<4x256xbf16>, vector<256x128xbf16>, vector<4x128xf32> -> vector<4x128xf32>
    %c1_198 = arith.constant 1 : index
    %c0_199 = arith.constant 0 : index
    %189 = vector.load %arg29[%c1_198, %c0_199] : memref<6x256xf32, #tpu.memory_space<vmem>>, vector<4x256xf32>
    %190 = arith.truncf %189 : vector<4x256xf32> to vector<4x256xbf16>
    %c1_200 = arith.constant 1 : index
    %c0_201 = arith.constant 0 : index
    %c0_202 = arith.constant 0 : index
    %191 = vector.load %arg12[%c1_200, %c0_201, %c0_202] : memref<6x256x128xbf16, #tpu.memory_space<vmem>>, vector<1x256x128xbf16>
    %192 = vector.shape_cast %191 : vector<1x256x128xbf16> to vector<256x128xbf16>
    %cst_203 = arith.constant dense<0.000000e+00> : vector<4x128xf32>
    %193 = tpu.matmul %190, %192, %cst_203 {dimension_numbers = #tpu.dot_dimension_numbers<[1], [0], [0], [1], [0, 0, 1, 1], [], []>} : vector<4x256xbf16>, vector<256x128xbf16>, vector<4x128xf32> -> vector<4x128xf32>
    %194 = arith.addf %185, %193 : vector<4x128xf32>
    %c4_204 = arith.constant 4 : index
    %c0_205 = arith.constant 0 : index
    %c0_206 = arith.constant 0 : index
    %195 = vector.load %arg12[%c4_204, %c0_205, %c0_206] : memref<6x256x128xbf16, #tpu.memory_space<vmem>>, vector<1x256x128xbf16>
    %196 = vector.shape_cast %195 : vector<1x256x128xbf16> to vector<256x128xbf16>
    %cst_207 = arith.constant dense<0.000000e+00> : vector<4x128xf32>
    %197 = tpu.matmul %190, %196, %cst_207 {dimension_numbers = #tpu.dot_dimension_numbers<[1], [0], [0], [1], [0, 0, 1, 1], [], []>} : vector<4x256xbf16>, vector<256x128xbf16>, vector<4x128xf32> -> vector<4x128xf32>
    %198 = arith.addf %188, %197 : vector<4x128xf32>
    %c2_208 = arith.constant 2 : index
    %c0_209 = arith.constant 0 : index
    %199 = vector.load %arg29[%c2_208, %c0_209] : memref<6x256xf32, #tpu.memory_space<vmem>>, vector<4x256xf32>
    %200 = arith.truncf %199 : vector<4x256xf32> to vector<4x256xbf16>
    %c2_210 = arith.constant 2 : index
    %c0_211 = arith.constant 0 : index
    %c0_212 = arith.constant 0 : index
    %201 = vector.load %arg12[%c2_210, %c0_211, %c0_212] : memref<6x256x128xbf16, #tpu.memory_space<vmem>>, vector<1x256x128xbf16>
    %202 = vector.shape_cast %201 : vector<1x256x128xbf16> to vector<256x128xbf16>
    %cst_213 = arith.constant dense<0.000000e+00> : vector<4x128xf32>
    %203 = tpu.matmul %200, %202, %cst_213 {dimension_numbers = #tpu.dot_dimension_numbers<[1], [0], [0], [1], [0, 0, 1, 1], [], []>} : vector<4x256xbf16>, vector<256x128xbf16>, vector<4x128xf32> -> vector<4x128xf32>
    %204 = arith.addf %194, %203 : vector<4x128xf32>
    %c5_214 = arith.constant 5 : index
    %c0_215 = arith.constant 0 : index
    %c0_216 = arith.constant 0 : index
    %205 = vector.load %arg12[%c5_214, %c0_215, %c0_216] : memref<6x256x128xbf16, #tpu.memory_space<vmem>>, vector<1x256x128xbf16>
    %206 = vector.shape_cast %205 : vector<1x256x128xbf16> to vector<256x128xbf16>
    %cst_217 = arith.constant dense<0.000000e+00> : vector<4x128xf32>
    %207 = tpu.matmul %200, %206, %cst_217 {dimension_numbers = #tpu.dot_dimension_numbers<[1], [0], [0], [1], [0, 0, 1, 1], [], []>} : vector<4x256xbf16>, vector<256x128xbf16>, vector<4x128xf32> -> vector<4x128xf32>
    %208 = arith.addf %198, %207 : vector<4x128xf32>
    %209 = arith.maximumf %204, %208 : vector<4x128xf32>
    %c0_218 = arith.constant 0 : index
    %c0_219 = arith.constant 0 : index
    %210 = vector.load %arg32[%c0_218, %c0_219] : memref<32x128xf32, #tpu.memory_space<vmem>>, vector<4x128xf32>
    tpu.vector_store %arg32[%c0_218, %c0_219], %209 {strides = array<i32>} : memref<32x128xf32, #tpu.memory_space<vmem>>, vector<4x128xf32>,
    %c0_220 = arith.constant 0 : index
    %c0_221 = arith.constant 0 : index
    %211 = tpu.strided_load %arg32[%c0_220, %c0_221] {strides = array<i32: 2, 1>} : memref<32x128xf32, #tpu.memory_space<vmem>>, vector<2x128xf32>
    %c1_222 = arith.constant 1 : index
    %c0_223 = arith.constant 0 : index
    %212 = tpu.strided_load %arg32[%c1_222, %c0_223] {strides = array<i32: 2, 1>} : memref<32x128xf32, #tpu.memory_space<vmem>>, vector<2x128xf32>
    %213 = arith.maximumf %211, %212 : vector<2x128xf32>
    %c0_224 = arith.constant 0 : index
    %c0_225 = arith.constant 0 : index
    %214 = vector.load %arg13[%c0_224, %c0_225] : memref<1x128xf32, #tpu.memory_space<vmem>>, vector<1x128xf32>
    %215 = vector.broadcast %214 : vector<1x128xf32> to vector<2x128xf32>
    %216 = arith.addf %213, %215 : vector<2x128xf32>
    %cst_226 = arith.constant 0.000000e+00 : f32
    %217 = vector.broadcast %cst_226 : f32 to vector<2x128xf32>
    %218 = arith.maximumf %216, %217 : vector<2x128xf32>
    %cst_227 = arith.constant 0.000000e+00 : f32
    %219 = vector.broadcast %cst_227 : f32 to vector<1x128xf32>
    %c0_228 = arith.constant 0 : index
    %c0_229 = arith.constant 0 : index
    %220 = vector.load %arg30[%c0_228, %c0_229] : memref<4x128xf32, #tpu.memory_space<vmem>>, vector<1x128xf32>
    tpu.vector_store %arg30[%c0_228, %c0_229], %219 {strides = array<i32>} : memref<4x128xf32, #tpu.memory_space<vmem>>, vector<1x128xf32>,
    %c3_230 = arith.constant 3 : index
    %c0_231 = arith.constant 0 : index
    %221 = vector.load %arg30[%c3_230, %c0_231] : memref<4x128xf32, #tpu.memory_space<vmem>>, vector<1x128xf32>
    tpu.vector_store %arg30[%c3_230, %c0_231], %219 {strides = array<i32>} : memref<4x128xf32, #tpu.memory_space<vmem>>, vector<1x128xf32>,
    %c1_232 = arith.constant 1 : index
    %c0_233 = arith.constant 0 : index
    %222 = vector.load %arg30[%c1_232, %c0_233] : memref<4x128xf32, #tpu.memory_space<vmem>>, vector<2x128xf32>
    tpu.vector_store %arg30[%c1_232, %c0_233], %218 {strides = array<i32>} : memref<4x128xf32, #tpu.memory_space<vmem>>, vector<2x128xf32>,
    %c0_234 = arith.constant 0 : index
    %c0_235 = arith.constant 0 : index
    %223 = vector.load %arg30[%c0_234, %c0_235] : memref<4x128xf32, #tpu.memory_space<vmem>>, vector<2x128xf32>
    %224 = arith.truncf %223 : vector<2x128xf32> to vector<2x128xbf16>
    %c0_236 = arith.constant 0 : index
    %c0_237 = arith.constant 0 : index
    %c0_238 = arith.constant 0 : index
    %225 = vector.load %arg14[%c0_236, %c0_237, %c0_238] : memref<3x128x128xbf16, #tpu.memory_space<vmem>>, vector<1x128x128xbf16>
    %226 = vector.shape_cast %225 : vector<1x128x128xbf16> to vector<128x128xbf16>
    %cst_239 = arith.constant dense<0.000000e+00> : vector<2x128xf32>
    %227 = tpu.matmul %224, %226, %cst_239 {dimension_numbers = #tpu.dot_dimension_numbers<[1], [0], [0], [1], [0, 0, 1, 1], [], []>} : vector<2x128xbf16>, vector<128x128xbf16>, vector<2x128xf32> -> vector<2x128xf32>
    %c1_240 = arith.constant 1 : index
    %c0_241 = arith.constant 0 : index
    %228 = vector.load %arg30[%c1_240, %c0_241] : memref<4x128xf32, #tpu.memory_space<vmem>>, vector<2x128xf32>
    %229 = arith.truncf %228 : vector<2x128xf32> to vector<2x128xbf16>
    %c1_242 = arith.constant 1 : index
    %c0_243 = arith.constant 0 : index
    %c0_244 = arith.constant 0 : index
    %230 = vector.load %arg14[%c1_242, %c0_243, %c0_244] : memref<3x128x128xbf16, #tpu.memory_space<vmem>>, vector<1x128x128xbf16>
    %231 = vector.shape_cast %230 : vector<1x128x128xbf16> to vector<128x128xbf16>
    %cst_245 = arith.constant dense<0.000000e+00> : vector<2x128xf32>
    %232 = tpu.matmul %229, %231, %cst_245 {dimension_numbers = #tpu.dot_dimension_numbers<[1], [0], [0], [1], [0, 0, 1, 1], [], []>} : vector<2x128xbf16>, vector<128x128xbf16>, vector<2x128xf32> -> vector<2x128xf32>
    %233 = arith.addf %227, %232 : vector<2x128xf32>
    %c2_246 = arith.constant 2 : index
    %c0_247 = arith.constant 0 : index
    %234 = vector.load %arg30[%c2_246, %c0_247] : memref<4x128xf32, #tpu.memory_space<vmem>>, vector<2x128xf32>
    %235 = arith.truncf %234 : vector<2x128xf32> to vector<2x128xbf16>
    %c2_248 = arith.constant 2 : index
    %c0_249 = arith.constant 0 : index
    %c0_250 = arith.constant 0 : index
    %236 = vector.load %arg14[%c2_248, %c0_249, %c0_250] : memref<3x128x128xbf16, #tpu.memory_space<vmem>>, vector<1x128x128xbf16>
    %237 = vector.shape_cast %236 : vector<1x128x128xbf16> to vector<128x128xbf16>
    %cst_251 = arith.constant dense<0.000000e+00> : vector<2x128xf32>
    %238 = tpu.matmul %235, %237, %cst_251 {dimension_numbers = #tpu.dot_dimension_numbers<[1], [0], [0], [1], [0, 0, 1, 1], [], []>} : vector<2x128xbf16>, vector<128x128xbf16>, vector<2x128xf32> -> vector<2x128xf32>
    %239 = arith.addf %233, %238 : vector<2x128xf32>
    %c0_252 = arith.constant 0 : index
    %c0_253 = arith.constant 0 : index
    %240 = vector.load %arg15[%c0_252, %c0_253] : memref<1x128xf32, #tpu.memory_space<vmem>>, vector<1x128xf32>
    %241 = vector.broadcast %240 : vector<1x128xf32> to vector<2x128xf32>
    %242 = arith.addf %239, %241 : vector<2x128xf32>
    %cst_254 = arith.constant 0.000000e+00 : f32
    %243 = vector.broadcast %cst_254 : f32 to vector<2x128xf32>
    %244 = arith.maximumf %242, %243 : vector<2x128xf32>
    %cst_255 = arith.constant 0.000000e+00 : f32
    %245 = vector.broadcast %cst_255 : f32 to vector<1x128xf32>
    %c0_256 = arith.constant 0 : index
    %c0_257 = arith.constant 0 : index
    %246 = vector.load %arg31[%c0_256, %c0_257] : memref<4x128xf32, #tpu.memory_space<vmem>>, vector<1x128xf32>
    tpu.vector_store %arg31[%c0_256, %c0_257], %245 {strides = array<i32>} : memref<4x128xf32, #tpu.memory_space<vmem>>, vector<1x128xf32>,
    %c3_258 = arith.constant 3 : index
    %c0_259 = arith.constant 0 : index
    %247 = vector.load %arg31[%c3_258, %c0_259] : memref<4x128xf32, #tpu.memory_space<vmem>>, vector<1x128xf32>
    tpu.vector_store %arg31[%c3_258, %c0_259], %245 {strides = array<i32>} : memref<4x128xf32, #tpu.memory_space<vmem>>, vector<1x128xf32>,
    %c1_260 = arith.constant 1 : index
    %c0_261 = arith.constant 0 : index
    %248 = vector.load %arg31[%c1_260, %c0_261] : memref<4x128xf32, #tpu.memory_space<vmem>>, vector<2x128xf32>
    tpu.vector_store %arg31[%c1_260, %c0_261], %244 {strides = array<i32>} : memref<4x128xf32, #tpu.memory_space<vmem>>, vector<2x128xf32>,
    %c0_262 = arith.constant 0 : index
    %c0_263 = arith.constant 0 : index
    %249 = vector.load %arg31[%c0_262, %c0_263] : memref<4x128xf32, #tpu.memory_space<vmem>>, vector<2x128xf32>
    %250 = arith.truncf %249 : vector<2x128xf32> to vector<2x128xbf16>
    %c0_264 = arith.constant 0 : index
    %c0_265 = arith.constant 0 : index
    %c0_266 = arith.constant 0 : index
    %251 = vector.load %arg16[%c0_264, %c0_265, %c0_266] : memref<6x128x64xbf16, #tpu.memory_space<vmem>>, vector<1x128x64xbf16>
    %252 = vector.shape_cast %251 : vector<1x128x64xbf16> to vector<128x64xbf16>
    %cst_267 = arith.constant dense<0.000000e+00> : vector<2x64xf32>
    %253 = tpu.matmul %250, %252, %cst_267 {dimension_numbers = #tpu.dot_dimension_numbers<[1], [0], [0], [1], [0, 0, 1, 1], [], []>} : vector<2x128xbf16>, vector<128x64xbf16>, vector<2x64xf32> -> vector<2x64xf32>
    %c3_268 = arith.constant 3 : index
    %c0_269 = arith.constant 0 : index
    %c0_270 = arith.constant 0 : index
    %254 = vector.load %arg16[%c3_268, %c0_269, %c0_270] : memref<6x128x64xbf16, #tpu.memory_space<vmem>>, vector<1x128x64xbf16>
    %255 = vector.shape_cast %254 : vector<1x128x64xbf16> to vector<128x64xbf16>
    %cst_271 = arith.constant dense<0.000000e+00> : vector<2x64xf32>
    %256 = tpu.matmul %250, %255, %cst_271 {dimension_numbers = #tpu.dot_dimension_numbers<[1], [0], [0], [1], [0, 0, 1, 1], [], []>} : vector<2x128xbf16>, vector<128x64xbf16>, vector<2x64xf32> -> vector<2x64xf32>
    %c1_272 = arith.constant 1 : index
    %c0_273 = arith.constant 0 : index
    %257 = vector.load %arg31[%c1_272, %c0_273] : memref<4x128xf32, #tpu.memory_space<vmem>>, vector<2x128xf32>
    %258 = arith.truncf %257 : vector<2x128xf32> to vector<2x128xbf16>
    %c1_274 = arith.constant 1 : index
    %c0_275 = arith.constant 0 : index
    %c0_276 = arith.constant 0 : index
    %259 = vector.load %arg16[%c1_274, %c0_275, %c0_276] : memref<6x128x64xbf16, #tpu.memory_space<vmem>>, vector<1x128x64xbf16>
    %260 = vector.shape_cast %259 : vector<1x128x64xbf16> to vector<128x64xbf16>
    %cst_277 = arith.constant dense<0.000000e+00> : vector<2x64xf32>
    %261 = tpu.matmul %258, %260, %cst_277 {dimension_numbers = #tpu.dot_dimension_numbers<[1], [0], [0], [1], [0, 0, 1, 1], [], []>} : vector<2x128xbf16>, vector<128x64xbf16>, vector<2x64xf32> -> vector<2x64xf32>
    %262 = arith.addf %253, %261 : vector<2x64xf32>
    %c4_278 = arith.constant 4 : index
    %c0_279 = arith.constant 0 : index
    %c0_280 = arith.constant 0 : index
    %263 = vector.load %arg16[%c4_278, %c0_279, %c0_280] : memref<6x128x64xbf16, #tpu.memory_space<vmem>>, vector<1x128x64xbf16>
    %264 = vector.shape_cast %263 : vector<1x128x64xbf16> to vector<128x64xbf16>
    %cst_281 = arith.constant dense<0.000000e+00> : vector<2x64xf32>
    %265 = tpu.matmul %258, %264, %cst_281 {dimension_numbers = #tpu.dot_dimension_numbers<[1], [0], [0], [1], [0, 0, 1, 1], [], []>} : vector<2x128xbf16>, vector<128x64xbf16>, vector<2x64xf32> -> vector<2x64xf32>
    %266 = arith.addf %256, %265 : vector<2x64xf32>
    %c2_282 = arith.constant 2 : index
    %c0_283 = arith.constant 0 : index
    %267 = vector.load %arg31[%c2_282, %c0_283] : memref<4x128xf32, #tpu.memory_space<vmem>>, vector<2x128xf32>
    %268 = arith.truncf %267 : vector<2x128xf32> to vector<2x128xbf16>
    %c2_284 = arith.constant 2 : index
    %c0_285 = arith.constant 0 : index
    %c0_286 = arith.constant 0 : index
    %269 = vector.load %arg16[%c2_284, %c0_285, %c0_286] : memref<6x128x64xbf16, #tpu.memory_space<vmem>>, vector<1x128x64xbf16>
    %270 = vector.shape_cast %269 : vector<1x128x64xbf16> to vector<128x64xbf16>
    %cst_287 = arith.constant dense<0.000000e+00> : vector<2x64xf32>
    %271 = tpu.matmul %268, %270, %cst_287 {dimension_numbers = #tpu.dot_dimension_numbers<[1], [0], [0], [1], [0, 0, 1, 1], [], []>} : vector<2x128xbf16>, vector<128x64xbf16>, vector<2x64xf32> -> vector<2x64xf32>
    %272 = arith.addf %262, %271 : vector<2x64xf32>
    %c5_288 = arith.constant 5 : index
    %c0_289 = arith.constant 0 : index
    %c0_290 = arith.constant 0 : index
    %273 = vector.load %arg16[%c5_288, %c0_289, %c0_290] : memref<6x128x64xbf16, #tpu.memory_space<vmem>>, vector<1x128x64xbf16>
    %274 = vector.shape_cast %273 : vector<1x128x64xbf16> to vector<128x64xbf16>
    %cst_291 = arith.constant dense<0.000000e+00> : vector<2x64xf32>
    %275 = tpu.matmul %268, %274, %cst_291 {dimension_numbers = #tpu.dot_dimension_numbers<[1], [0], [0], [1], [0, 0, 1, 1], [], []>} : vector<2x128xbf16>, vector<128x64xbf16>, vector<2x64xf32> -> vector<2x64xf32>
    %276 = arith.addf %266, %275 : vector<2x64xf32>
    %277 = arith.maximumf %272, %276 : vector<2x64xf32>
    %c0_292 = arith.constant 0 : index
    %c0_293 = arith.constant 0 : index
    %278 = vector.load %arg32[%c0_292, %c0_293] : memref<32x128xf32, #tpu.memory_space<vmem>>, vector<2x64xf32>
    tpu.vector_store %arg32[%c0_292, %c0_293], %277 {strides = array<i32>} : memref<32x128xf32, #tpu.memory_space<vmem>>, vector<2x64xf32>,
    %c0_294 = arith.constant 0 : index
    %c0_295 = arith.constant 0 : index
    %279 = tpu.strided_load %arg32[%c0_294, %c0_295] {strides = array<i32: 2, 1>} : memref<32x128xf32, #tpu.memory_space<vmem>>, vector<1x64xf32>
    %c1_296 = arith.constant 1 : index
    %c0_297 = arith.constant 0 : index
    %280 = tpu.strided_load %arg32[%c1_296, %c0_297] {strides = array<i32: 2, 1>} : memref<32x128xf32, #tpu.memory_space<vmem>>, vector<1x64xf32>
    %281 = arith.maximumf %279, %280 : vector<1x64xf32>
    %c0_298 = arith.constant 0 : index
    %c0_299 = arith.constant 0 : index
    %282 = vector.load %arg17[%c0_298, %c0_299] : memref<1x64xf32, #tpu.memory_space<vmem>>, vector<1x64xf32>
    %283 = arith.addf %281, %282 : vector<1x64xf32>
    %cst_300 = arith.constant 0.000000e+00 : f32
    %284 = vector.broadcast %cst_300 : f32 to vector<1x64xf32>
    %285 = arith.maximumf %283, %284 : vector<1x64xf32>
    %286 = arith.truncf %285 : vector<1x64xf32> to vector<1x64xbf16>
    %c0_301 = arith.constant 0 : index
    %c0_302 = arith.constant 0 : index
    %287 = vector.load %arg18[%c0_301, %c0_302] : memref<64x128xbf16, #tpu.memory_space<vmem>>, vector<64x128xbf16>
    %cst_303 = arith.constant dense<0.000000e+00> : vector<1x128xf32>
    %288 = tpu.matmul %286, %287, %cst_303 {dimension_numbers = #tpu.dot_dimension_numbers<[1], [0], [0], [1], [0, 0, 1, 1], [], []>} : vector<1x64xbf16>, vector<64x128xbf16>, vector<1x128xf32> -> vector<1x128xf32>
    %c0_304 = arith.constant 0 : index
    %c0_305 = arith.constant 0 : index
    %289 = vector.load %arg19[%c0_304, %c0_305] : memref<1x128xf32, #tpu.memory_space<vmem>>, vector<1x128xf32>
    %290 = arith.addf %288, %289 : vector<1x128xf32>
    %cst_306 = arith.constant 0.000000e+00 : f32
    %291 = vector.broadcast %cst_306 : f32 to vector<1x128xf32>
    %292 = arith.maximumf %290, %291 : vector<1x128xf32>
    %293 = arith.truncf %292 : vector<1x128xf32> to vector<1x128xbf16>
    %c0_307 = arith.constant 0 : index
    %c0_308 = arith.constant 0 : index
    %294 = vector.load %arg20[%c0_307, %c0_308] : memref<128x128xbf16, #tpu.memory_space<vmem>>, vector<128x128xbf16>
    %cst_309 = arith.constant dense<0.000000e+00> : vector<1x128xf32>
    %295 = tpu.matmul %293, %294, %cst_309 {dimension_numbers = #tpu.dot_dimension_numbers<[1], [0], [0], [1], [0, 0, 1, 1], [], []>} : vector<1x128xbf16>, vector<128x128xbf16>, vector<1x128xf32> -> vector<1x128xf32>
    %c0_310 = arith.constant 0 : index
    %c0_311 = arith.constant 0 : index
    %296 = vector.load %arg21[%c0_310, %c0_311] : memref<1x128xf32, #tpu.memory_space<vmem>>, vector<1x128xf32>
    %297 = arith.addf %295, %296 : vector<1x128xf32>
    %cst_312 = arith.constant 0.000000e+00 : f32
    %298 = vector.broadcast %cst_312 : f32 to vector<1x128xf32>
    %299 = arith.maximumf %297, %298 : vector<1x128xf32>
    %300 = arith.truncf %299 : vector<1x128xf32> to vector<1x128xbf16>
    %c0_313 = arith.constant 0 : index
    %c0_314 = arith.constant 0 : index
    %301 = vector.load %arg22[%c0_313, %c0_314] : memref<128x32xbf16, #tpu.memory_space<vmem>>, vector<128x32xbf16>
    %cst_315 = arith.constant dense<0.000000e+00> : vector<1x32xf32>
    %302 = tpu.matmul %300, %301, %cst_315 {dimension_numbers = #tpu.dot_dimension_numbers<[1], [0], [0], [1], [0, 0, 1, 1], [], []>} : vector<1x128xbf16>, vector<128x32xbf16>, vector<1x32xf32> -> vector<1x32xf32>
    %c0_316 = arith.constant 0 : index
    %c0_317 = arith.constant 0 : index
    %303 = vector.load %arg23[%c0_316, %c0_317] : memref<1x32xf32, #tpu.memory_space<vmem>>, vector<1x32xf32>
    %304 = arith.addf %302, %303 : vector<1x32xf32>
    %305 = math.tanh %304 : vector<1x32xf32>
    %c0_318 = arith.constant 0 : index
    %c0_319 = arith.constant 0 : index
    %c0_320 = arith.constant 0 : index
    %306 = vector.load %arg24[%c0_318, %c0_319, %c0_320] : memref<1x1x32xf32, #tpu.memory_space<vmem>>, vector<1x1x32xf32>
    %307 = vector.shape_cast %306 : vector<1x1x32xf32> to vector<1x32xf32>
    %308 = vector.shape_cast %305 : vector<1x32xf32> to vector<1x1x32xf32>
    tpu.vector_store %arg24[%c0_318, %c0_319, %c0_320], %308 {strides = array<i32>} : memref<1x1x32xf32, #tpu.memory_space<vmem>>, vector<1x1x32xf32>,
    return
  }
  func.func @transform_0(%arg0: i32) -> (i32, i32, i32) {
    %c0_i32 = arith.constant 0 : i32
    %c0_i32_0 = arith.constant 0 : i32
    %c0_i32_1 = arith.constant 0 : i32
    return %arg0, %c0_i32, %c0_i32_0 : i32, i32, i32
  }
  func.func @transform_1(%arg0: i32) -> (i32, i32, i32) {
    %c0_i32 = arith.constant 0 : i32
    %c0_i32_0 = arith.constant 0 : i32
    %c0_i32_1 = arith.constant 0 : i32
    %c0_i32_2 = arith.constant 0 : i32
    return %c0_i32, %c0_i32_0, %c0_i32_1 : i32, i32, i32
  }
  func.func @transform_2(%arg0: i32) -> (i32, i32) {
    %c0_i32 = arith.constant 0 : i32
    %c0_i32_0 = arith.constant 0 : i32
    %c0_i32_1 = arith.constant 0 : i32
    return %c0_i32, %c0_i32_0 : i32, i32
  }
  func.func @transform_3(%arg0: i32) -> (i32, i32, i32) {
    %c0_i32 = arith.constant 0 : i32
    %c0_i32_0 = arith.constant 0 : i32
    %c0_i32_1 = arith.constant 0 : i32
    %c0_i32_2 = arith.constant 0 : i32
    return %c0_i32, %c0_i32_0, %c0_i32_1 : i32, i32, i32
  }
  func.func @transform_4(%arg0: i32) -> (i32, i32) {
    %c0_i32 = arith.constant 0 : i32
    %c0_i32_0 = arith.constant 0 : i32
    %c0_i32_1 = arith.constant 0 : i32
    return %c0_i32, %c0_i32_0 : i32, i32
  }
  func.func @transform_5(%arg0: i32) -> (i32, i32, i32) {
    %c0_i32 = arith.constant 0 : i32
    %c0_i32_0 = arith.constant 0 : i32
    %c0_i32_1 = arith.constant 0 : i32
    %c0_i32_2 = arith.constant 0 : i32
    return %c0_i32, %c0_i32_0, %c0_i32_1 : i32, i32, i32
  }
  func.func @transform_6(%arg0: i32) -> (i32, i32) {
    %c0_i32 = arith.constant 0 : i32
    %c0_i32_0 = arith.constant 0 : i32
    %c0_i32_1 = arith.constant 0 : i32
    return %c0_i32, %c0_i32_0 : i32, i32
  }
  func.func @transform_7(%arg0: i32) -> (i32, i32, i32) {
    %c0_i32 = arith.constant 0 : i32
    %c0_i32_0 = arith.constant 0 : i32
    %c0_i32_1 = arith.constant 0 : i32
    %c0_i32_2 = arith.constant 0 : i32
    return %c0_i32, %c0_i32_0, %c0_i32_1 : i32, i32, i32
  }
  func.func @transform_8(%arg0: i32) -> (i32, i32) {
    %c0_i32 = arith.constant 0 : i32
    %c0_i32_0 = arith.constant 0 : i32
    %c0_i32_1 = arith.constant 0 : i32
    return %c0_i32, %c0_i32_0 : i32, i32
  }
  func.func @transform_9(%arg0: i32) -> (i32, i32, i32) {
    %c0_i32 = arith.constant 0 : i32
    %c0_i32_0 = arith.constant 0 : i32
    %c0_i32_1 = arith.constant 0 : i32
    %c0_i32_2 = arith.constant 0 : i32
    return %c0_i32, %c0_i32_0, %c0_i32_1 : i32, i32, i32
  }
  func.func @transform_10(%arg0: i32) -> (i32, i32) {
    %c0_i32 = arith.constant 0 : i32
    %c0_i32_0 = arith.constant 0 : i32
    %c0_i32_1 = arith.constant 0 : i32
    return %c0_i32, %c0_i32_0 : i32, i32
  }
  func.func @transform_11(%arg0: i32) -> (i32, i32, i32) {
    %c0_i32 = arith.constant 0 : i32
    %c0_i32_0 = arith.constant 0 : i32
    %c0_i32_1 = arith.constant 0 : i32
    %c0_i32_2 = arith.constant 0 : i32
    return %c0_i32, %c0_i32_0, %c0_i32_1 : i32, i32, i32
  }
  func.func @transform_12(%arg0: i32) -> (i32, i32) {
    %c0_i32 = arith.constant 0 : i32
    %c0_i32_0 = arith.constant 0 : i32
    %c0_i32_1 = arith.constant 0 : i32
    return %c0_i32, %c0_i32_0 : i32, i32
  }
  func.func @transform_13(%arg0: i32) -> (i32, i32, i32) {
    %c0_i32 = arith.constant 0 : i32
    %c0_i32_0 = arith.constant 0 : i32
    %c0_i32_1 = arith.constant 0 : i32
    %c0_i32_2 = arith.constant 0 : i32
    return %c0_i32, %c0_i32_0, %c0_i32_1 : i32, i32, i32
  }
  func.func @transform_14(%arg0: i32) -> (i32, i32) {
    %c0_i32 = arith.constant 0 : i32
    %c0_i32_0 = arith.constant 0 : i32
    %c0_i32_1 = arith.constant 0 : i32
    return %c0_i32, %c0_i32_0 : i32, i32
  }
  func.func @transform_15(%arg0: i32) -> (i32, i32, i32) {
    %c0_i32 = arith.constant 0 : i32
    %c0_i32_0 = arith.constant 0 : i32
    %c0_i32_1 = arith.constant 0 : i32
    %c0_i32_2 = arith.constant 0 : i32
    return %c0_i32, %c0_i32_0, %c0_i32_1 : i32, i32, i32
  }
  func.func @transform_16(%arg0: i32) -> (i32, i32) {
    %c0_i32 = arith.constant 0 : i32
    %c0_i32_0 = arith.constant 0 : i32
    %c0_i32_1 = arith.constant 0 : i32
    return %c0_i32, %c0_i32_0 : i32, i32
  }
  func.func @transform_17(%arg0: i32) -> (i32, i32) {
    %c0_i32 = arith.constant 0 : i32
    %c0_i32_0 = arith.constant 0 : i32
    %c0_i32_1 = arith.constant 0 : i32
    return %c0_i32, %c0_i32_0 : i32, i32
  }
  func.func @transform_18(%arg0: i32) -> (i32, i32) {
    %c0_i32 = arith.constant 0 : i32
    %c0_i32_0 = arith.constant 0 : i32
    %c0_i32_1 = arith.constant 0 : i32
    return %c0_i32, %c0_i32_0 : i32, i32
  }
  func.func @transform_19(%arg0: i32) -> (i32, i32) {
    %c0_i32 = arith.constant 0 : i32
    %c0_i32_0 = arith.constant 0 : i32
    %c0_i32_1 = arith.constant 0 : i32
    return %c0_i32, %c0_i32_0 : i32, i32
  }
  func.func @transform_20(%arg0: i32) -> (i32, i32) {
    %c0_i32 = arith.constant 0 : i32
    %c0_i32_0 = arith.constant 0 : i32
    %c0_i32_1 = arith.constant 0 : i32
    return %c0_i32, %c0_i32_0 : i32, i32
  }
  func.func @transform_21(%arg0: i32) -> (i32, i32) {
    %c0_i32 = arith.constant 0 : i32
    %c0_i32_0 = arith.constant 0 : i32
    %c0_i32_1 = arith.constant 0 : i32
    return %c0_i32, %c0_i32_0 : i32, i32
  }
  func.func @transform_22(%arg0: i32) -> (i32, i32) {
    %c0_i32 = arith.constant 0 : i32
    %c0_i32_0 = arith.constant 0 : i32
    %c0_i32_1 = arith.constant 0 : i32
    return %c0_i32, %c0_i32_0 : i32, i32
  }
  func.func @transform_23(%arg0: i32) -> (i32, i32, i32) {
    %c0_i32 = arith.constant 0 : i32
    %c0_i32_0 = arith.constant 0 : i32
    %c0_i32_1 = arith.constant 0 : i32
    return %arg0, %c0_i32, %c0_i32_0 : i32, i32, i32
  }
}

</mosaic_0001>

<bundles_post_ra>
// kernel: tpu_custom_call.1
= control target key start
LH: loop header
LB: loop body
LE: loop exit
PB: predicated region body
PF: predicated region fallthrough
CT: control target
= control target key end

     0   :  { %s9716_s0 = inlined_call_operand.vmem [shape: f32[2,34,96], index: 0, kind: input, shape index: {}]   ;;  %s9717_s1 = inlined_call_operand.hbm [shape: bf16[6,96,128], index: 1, kind: input, shape index: {}]   ;;  %s9718_s2 = inlined_call_operand.vmem [shape: f32[1,128], index: 2, kind: input, shape index: {}]   ;;  %s9719_s3 = inlined_call_operand.vmem [shape: bf16[6,128,128], index: 3, kind: input, shape index: {}]   ;;  %s9720_s4 = inlined_call_operand.vmem [shape: f32[1,128], index: 4, kind: input, shape index: {}]   ;;  %s9721_s5 = inlined_call_operand.hbm [shape: bf16[3,128,256], index: 5, kind: input, shape index: {}]   ;;  %s9722_s6 = inlined_call_operand.vmem [shape: f32[1,256], index: 6, kind: input, shape index: {}]   ;;  %s9723_s7 = inlined_call_operand.hbm [shape: bf16[6,256,128], index: 7, kind: input, shape index: {}]   ;;  %s9724_s8 = inlined_call_operand.vmem [shape: f32[1,128], index: 8, kind: input, shape index: {}]   ;;  %s9725_s9 = inlined_call_operand.hbm [shape: bf16[3,128,256], index: 9, kind: input, shape index: {}]   ;;  %s9726_s10 = inlined_call_operand.vmem [shape: f32[1,256], index: 10, kind: input, shape index: {}]   ;;  %s9727_s11 = inlined_call_operand.hbm [shape: bf16[6,256,128], index: 11, kind: input, shape index: {}]   ;;  %s9728_s12 = inlined_call_operand.vmem [shape: f32[1,128], index: 12, kind: input, shape index: {}]   ;;  %s9729_s13 = inlined_call_operand.vmem [shape: bf16[3,128,128], index: 13, kind: input, shape index: {}]   ;;  %s9730_s14 = inlined_call_operand.hbm [shape: f32[1,128], index: 14, kind: input, shape index: {}]   ;;  %s9731_s15 = inlined_call_operand.vmem [shape: bf16[6,128,64], index: 15, kind: input, shape index: {}]   ;;  %s9732_s16 = inlined_call_operand.hbm [shape: f32[1,64], index: 16, kind: input, shape index: {}]   ;;  %s9733_s17 = inlined_call_operand.vmem [shape: bf16[64,128], index: 17, kind: input, shape index: {}]   ;;  %s9734_s18 = inlined_call_operand.hbm [shape: f32[1,128], index: 18, kind: input, shape index: {}]   ;;  %s9735_s19 = inlined_call_operand.hbm [shape: bf16[128,128], index: 19, kind: input, shape index: {}]   ;;  %s9736_s20 = inlined_call_operand.hbm [shape: f32[1,128], index: 20, kind: input, shape index: {}]   ;;  %s9737_s21 = inlined_call_operand.vmem [shape: bf16[128,32], index: 21, kind: input, shape index: {}]   ;;  %s9738_s22 = inlined_call_operand.hbm [shape: f32[1,32], index: 22, kind: input, shape index: {}]   ;;  %s9739_s23 = inlined_call_operand.hbm [shape: f32[2,1,32], index: 23, kind: output, shape index: {}]  }
   0x1   :  { %9752 = sst [smem:[#allocation44_spill]] %s9716_s0 }
   0x2   :  { %9753 = sst [smem:[#allocation45_spill]] %s9717_s1 }
   0x3   :  { %9754 = sst [smem:[#allocation46_spill]] %s9718_s2 }
   0x4   :  { %9755 = sst [smem:[#allocation47_spill]] %s9719_s3 }
   0x5   :  { %9756 = sst [smem:[#allocation48_spill]] %s9720_s4 }
   0x6   :  { %9757 = sst [smem:[#allocation49_spill]] %s9721_s5 }
   0x7   :  { %9758 = sst [smem:[#allocation50_spill]] %s9722_s6 }
   0x8   :  { %9759 = sst [smem:[#allocation51_spill]] %s9723_s7 }
   0x9   :  { %9760 = sst [smem:[#allocation52_spill]] %s9725_s9 }
   0xa   :  { %9761 = sst [smem:[#allocation53_spill]] %s9737_s21 }
   0xb   :  { %9762 = sst [smem:[#allocation54_spill]] %s9739_s23 }
   0xc   :  { %28 = vsyncpa [#allocation11], 0 }
   0xd   :  { %29 = vsyncpa [#allocation14], 0 }
   0xe   :  { %30 = vsyncpa [#allocation17], 0 }
   0xf   :  { %31 = vsyncpa [#allocation20], 0 }
  0x10   :  { %32 = vsyncpa [#allocation23], 0 }
  0x11   :  { %33 = vsyncpa [#allocation26], 0 }
  0x12   :  { %34 = vsyncpa [#allocation12], 0 }
  0x13   :  { %36 = vsyncpa [#allocation12 + $0x1], 0  ;;  %s9023_s4 = smov 0   ;;  %s9025_s30 = smov 0  }
  0x14   :  { %s9027_s24 = smov 0   ;;  %s9029_s25 = smov 0  }
  0x15 LB: > { %9763 = sst [smem:[#allocation36_spill]] %s8873_s4  ;;  %s9044_s5 = sadd.s32 4294967295, %s8885_s25   ;;  %s8885_s25 = sphi %s9029_s25, %s9793_s25   ;;  %s8881_s24 = sphi %s9027_s24, %s9796_s24   ;;  %s8877_s30 = sphi %s9025_s30, %s9795_s30   ;;  %s8873_s4 = sphi %s9023_s4, %s9794_s4  }
  0x16   : > { %9764 = sst [smem:[#allocation37_spill]] %s8877_s30  ;;  %s5752_s1 = sadd.s32 4294967294, %s8885_s25  }
  0x17   : > { %9765 = sst [smem:[#allocation38_spill]] %s8881_s24  ;;  %s9048_s26 = sadd.s32 1, %s8885_s25  }
  0x18   : > { %9766 = sst [smem:[#allocation39_spill]] %s8885_s25  ;;  %s537_s2 = sadd.s32 1, %s8881_s24 }
  0x19   : > { %9767 = sst [smem:[#allocation40_spill]] %s9048_s26  ;;  %s534_s6 = ssub.s32 %s8885_s25, %s9048_s26 }
  0x1a   : > { %p547_p0 = scmp.ne.s32.totalorder %s8881_s24, %s8877_s30  ;;  %p535_p1 = scmp.eq.s32.totalorder %s534_s6, 0 }
  0x1b   : > { %p548_p2 = scmp.eq.s32.totalorder %s9044_s5, 1  ;;  %p553_p3 = scmp.ne.s32.totalorder %s8877_s30, %s8873_s4 }
  0x1c   : > { %p554_p4 = scmp.eq.s32.totalorder %s5752_s1, 1  ;;  %p5753_p7 = scmp.ge.s32.totalorder %s8885_s25, 1 }
  0x1d   : > { %s9059_s27 = scalar_select %p535_p1, %s8881_s24, %s537_s2  }
  0x1e   : > { %p9061_p5 = por %p548_p2, %p547_p0  ;;  %p9065_p6 = por %p554_p4, %p553_p3 }
  0x1f   : > { %9768 = sst [smem:[#allocation41_spill]] %s9059_s27  ;;  %p561_p8 = scmp.lt.s32.totalorder %s8885_s25, 3 }
  0x20   : > { %s9769_s7 = scalar_select %p9061_p5, 1, 0 }
  0x21   : > { %s9771_s28 = scalar_select %p9065_p6, 1, 0 }
  0x22   : > { %9770 = sst [smem:[#allocation42_spill]] %s9769_s7  ;;  %p8391_p9 = scmp.eq.s32.totalorder %s9044_s5, 0 }
  0x23   : > { %9772 = sst [smem:[#allocation43_spill]] %s9771_s28  ;;  %p9072_p10 = pnand %p5753_p7, %p561_p8 }
  0x24   : > { %s9774_s1 = sld [smem:[#allocation49_spill]]  ;;  %s8887_s6 = smov [#allocation13]  }
  0x25   : > { %p8353_p11 = pneg %p9072_p10  ;;  %s597_s27 = sshll.u32 %s8887_s6, 4  ;;  %s598_s27 = int_to_ptr.vmem [resolvable:$true] %s597_s27 }
  0x26   : > { %s9776_s9 = sld [smem:[#allocation52_spill]]  ;;  %s8888_s3 = smov 128  }
  0x27   : > { %p9083_p12 = pnand %p8391_p9, %p8353_p11  ;;  %s8889_s0 = smov 8  }
  0x28   : > { %s667_s23 = sshll.u32 %s9730_s14, 4  ;;  %s8891_s30 = smov [#allocation19]   ;;  %s668_s23 = int_to_ptr.hbm [resolvable:$true] %s667_s23 }
  0x29   : > { %s669_s21 = sshll.u32 %s8891_s30, 4  ;;  %s8893_s30 = smov [#allocation25]   ;;  %s670_s21 = int_to_ptr.vmem [resolvable:$true] %s669_s21 }
  0x2a   : > { %s595_s2 = sshll.u32 %s9774_s1, 4  ;;  %s8890_s1 = smov [#allocation16]   ;;  %s596_s2 = int_to_ptr.hbm [resolvable:$true] %s595_s2 }
  0x2b   : > { %8359 = dma.hbm_to_vmem [thread:$0]  (!%p9083_p12), %s596_s2, 6144, %s598_s27, [#allocation14], %s8888_s3, %s8888_s3, %s8889_s0  }
  0x2c   : > { %s629_s4 = sshll.u32 %s9776_s9, 4  ;;  %s631_s6 = sshll.u32 %s8890_s1, 4  ;;  %s630_s4 = int_to_ptr.hbm [resolvable:$true] %s629_s4  ;;  %s632_s6 = int_to_ptr.vmem [resolvable:$true] %s631_s6 }
  0x2d   : > { %8365 = dma.hbm_to_vmem [thread:$0]  (!%p9083_p12), %s630_s4, 6144, %s632_s6, [#allocation17], %s8888_s3, %s8888_s3, %s8889_s0  }
  0x2e   : > { %s697_s9 = sshll.u32 %s9734_s18, 4  ;;  %s8892_s27 = smov [#allocation22]   ;;  %s698_s9 = int_to_ptr.hbm [resolvable:$true] %s697_s9 }
  0x2f   : > { %8371 = dma.hbm_to_vmem [thread:$0]  (!%p9083_p12), %s668_s23, 16, %s670_s21, [#allocation20]  }
  0x30   : > { %s699_s2 = sshll.u32 %s8892_s27, 4  ;;  %s723_s1 = sshll.u32 %s9736_s20, 4  ;;  %s700_s2 = int_to_ptr.vmem [resolvable:$true] %s699_s2  ;;  %s724_s1 = int_to_ptr.hbm [resolvable:$true] %s723_s1 }
  0x31   : > { %8377 = dma.hbm_to_vmem [thread:$0]  (!%p9083_p12), %s698_s9, 16, %s700_s2, [#allocation23]  }
  0x32   : > { %s9777_s0 = sld [smem:[#allocation45_spill]]  ;;  %s725_s26 = sshll.u32 %s8893_s30, 4  ;;  %s726_s26 = int_to_ptr.vmem [resolvable:$true] %s725_s26 }
  0x33   : > { %8383 = dma.hbm_to_vmem [thread:$0]  (!%p9083_p12), %s724_s1, 16, %s726_s26, [#allocation26]  }
  0x34   : > { %s8894_s21 = smov [#allocation10]   ;;  %s8895_s28 = smov 64  }
  0x35   : > { %s574_s23 = sshll.u32 %s8894_s21, 4  ;;  %s8896_s27 = smov 4   ;;  %s575_s23 = int_to_ptr.vmem [resolvable:$true] %s574_s23 }
  0x36   : > { %s9778_s25 = sld [smem:[#allocation51_spill]]  ;;  %s8897_s4 = smov [#allocation15]  }
  0x37   : > { %s614_s3 = sshll.u32 %s8897_s4, 4  ;;  %s646_s30 = sshll.u32 %s9727_s11, 4  ;;  %s615_s3 = int_to_ptr.vmem [resolvable:$true] %s614_s3  ;;  %s647_s30 = int_to_ptr.hbm [resolvable:$true] %s646_s30 }
  0x38   : > { %s572_s6 = sshll.u32 %s9777_s0, 4  ;;  %s682_s9 = sshll.u32 %s9732_s16, 4  ;;  %s573_s6 = int_to_ptr.hbm [resolvable:$true] %s572_s6  ;;  %s683_s9 = int_to_ptr.hbm [resolvable:$true] %s682_s9 }
  0x39   : > { %8356 = dma.hbm_to_vmem [thread:$0]  (!%p9083_p12), %s573_s6, 4608, %s575_s23, [#allocation11], %s8895_s28, %s8895_s28, %s8896_s27  }
  0x3a   : > { %s8898_s6 = smov [#allocation18]   ;;  %s8899_s4 = smov [#allocation21]  }
  0x3b   : > { %s648_s26 = sshll.u32 %s8898_s6, 4  ;;  %s8900_s1 = smov [#allocation24]   ;;  %s649_s26 = int_to_ptr.vmem [resolvable:$true] %s648_s26 }
  0x3c   : > { %s612_s7 = sshll.u32 %s9778_s25, 4  ;;  %s710_s0 = sshll.u32 %s8900_s1, 4  ;;  %s613_s7 = int_to_ptr.hbm [resolvable:$true] %s612_s7  ;;  %s711_s0 = int_to_ptr.vmem [resolvable:$true] %s710_s0 }
  0x3d   : > { %8362 = dma.hbm_to_vmem [thread:$0]  (!%p9083_p12), %s613_s7, 12288, %s615_s3, [#allocation14], %s8895_s28, %s8895_s28, %s8896_s27  }
  0x3e   : > { %8368 = dma.hbm_to_vmem [thread:$0]  (!%p9083_p12), %s647_s30, 12288, %s649_s26, [#allocation17], %s8895_s28, %s8895_s28, %s8896_s27  }
  0x3f   : > { %s708_s7 = sshll.u32 %s9735_s19, 4  ;;  %s684_s3 = sshll.u32 %s8899_s4, 4  ;;  %s709_s7 = int_to_ptr.hbm [resolvable:$true] %s708_s7  ;;  %s685_s3 = int_to_ptr.vmem [resolvable:$true] %s684_s3 }
  0x40   : > { %8374 = dma.hbm_to_vmem [thread:$0]  (!%p9083_p12), %s683_s9, 16, %s685_s3, [#allocation20]  }
  0x41   : > { %s738_s23 = sshll.u32 %s9738_s22, 4  ;;  %s8901_s30 = smov [#allocation27]   ;;  %s739_s23 = int_to_ptr.hbm [resolvable:$true] %s738_s23 }
  0x42   : > { %8380 = dma.hbm_to_vmem [thread:$0]  (!%p9083_p12), %s709_s7, 1024, %s711_s0, [#allocation23], %s8895_s28, %s8895_s28, %s8896_s27  }
  0x43   : > { %s740_s26 = sshll.u32 %s8901_s30, 4  ;;  %761 = sbr.rel (%p9072_p10) target bundleno = 1949 (0x79d), region = 112  ;;  %s741_s26 = int_to_ptr.vmem [resolvable:$true] %s740_s26 }
  0x44   : > { %8386 = dma.hbm_to_vmem [thread:$0]  (!%p9083_p12), %s739_s23, 16, %s741_s26, [#allocation26]  }
  0x48   : > { %8844 = dma.done.wait (%p8391_p9), [#allocation11], 4608  }
  0x49   : > { %8846 = vsyncadd (%p8391_p9), [#allocation11], 4294962688 }
  0x4a   : > { %8848 = dma.done.wait (%p8391_p9), [#allocation14], 18432  }
  0x4b   : > { %8850 = vsyncadd (%p8391_p9), [#allocation14], 4294948864 }
  0x4c   : > { %8852 = dma.done.wait (%p8391_p9), [#allocation17], 18432  }
  0x4d   : > { %8854 = vsyncadd (%p8391_p9), [#allocation17], 4294948864 }
  0x4e   : > { %8856 = dma.done.wait (%p8391_p9), [#allocation20], 32  }
  0x4f   : > { %8858 = vsyncadd (%p8391_p9), [#allocation20], 4294967264 }
  0x50   : > { %8860 = dma.done.wait (%p8391_p9), [#allocation23], 1040  }
  0x51   : > { %8862 = vsyncadd (%p8391_p9), [#allocation23], 4294966256 }
  0x52   : > { %8864 = dma.done.wait (%p8391_p9), [#allocation26], 32  }
  0x53   : > { %8866 = vsyncadd (%p8391_p9), [#allocation26], 4294967264  ;;  %v7859_v0 = vld [vmem:[#allocation10 + $0x58] sm:$0xff]  ;;  %v7847_v1 = vld [vmem:[#allocation10 + $0x28] sm:$0xff]  ;;  %p875_p13 = scmp.lt.s32.totalorder %s9044_s5, 1  ;;  %s9779_s9 = sld [smem:[#allocation44_spill]] }
  0x54   : > { %976 = vmatpush.bf16.msra.mxu0 %v7859_v0  ;;  %1037 = vmatpush.bf16.msra.mxu1 %v7847_v1  ;;  %v7858_v2 = vld [vmem:[#allocation10 + $0x50] sm:$0xff]  ;;  %v7846_v3 = vld [vmem:[#allocation10 + $0x20] sm:$0xff]  ;;  %v7865_v4 = vld [vmem:[#allocation10 + $0xe8] sm:$0xff]  ;;  %vm967_vm0 = vcmask 785408   ;;  %s9780_s4 = sld [smem:[#allocation47_spill]]  ;;  %vm5355_vm2 = vcmask 517120  }
  0x55   : > { %v7853_v5 = vld [vmem:[#allocation10 + $0xb8] sm:$0xff]  ;;  %1105 = vmatpush.bf16.msra.mxu2 %v7865_v4  ;;  %v7864_v6 = vld [vmem:[#allocation10 + $0xe0] sm:$0xff]  ;;  %v7852_v7 = vld [vmem:[#allocation10 + $0xb0] sm:$0xff]  ;;  %s876_s24 = scalar_select %p875_p13, %s9044_s5, 1  ;;  %vm5397_vm3 = vcmask 523264   ;;  %vm5575_vm4 = vcmask 253952  }
  0x56   : > { %1160 = vmatpush.bf16.msra.mxu3 %v7853_v5  ;;  %v7857_v8 = vld [vmem:[#allocation10 + $0x48] sm:$0xff]  ;;  %v7845_v9 = vld [vmem:[#allocation10 + $0x18] sm:$0xff]  ;;  %v7856_v12 = vld [vmem:[#allocation10 + $0x40] sm:$0xff]  ;;  %s9782_s23 = sld [smem:[#allocation46_spill]] }
  0x57   : > { %v7863_v10 = vld [vmem:[#allocation10 + $0xd8] sm:$0xff]  ;;  %v7851_v11 = vld [vmem:[#allocation10 + $0xa8] sm:$0xff]  ;;  %v7844_v13 = vld [vmem:[#allocation10 + $0x10] sm:$0xff]  ;;  %s8306_s29 = smul.u32 40, %s876_s24  ;;  %s9783_s21 = sld [smem:[#allocation48_spill]] }
  0x58   : > { %977 = vmatpush.bf16.msra.mxu0 %v7858_v2  ;;  %1038 = vmatpush.bf16.msra.mxu1 %v7846_v3  ;;  %v7862_v14 = vld [vmem:[#allocation10 + $0xd0] sm:$0xff]  ;;  %v7850_v15 = vld [vmem:[#allocation10 + $0xa0] sm:$0xff]  ;;  %v7855_v16 = vld [vmem:[#allocation10 + $0x38] sm:$0xff]  ;;  %s9784_s26 = sld [smem:[#allocation50_spill]] }
  0x59   : > { %1106 = vmatpush.bf16.msra.mxu2 %v7864_v6  ;;  %v7843_v17 = vld [vmem:[#allocation10 + $0x8] sm:$0xff]  ;;  %s9182_s2 = scalar_lea.vmem %s9779_s9, %s8306_s29  ;;  %v7854_v18 = vld [vmem:[#allocation10 + $0x30] sm:$0xff]  ;;  %v7842_v19 = vld [vmem:[#allocation10] sm:$0xff]  ;;  %s9785_s24 = sld [smem:[#allocation53_spill]] }
  0x5a   : > { %1161 = vmatpush.bf16.msra.mxu3 %v7852_v7  ;;  %v912_v20 = vld [vmem:[%s9182_s2 + $0x1] sm:$0xff]  ;;  %v7861_v21 = vld [vmem:[#allocation10 + $0xc8] sm:$0xff]  ;;  %v7848_v31 = vld [vmem:[#allocation10 + $0x90] sm:$0xff]  ;;  %s9781_s3 = smov %s9780_s4 }
  0x5b   : > { %v7849_v22 = vld [vmem:[#allocation10 + $0x98] sm:$0xff]  ;;  %v913_v23 = vld [vmem:[%s9182_s2 + $0x9] sm:$0xff]  ;;  %v7876_v33 = vld [vmem:[#allocation10 + $0x110] sm:$0xff] }
  0x5c   : > { %978 = vmatpush.bf16.msra.mxu0 %v7857_v8  ;;  %1039 = vmatpush.bf16.msra.mxu1 %v7845_v9  ;;  %v881_v24 = vld [vmem:[%s9182_s2] sm:$0xff]  ;;  %v882_v25 = vld [vmem:[%s9182_s2 + $0x8] sm:$0xff]  ;;  %v7871_v26 = vld [vmem:[#allocation10 + $0x88] sm:$0xff]  ;;  %v916_v28 = vpack.c.bf16 %v913_v23, %v912_v20  ;;  %v8902_v20 = vmov 0.0  }
  0x5d   : > { %1107 = vmatpush.bf16.msra.mxu2 %v7863_v10  ;;  %v7877_v27 = vld [vmem:[#allocation10 + $0x118] sm:$0xff]  ;;  %v885_v29 = vpack.c.bf16 %v882_v25, %v881_v24  ;;  %v7860_v30 = vld [vmem:[#allocation10 + $0xc0] sm:$0xff]  ;;  %v7875_v35 = vld [vmem:[#allocation10 + $0x108] sm:$0xff]  ;;  %1358 = vst [vmem:[#allocation2] sm:$0x1] %v8902_v20 }
  0x5e   : > { %1162 = vmatpush.bf16.msra.mxu3 %v7851_v11  ;;  %v7870_v32 = vld [vmem:[#allocation10 + $0x80] sm:$0xff]  ;;  %v7869_v34 = vld [vmem:[#allocation10 + $0x78] sm:$0xff]  ;;  %v7868_v36 = vld [vmem:[#allocation10 + $0x70] sm:$0xff]  ;;  %1359 = vst [vmem:[#allocation2 + $0x11] sm:$0x1] %v8902_v20 }
  0x5f   : > { %v7874_v37 = vld [vmem:[#allocation10 + $0x100] sm:$0xff]  ;;  %v914_v38 = vld [vmem:[%s9182_s2 + $0x11] sm:$0xff]  ;;  %v915_v39 = vld [vmem:[%s9182_s2 + $0x19] sm:$0xff]  ;;  %1861 = vst [vmem:[#allocation3] sm:$0x1] %v8902_v20  ;;  %s9786_s29 = smov %s9785_s24 }
  0x60   : > { %979 = vmatpush.bf16.msra.mxu0 %v7856_v12  ;;  %1040 = vmatpush.bf16.msra.mxu1 %v7844_v13  ;;  %v883_v40 = vld [vmem:[%s9182_s2 + $0x10] sm:$0xff]  ;;  %v884_v41 = vld [vmem:[%s9182_s2 + $0x18] sm:$0xff]  ;;  %v7873_v43 = vld [vmem:[#allocation10 + $0xf8] sm:$0xff]  ;;  %v917_v44 = vpack.c.bf16 %v915_v39, %v914_v38  ;;  %1862 = vst [vmem:[#allocation3 + $0x9] sm:$0x1] %v8902_v20 }
  0x61   : > { %1108 = vmatpush.bf16.msra.mxu2 %v7862_v14  ;;  %v7867_v42 = vld [vmem:[#allocation10 + $0x68] sm:$0xff]  ;;  %v886_v45 = vpack.c.bf16 %v884_v41, %v883_v40  ;;  %v7866_v46 = vld [vmem:[#allocation10 + $0x60] sm:$0xff]  ;;  %v7872_v47 = vld [vmem:[#allocation10 + $0xf0] sm:$0xff]  ;;  %3249 = vst [vmem:[#allocation5] sm:$0x1] %v8902_v20 }
  0x62   : > { %1163 = vmatpush.bf16.msra.mxu3 %v7850_v15  ;;  %v1177_v48 = vld [vmem:[%s9182_s2 + $0x2] sm:$0xff]  ;;  %v1178_v49 = vld [vmem:[%s9182_s2 + $0xa] sm:$0xff]  ;;  %v1179_v51 = vld [vmem:[%s9182_s2 + $0x12] sm:$0xff]  ;;  %3250 = vst [vmem:[#allocation5 + $0x5] sm:$0x1] %v8902_v20 }
  0x63   : > { %v1181_v50 = vpack.c.bf16 %v1178_v49, %v1177_v48  ;;  %v1180_v52 = vld [vmem:[%s9182_s2 + $0x1a] sm:$0xff]  ;;  %v7900_v57 = vld [vmem:[%s9781_s3 + $0x70] sm:$0xff]  ;;  %v7899_v59 = vld [vmem:[%s9781_s3 + $0x68] sm:$0xff]  ;;  %4627 = vst [vmem:[#allocation7] sm:$0x1] %v8902_v20  ;;  %s9788_s2 = sld [smem:[#allocation54_spill]] }
  0x64   : > { %980 = vmatpush.bf16.msra.mxu0 %v7855_v16  ;;  %1041 = vmatpush.bf16.msra.mxu1 %v7843_v17  ;;  %v1182_v53 = vpack.c.bf16 %v1180_v52, %v1179_v51  ;;  %v7901_v54 = vld [vmem:[%s9780_s4 + $0x78] sm:$0xff]  ;;  %v7884_v62 = vld [vmem:[%s9781_s3 + $0x30] sm:$0xff]  ;;  %v7898_v63 = vld [vmem:[%s9781_s3 + $0x60] sm:$0xff]  ;;  %4628 = vst [vmem:[#allocation7 + $0x3] sm:$0x1] %v8902_v20 }
  0x65   : > { %1109 = vmatpush.bf16.msra.mxu2 %v7861_v21  ;;  %v7885_v58 = vld [vmem:[%s9781_s3 + $0x38] sm:$0xff]  ;;  %v7883_v1 = vld [vmem:[%s9781_s3 + $0x28] sm:$0xff]  ;;  %v7908_v5 = vld [vmem:[%s9781_s3 + $0x130] sm:$0xff]  ;;  %4876 = vst [vmem:[#allocation8] sm:$0x1] %v8902_v20 }
  0x66   : > { %1164 = vmatpush.bf16.msra.mxu3 %v7849_v22  ;;  %v7909_v0 = vld [vmem:[%s9781_s3 + $0x138] sm:$0xff]  ;;  %v7882_v6 = vld [vmem:[%s9781_s3 + $0x20] sm:$0xff]  ;;  %v7896_v7 = vld [vmem:[%s9781_s3 + $0x50] sm:$0xff]  ;;  %4877 = vst [vmem:[#allocation8 + $0x3] sm:$0x1] %v8902_v20 }
  0x67   : > { %v7897_v2 = vld [vmem:[%s9781_s3 + $0x58] sm:$0xff]  ;;  %v7907_v9 = vld [vmem:[%s9781_s3 + $0x128] sm:$0xff]  ;;  %v7892_v16 = vld [vmem:[%s9781_s3 + $0xf0] sm:$0xff] }
  0x68   : > { %981 = vmatpush.bf16.msra.mxu0 %v7854_v18  ;;  %1042 = vmatpush.bf16.msra.mxu1 %v7842_v19  ;;  %v7893_v8 = vld [vmem:[%s9781_s3 + $0xf8] sm:$0xff]  ;;  %v7895_v13 = vld [vmem:[%s9781_s3 + $0x48] sm:$0xff]  ;;  %v7906_v17 = vld [vmem:[%s9781_s3 + $0x120] sm:$0xff] }
  0x69   : > { %1110 = vmatpush.bf16.msra.mxu2 %v7860_v30  ;;  %v7881_v12 = vld [vmem:[%s9781_s3 + $0x18] sm:$0xff]  ;;  %v7880_v18 = vld [vmem:[%s9781_s3 + $0x10] sm:$0xff]  ;;  %v7894_v19 = vld [vmem:[%s9781_s3 + $0x40] sm:$0xff]  ;;  %s5586_s25 = scalar_lea.hbm %s9788_s2, %s9044_s5 }
  0x6a   : > { %1165 = vmatpush.bf16.msra.mxu3 %v7848_v31  ;;  %v7891_v21 = vld [vmem:[%s9781_s3 + $0xe8] sm:$0xff]  ;;  %v7905_v22 = vld [vmem:[%s9781_s3 + $0x118] sm:$0xff]  ;;  %v7890_v31 = vld [vmem:[%s9781_s3 + $0xe0] sm:$0xff]  ;;  %s5590_s0 = sshll.u32 %s5586_s25, 4  ;;  %s5591_s0 = int_to_ptr.hbm [resolvable:$true] %s5590_s0 }
  0x6b   : > { %5803 = vmatmul.msk.bf16.vlgmr.msra.gmra.mxu0 %vm967_vm0, %v916_v28  ;;  %5829 = vmatmul.msk.bf16.vlgmr.msra.gmra.mxu1 %vm967_vm0, %v885_v29  ;;  %v7917_v23 = vld [vmem:[%s9781_s3 + $0xb8] sm:$0xff]  ;;  %v7903_v40 = vld [vmem:[%s9781_s3 + $0x108] sm:$0xff]  ;;  %v7888_v41 = vld [vmem:[%s9781_s3 + $0xd0] sm:$0xff] }
  0x6c   : > { %1240 = vmatpush.bf16.msrb.mxu0 %v7871_v26  ;;  %1312 = vmatpush.bf16.msrb.mxu1 %v7877_v27  ;;  %v7889_v38 = vld [vmem:[%s9781_s3 + $0xd8] sm:$0xff]  ;;  %v7914_v49 = vld [vmem:[%s9781_s3 + $0xa0] sm:$0xff] }
  0x6d   : > { %5855 = vmatmul.msk.bf16.vlgmr.msra.gmra.mxu2 %vm967_vm0, %v916_v28  ;;  %5881 = vmatmul.msk.bf16.vlgmr.msra.gmra.mxu3 %vm967_vm0, %v885_v29  ;;  %v7879_v28 = vld [vmem:[%s9781_s3 + $0x8] sm:$0xff]  ;;  %v7925_v39 = vld [vmem:[%s9781_s3 + $0x178] sm:$0xff] }
  0x6e   : > { %1466 = vmatpush.bf16.msrb.mxu2 %v7901_v54  ;;  %1528 = vmatpush.bf16.msrb.mxu3 %v7885_v58  ;;  %v7887_v54 = vld [vmem:[%s9781_s3 + $0xc8] sm:$0xff] }
  0x70   : > { %1241 = vmatpush.bf16.msrb.mxu0 %v7870_v32  ;;  %1313 = vmatpush.bf16.msrb.mxu1 %v7876_v33  ;;  %v7904_v32 = vld [vmem:[%s9781_s3 + $0x110] sm:$0xff] }
  0x71   : > { %v7916_v33 = vld [vmem:[%s9781_s3 + $0xb0] sm:$0xff] }
  0x72   : > { %1467 = vmatpush.bf16.msrb.mxu2 %v7900_v57  ;;  %1529 = vmatpush.bf16.msrb.mxu3 %v7884_v62  ;;  %v7913_v57 = vld [vmem:[%s9781_s3 + $0x98] sm:$0xff] }
  0x74   : > { %1242 = vmatpush.bf16.msrb.mxu0 %v7869_v34  ;;  %1314 = vmatpush.bf16.msrb.mxu1 %v7875_v35 }
  0x76   : > { %1468 = vmatpush.bf16.msrb.mxu2 %v7899_v59  ;;  %1530 = vmatpush.bf16.msrb.mxu3 %v7883_v1  ;;  %v7886_v59 = vld [vmem:[%s9781_s3 + $0xc0] sm:$0xff] }
  0x78   : > { %1243 = vmatpush.bf16.msrb.mxu0 %v7868_v36  ;;  %1315 = vmatpush.bf16.msrb.mxu1 %v7874_v37  ;;  %v7878_v37 = vld [vmem:[%s9781_s3] sm:$0xff] }
  0x7a   : > { %1469 = vmatpush.bf16.msrb.mxu2 %v7898_v63  ;;  %1531 = vmatpush.bf16.msrb.mxu3 %v7882_v6  ;;  %v8462_v6 = vld [vmem:[%s9782_s23] ss:$0 sm:$0xff]  ;;  %s8813_s23 = sshra.s32 %s5591_s0, 4  ;;  %s8814_s23 = int_to_ptr.hbm [resolvable:$true] %s8813_s23 }
  0x7b   : > { %5804 = vmatmul.msk.bf16.gmra.mxu0 %vm967_vm0, %v917_v44  ;;  %5830 = vmatmul.msk.bf16.gmra.mxu1 %vm967_vm0, %v886_v45  ;;  %p8820_p3 = scmp.lt.s32.totalorder %s8814_s23, %s9788_s2 }
  0x7c   : > { %1244 = vmatpush.bf16.msrb.mxu0 %v7867_v42  ;;  %1316 = vmatpush.bf16.msrb.mxu1 %v7873_v43  ;;  %v7924_v42 = vld [vmem:[%s9781_s3 + $0x170] sm:$0xff]  ;;  %v7915_v43 = vld [vmem:[%s9781_s3 + $0xa8] sm:$0xff] }
  0x7d   : > { %5856 = vmatmul.msk.bf16.gmra.mxu2 %vm967_vm0, %v917_v44  ;;  %5882 = vmatmul.msk.bf16.gmra.mxu3 %vm967_vm0, %v886_v45 }
  0x7e   : > { %1470 = vmatpush.bf16.msrb.mxu2 %v7897_v2  ;;  %1532 = vmatpush.bf16.msrb.mxu3 %v7881_v12  ;;  %v7920_v12 = vld [vmem:[%s9781_s3 + $0x150] sm:$0xff] }
  0x80   : > { %1245 = vmatpush.bf16.msrb.mxu0 %v7866_v46  ;;  %1317 = vmatpush.bf16.msrb.mxu1 %v7872_v47  ;;  %v7902_v46 = vld [vmem:[%s9781_s3 + $0x100] sm:$0xff] }
  0x82   : > { %1471 = vmatpush.bf16.msrb.mxu2 %v7896_v7  ;;  %1533 = vmatpush.bf16.msrb.mxu3 %v7880_v18 }
  0x84   : > { %1607 = vmatpush.bf16.msra.mxu0 %v7909_v0  ;;  %1669 = vmatpush.bf16.msra.mxu1 %v7893_v8  ;;  %v7912_v0 = vld [vmem:[%s9781_s3 + $0x90] sm:$0xff] }
  0x86   : > { %1472 = vmatpush.bf16.msrb.mxu2 %v7895_v13  ;;  %1534 = vmatpush.bf16.msrb.mxu3 %v7879_v28 }
  0x88   : > { %1608 = vmatpush.bf16.msra.mxu0 %v7908_v5  ;;  %1670 = vmatpush.bf16.msra.mxu1 %v7892_v16 }
  0x8a   : > { %1473 = vmatpush.bf16.msrb.mxu2 %v7894_v19  ;;  %1535 = vmatpush.bf16.msrb.mxu3 %v7878_v37 }
  0x8b   : > { %5907 = vmatmul.msk.bf16.vlgmr.msrb.gmra.mxu0 %vm967_vm0, %v1181_v50  ;;  %5933 = vmatmul.msk.bf16.vlgmr.msrb.gmra.mxu1 %vm967_vm0, %v1181_v50 }
  0x8c   : > { %1609 = vmatpush.bf16.msra.mxu0 %v7907_v9  ;;  %1671 = vmatpush.bf16.msra.mxu1 %v7891_v21  ;;  %v7910_v21 = vld [vmem:[%s9781_s3 + $0x80] sm:$0xff] }
  0x8e   : > { %1751 = vmatpush.bf16.msra.mxu2 %v7917_v23  ;;  %1832 = vmatpush.bf16.msra.mxu3 %v7925_v39  ;;  %v7957_v39 = vld [vmem:[#allocation13 + $0xf4] sm:$0xf0] }
  0x90   : > { %1610 = vmatpush.bf16.msra.mxu0 %v7906_v17  ;;  %1672 = vmatpush.bf16.msra.mxu1 %v7890_v31 }
  0x92   : > { %1752 = vmatpush.bf16.msra.mxu2 %v7916_v33  ;;  %1833 = vmatpush.bf16.msra.mxu3 %v7924_v42  ;;  %v6267_v42 = vld [vmem:[#allocation13 + $0xf8] sm:$0xf0] }
  0x94   : > { %1611 = vmatpush.bf16.msra.mxu0 %v7905_v22  ;;  %1673 = vmatpush.bf16.msra.mxu1 %v7889_v38  ;;  %v6265_v38 = vld [vmem:[#allocation13 + $0xf0] sm:$0xf] }
  0x96   : > { %1753 = vmatpush.bf16.msra.mxu2 %v7915_v43 }
  0x98   : > { %1612 = vmatpush.bf16.msra.mxu0 %v7904_v32  ;;  %1674 = vmatpush.bf16.msra.mxu1 %v7888_v41  ;;  %v6266_v41 = vor.u32 %v7957_v39, %v6265_v38  ;;  %v6315_v38 = vld [vmem:[#allocation13 + $0x58] sm:$0xf0]  ;;  %v6211_v39 = vld [vmem:[#allocation13 + $0x88] sm:$0xf0] }
  0x9a   : > { %1754 = vmatpush.bf16.msra.mxu2 %v7914_v49 }
  0x9b   : > { %5908 = vmatmul.msk.bf16.gmra.mxu0 %vm967_vm0, %v1182_v53  ;;  %5934 = vmatmul.msk.bf16.gmra.mxu1 %vm967_vm0, %v1182_v53 }
  0x9c   : > { %1613 = vmatpush.bf16.msra.mxu0 %v7903_v40  ;;  %1675 = vmatpush.bf16.msra.mxu1 %v7887_v54  ;;  %v7956_v40 = vld [vmem:[#allocation13 + $0xf4] sm:$0xf]  ;;  %v6251_v54 = vld [vmem:[#allocation13 + $0xd8] sm:$0xf0] }
  0x9d   : > { %v6270_v43 = vor.u32 %v7956_v40, %v6267_v42  ;;  %v6393_v40 = vld [vmem:[#allocation13 + $0x170] sm:$0xf]  ;;  %v6305_v42 = vld [vmem:[#allocation13 + $0x40] sm:$0xf] }
  0x9e   : > { %1755 = vmatpush.bf16.msra.mxu2 %v7913_v57  ;;  %v7951_v57 = vld [vmem:[#allocation13 + $0xc4] sm:$0xf0] }
  0xa0   : > { %1614 = vmatpush.bf16.msra.mxu0 %v7902_v46  ;;  %1676 = vmatpush.bf16.msra.mxu1 %v7886_v59  ;;  %v7954_v46 = vld [vmem:[#allocation13 + $0xe4] sm:$0xf] }
  0xa2   : > { %1756 = vmatpush.bf16.msra.mxu2 %v7912_v0  ;;  %v7948_v0 = vld [vmem:[#allocation13 + $0xb4] sm:$0xf] }
  0xa4   : > { %1981 = vmatpush.bf16.msrb.mxu0 %v6266_v41  ;;  %1994 = vmatpush.bf16.msrb.mxu1 %v6270_v43  ;;  %v7935_v43 = vld [vmem:[#allocation13 + $0x44] sm:$0xf0] }
  0xe8   : > { %v983_v55 = vpop.f32.mrf.mxu0  ;;  %v1044_v56 = vpop.f32.mrf.mxu1 }
  0xe9   : > { %v1045_v25 = vadd.f32 %v1044_v56, %v983_v55  ;;  %v7923_v55 = vld [vmem:[%s9781_s3 + $0x168] sm:$0xff] }
  0xea   : > { %1834 = vmatpush.bf16.msra.mxu3 %v7923_v55 }
  0xf0   : > { %v9220_v60 = vpop.f32.mrf.mxu0  ;;  %v9222_v61 = vpop.f32.mrf.mxu1 }
  0xf1   : > { %v1112_v10 = vpop.f32.mrf.mxu2  ;;  %v1167_v11 = vpop.f32.mrf.mxu3  ;;  %v1047_v44 = vadd.f32 %v9222_v61, %v9220_v60  ;;  %v7922_v60 = vld [vmem:[%s9781_s3 + $0x160] sm:$0xff] }
  0xf2   : > { %v1168_v24 = vadd.f32 %v1167_v11, %v1112_v10  ;;  %1835 = vmatpush.bf16.msra.mxu3 %v7922_v60  ;;  %v7911_v11 = vld [vmem:[%s9781_s3 + $0x88] sm:$0xff]  ;;  %v6243_v60 = vld [vmem:[#allocation13 + $0xc8] sm:$0xf0] }
  0xf3   : > { %1757 = vmatpush.bf16.msra.mxu2 %v7911_v11 }
  0xf7   : > { %1758 = vmatpush.bf16.msra.mxu2 %v7910_v21  ;;  %v7944_v21 = vld [vmem:[#allocation13 + $0x94] sm:$0xf] }
  0xf8   : > { %v9239_v3 = vpop.f32.mrf.mxu0  ;;  %v9241_v4 = vpop.f32.mrf.mxu1 }
  0xf9   : > { %v1114_v26 = vpop.f32.mrf.mxu2  ;;  %v1169_v27 = vpop.f32.mrf.mxu3  ;;  %v1050_v61 = vadd.f32 %v9241_v4, %v9239_v3  ;;  %v7921_v4 = vld [vmem:[%s9781_s3 + $0x158] sm:$0xff] }
  0xfa   : > { %v1170_v45 = vadd.f32 %v1169_v27, %v1114_v26  ;;  %1836 = vmatpush.bf16.msra.mxu3 %v7921_v4  ;;  %v7940_v4 = vld [vmem:[#allocation13 + $0x74] sm:$0xf] }
  0xfe   : > { %1837 = vmatpush.bf16.msra.mxu3 %v7920_v12  ;;  %v6331_v12 = vld [vmem:[#allocation13 + $0x78] sm:$0xf0] }
 0x100   : > { %v9264_v14 = vpop.f32.mrf.mxu0  ;;  %v9266_v15 = vpop.f32.mrf.mxu1 }
 0x101   : > { %v1117_v52 = vpop.f32.mrf.mxu2  ;;  %v1172_v53 = vpop.f32.mrf.mxu3  ;;  %v1052_v13 = vadd.f32 %v9266_v15, %v9264_v14  ;;  %v7918_v14 = vld [vmem:[%s9781_s3 + $0x140] sm:$0xff] }
 0x102   : > { %v1173_v58 = vadd.f32 %v1172_v53, %v1117_v52  ;;  %v7952_v52 = vld [vmem:[#allocation13 + $0xd4] sm:$0xf] }
 0x103   : > { %v6254_v55 = vor.u32 %v7952_v52, %v6251_v54  ;;  %v7973_v52 = vld [vmem:[#allocation13 + $0x174] sm:$0xf0]  ;;  %v6299_v54 = vld [vmem:[#allocation13 + $0x38] sm:$0xf0] }
 0x108   : > { %v1247_v29 = vpop.f32.mrf.mxu0  ;;  %v1319_v30 = vpop.f32.mrf.mxu1 }
 0x109   : > { %v1257_v34 = vadd.f32 %v1247_v29, %v1045_v25  ;;  %v1329_v35 = vadd.f32 %v1319_v30, %v1168_v24  ;;  %v1119_v9 = vpop.f32.mrf.mxu2  ;;  %v1174_v3 = vpop.f32.mrf.mxu3  ;;  %v7919_v25 = vld [vmem:[%s9781_s3 + $0x148] sm:$0xff] }
 0x10a   : > { %v1175_v16 = vadd.f32 %v1174_v3, %v1119_v9  ;;  %1838 = vmatpush.bf16.msra.mxu3 %v7919_v25  ;;  %v6329_v9 = vld [vmem:[#allocation13 + $0x70] sm:$0xf]  ;;  %v7941_v3 = vld [vmem:[#allocation13 + $0x74] sm:$0xf0] }
 0x10b   : > { %v1333_v36 = vmax.f32 %v1257_v34, %v1329_v35  ;;  %v6330_v11 = vor.u32 %v7941_v3, %v6329_v9  ;;  %v6377_v3 = vld [vmem:[#allocation13 + $0x150] sm:$0xf] }
 0x10d   : > { %1337 = vst [vmem:[#allocation9] sm:$0xff] %v1333_v36 }
 0x10e   : > { %1839 = vmatpush.bf16.msra.mxu3 %v7918_v14 }
 0x110   : > { %v1249_v47 = vpop.f32.mrf.mxu0  ;;  %v1321_v48 = vpop.f32.mrf.mxu1 }
 0x111   : > { %v1258_v50 = vadd.f32 %v1249_v47, %v1047_v44  ;;  %v1330_v51 = vadd.f32 %v1321_v48, %v1170_v45  ;;  %v6257_v44 = vld [vmem:[#allocation13 + $0xe0] sm:$0xf]  ;;  %v7955_v45 = vld [vmem:[#allocation13 + $0xe4] sm:$0xf0]  ;;  %v6259_v48 = vld [vmem:[#allocation13 + $0xe8] sm:$0xf0] }
 0x112   : > { %v6258_v47 = vor.u32 %v7955_v45, %v6257_v44  ;;  %v6262_v49 = vor.u32 %v7954_v46, %v6259_v48  ;;  %v7934_v44 = vld [vmem:[#allocation13 + $0x44] sm:$0xf]  ;;  %v6306_v46 = vor.u32 %v7935_v43, %v6305_v42  ;;  %v6297_v48 = vld [vmem:[#allocation13 + $0x30] sm:$0xf] }
 0x113   : > { %v1334_v56 = vmax.f32 %v1258_v50, %v1330_v51  ;;  %v6249_v50 = vld [vmem:[#allocation13 + $0xd0] sm:$0xf]  ;;  %v7953_v51 = vld [vmem:[#allocation13 + $0xd4] sm:$0xf0] }
 0x114   : > { %1982 = vmatpush.bf16.msrb.mxu0 %v6258_v47  ;;  %1995 = vmatpush.bf16.msrb.mxu1 %v6262_v49  ;;  %v6250_v53 = vor.u32 %v7953_v51, %v6249_v50  ;;  %v6307_v47 = vld [vmem:[#allocation13 + $0x48] sm:$0xf0]  ;;  %v7933_v50 = vld [vmem:[#allocation13 + $0x34] sm:$0xf0]  ;;  %v7932_v51 = vld [vmem:[#allocation13 + $0x34] sm:$0xf] }
 0x115   : > { %1338 = vst [vmem:[#allocation9 + $0x8] sm:$0xff] %v1334_v56  ;;  %v6241_v56 = vld [vmem:[#allocation13 + $0xc0] sm:$0xf]  ;;  %v6310_v49 = vor.u32 %v7934_v44, %v6307_v47 }
 0x116   : > { %v6242_v59 = vor.u32 %v7951_v57, %v6241_v56  ;;  %v7972_v56 = vld [vmem:[#allocation13 + $0x174] sm:$0xf]  ;;  %v6395_v57 = vld [vmem:[#allocation13 + $0x178] sm:$0xf0] }
 0x118   : > { %v1252_v62 = vpop.f32.mrf.mxu0  ;;  %v1324_v63 = vpop.f32.mrf.mxu1  ;;  %1983 = vmatpush.bf16.msrb.mxu0 %v6250_v53  ;;  %1996 = vmatpush.bf16.msrb.mxu1 %v6254_v55  ;;  %v6394_v55 = vor.u32 %v7973_v52, %v6393_v40  ;;  %v7964_v40 = vld [vmem:[#allocation13 + $0x134] sm:$0xf]  ;;  %v6355_v52 = vld [vmem:[#allocation13 + $0x128] sm:$0xf0] }
 0x119   : > { %v1259_v1 = vadd.f32 %v1252_v62, %v1050_v61  ;;  %v1331_v2 = vadd.f32 %v1324_v63, %v1173_v58  ;;  %v7950_v58 = vld [vmem:[#allocation13 + $0xc4] sm:$0xf]  ;;  %v6233_v62 = vld [vmem:[#allocation13 + $0xb0] sm:$0xf]  ;;  %v7949_v63 = vld [vmem:[#allocation13 + $0xb4] sm:$0xf0] }
 0x11a   : > { %v6246_v61 = vor.u32 %v7950_v58, %v6243_v60  ;;  %v6398_v58 = vor.u32 %v7972_v56, %v6395_v57  ;;  %v6298_v60 = vor.u32 %v7933_v50, %v6297_v48  ;;  %v6353_v48 = vld [vmem:[#allocation13 + $0x120] sm:$0xf] }
 0x11b   : > { %v1335_v5 = vmax.f32 %v1259_v1, %v1331_v2  ;;  %v6234_v1 = vor.u32 %v7949_v63, %v6233_v62  ;;  %v6235_v2 = vld [vmem:[#allocation13 + $0xb8] sm:$0xf0]  ;;  %v7971_v62 = vld [vmem:[#allocation13 + $0x164] sm:$0xf0]  ;;  %v7970_v63 = vld [vmem:[#allocation13 + $0x164] sm:$0xf] }
 0x11c   : > { %v1341_v7 = vld [vmem:[#allocation9] ss:$2 sm:$0xff]  ;;  %v1345_v8 = vld [vmem:[#allocation9 + $0x1] ss:$2 sm:$0xff]  ;;  %1984 = vmatpush.bf16.msrb.mxu0 %v6242_v59  ;;  %1997 = vmatpush.bf16.msrb.mxu1 %v6246_v61 }
 0x11d   : > { %1339 = vst [vmem:[#allocation9 + $0x10] sm:$0xff] %v1335_v5  ;;  %v1348_v10 = vmax.f32 %v1341_v7, %v1345_v8  ;;  %v6238_v5 = vor.u32 %v7948_v0, %v6235_v2  ;;  %v7947_v7 = vld [vmem:[#allocation13 + $0xa4] sm:$0xf0]  ;;  %v7946_v8 = vld [vmem:[#allocation13 + $0xa4] sm:$0xf]  ;;  %v6302_v0 = vor.u32 %v7932_v51, %v6299_v54 }
 0x11e   : > { %v6385_v61 = vld [vmem:[#allocation13 + $0x160] sm:$0xf]  ;;  %v7931_v2 = vld [vmem:[#allocation13 + $0x24] sm:$0xf0]  ;;  %v7962_v51 = vld [vmem:[#allocation13 + $0x124] sm:$0xf] }
 0x11f   : > { %v1354_v17 = vadd.f32 %v8462_v6, %v1348_v10 }
 0x120   : > { %v1254_v18 = vpop.f32.mrf.mxu0  ;;  %v1326_v19 = vpop.f32.mrf.mxu1  ;;  %1985 = vmatpush.bf16.msrb.mxu0 %v6234_v1  ;;  %1998 = vmatpush.bf16.msrb.mxu1 %v6238_v5  ;;  %v6289_v1 = vld [vmem:[#allocation13 + $0x20] sm:$0xf]  ;;  %v6386_v5 = vor.u32 %v7971_v62, %v6385_v61  ;;  %v7960_v61 = vld [vmem:[#allocation13 + $0x114] sm:$0xf]  ;;  %v6347_v62 = vld [vmem:[#allocation13 + $0x118] sm:$0xf0] }
 0x121   : > { %v1260_v22 = vadd.f32 %v1254_v18, %v1052_v13  ;;  %v1332_v23 = vadd.f32 %v1326_v19, %v1175_v16  ;;  %v1356_v24 = vmax.f32 %v1354_v17, 0.0  ;;  %v6227_v13 = vld [vmem:[#allocation13 + $0xa8] sm:$0xf0]  ;;  %v6334_v16 = vor.u32 %v7940_v4, %v6331_v12  ;;  %v6217_v18 = vld [vmem:[#allocation13 + $0x90] sm:$0xf] }
 0x122   : > { %v6230_v17 = vor.u32 %v7946_v8, %v6227_v13  ;;  %v7945_v19 = vld [vmem:[#allocation13 + $0x94] sm:$0xf0]  ;;  %v6291_v8 = vld [vmem:[#allocation13 + $0x28] sm:$0xf0]  ;;  %v6290_v12 = vor.u32 %v7931_v2, %v6289_v1  ;;  %v6281_v13 = vld [vmem:[#allocation13 + $0x10] sm:$0xf] }
 0x123   : > { %v1336_v26 = vmax.f32 %v1260_v22, %v1332_v23  ;;  %1360 = vst [vmem:[#allocation2 + $0x1] sm:$0xff] %v1356_v24  ;;  %v6321_v22 = vld [vmem:[#allocation13 + $0x60] sm:$0xf]  ;;  %v7939_v23 = vld [vmem:[#allocation13 + $0x64] sm:$0xf0]  ;;  %v6218_v25 = vor.u32 %v7945_v19, %v6217_v18 }
 0x124   : > { %1999 = vmatpush.bf16.msrb.mxu1 %v6230_v17  ;;  %v6322_v14 = vor.u32 %v7939_v23, %v6321_v22  ;;  %v7969_v4 = vld [vmem:[#allocation13 + $0x154] sm:$0xf0]  ;;  %v7928_v19 = vld [vmem:[#allocation13 + $0x14] sm:$0xf]  ;;  %v6369_v22 = vld [vmem:[#allocation13 + $0x140] sm:$0xf] }
 0x125   : > { %1340 = vst [vmem:[#allocation9 + $0x18] sm:$0xff] %v1336_v26  ;;  %v6378_v17 = vor.u32 %v7969_v4, %v6377_v3  ;;  %v7967_v23 = vld [vmem:[#allocation13 + $0x144] sm:$0xf0]  ;;  %v7958_v3 = vld [vmem:[#allocation13 + $0x104] sm:$0xf] }
 0x126   : > { %v6339_v4 = vld [vmem:[#allocation13 + $0x108] sm:$0xf0] }
 0x12a   : > { %v1362_v32 = vld [vmem:[#allocation2] sm:$0xff] }
 0x12c   : > { %v1343_v15 = vld [vmem:[#allocation9 + $0x10] ss:$2 sm:$0xff]  ;;  %v1347_v27 = vld [vmem:[#allocation9 + $0x11] ss:$2 sm:$0xff] }
 0x12d   : > { %v1349_v28 = vmax.f32 %v1343_v15, %v1347_v27  ;;  %v6323_v15 = vld [vmem:[#allocation13 + $0x68] sm:$0xf0]  ;;  %v6219_v27 = vld [vmem:[#allocation13 + $0x98] sm:$0xf0] }
 0x12f   : > { %v1355_v29 = vadd.f32 %v8462_v6, %v1349_v28  ;;  %v6225_v6 = vld [vmem:[#allocation13 + $0xa0] sm:$0xf] }
 0x130   : > { %v6226_v10 = vor.u32 %v7947_v7, %v6225_v6  ;;  %v6387_v6 = vld [vmem:[#allocation13 + $0x168] sm:$0xf0]  ;;  %v7930_v7 = vld [vmem:[#allocation13 + $0x24] sm:$0xf] }
 0x131   : > { %v1357_v30 = vmax.f32 %v1355_v29, 0.0  ;;  %v6222_v29 = vor.u32 %v7944_v21, %v6219_v27  ;;  %v6390_v9 = vor.u32 %v7970_v63, %v6387_v6  ;;  %v6294_v18 = vor.u32 %v7930_v7, %v6291_v8  ;;  %v6337_v7 = vld [vmem:[#allocation13 + $0x100] sm:$0xf]  ;;  %v7959_v8 = vld [vmem:[#allocation13 + $0x104] sm:$0xf0] }
 0x132   : > { %1986 = vmatpush.bf16.msrb.mxu0 %v6226_v10  ;;  %v7968_v10 = vld [vmem:[#allocation13 + $0x154] sm:$0xf]  ;;  %v6350_v6 = vor.u32 %v7960_v61, %v6347_v62  ;;  %v8006_v61 = vld [vmem:[#allocation15 + $0x80] sm:$0xff] }
 0x133   : > { %1361 = vst [vmem:[#allocation2 + $0x9] sm:$0xff] %v1357_v30  ;;  %v1400_v31 = vpack.c.bf16 %v1357_v30, %v1356_v24  ;;  %v7938_v24 = vld [vmem:[#allocation13 + $0x64] sm:$0xf]  ;;  %v6209_v30 = vld [vmem:[#allocation13 + $0x80] sm:$0xf]  ;;  %2000 = vmatpush.bf16.msrb.mxu1 %v6222_v29 }
 0x134   : > { %v6326_v28 = vor.u32 %v7938_v24, %v6323_v15  ;;  %v6371_v15 = vld [vmem:[#allocation13 + $0x148] sm:$0xf0]  ;;  %v6273_v29 = vld [vmem:[#allocation13] sm:$0xf] }
 0x135   : > { %1474 = vmatmul.bf16.vlgmr.msrb.gmra.mxu2 %v1400_v31  ;;  %1615 = vmatmul.bf16.vlgmr.msra.gmra.mxu0 %v1400_v31  ;;  %v7943_v31 = vld [vmem:[#allocation13 + $0x84] sm:$0xf0]  ;;  %v8014_v62 = vld [vmem:[#allocation15 + $0xc0] sm:$0xff] }
 0x136   : > { %2087 = vmatpush.bf16.msrb.mxu2 %v6330_v11  ;;  %1987 = vmatpush.bf16.msrb.mxu0 %v6218_v25  ;;  %v6379_v11 = vld [vmem:[#allocation13 + $0x158] sm:$0xf0] }
 0x137   : > { %v6382_v21 = vor.u32 %v7968_v10, %v6379_v11  ;;  %v6283_v25 = vld [vmem:[#allocation13 + $0x18] sm:$0xf0] }
 0x13a   : > { %v1363_v33 = vld [vmem:[#allocation2 + $0x8] sm:$0xff]  ;;  %2088 = vmatpush.bf16.msrb.mxu2 %v6322_v14 }
 0x13b   : > { %v1364_v34 = vpack.c.bf16 %v1363_v33, %v1362_v32  ;;  %v1683_v35 = vld [vmem:[#allocation2 + $0x2] sm:$0xff]  ;;  %v1684_v36 = vld [vmem:[#allocation2 + $0xa] sm:$0xff]  ;;  %v6313_v33 = vld [vmem:[#allocation13 + $0x50] sm:$0xf] }
 0x13c   : > { %v1685_v37 = vpack.c.bf16 %v1684_v36, %v1683_v35  ;;  %v7942_v32 = vld [vmem:[#allocation13 + $0x84] sm:$0xf]  ;;  %v7936_v35 = vld [vmem:[#allocation13 + $0x54] sm:$0xf]  ;;  %v6210_v36 = vor.u32 %v7943_v31, %v6209_v30  ;;  %v7927_v30 = vld [vmem:[#allocation13 + $0x4] sm:$0xf0]  ;;  %v6370_v31 = vor.u32 %v7967_v23, %v6369_v22 }
 0x13d   : > { %1536 = vmatmul.bf16.vlgmr.msrb.gmra.mxu3 %v1364_v34  ;;  %1677 = vmatmul.bf16.vlgmr.msra.gmra.mxu1 %v1364_v34  ;;  %v7937_v34 = vld [vmem:[#allocation13 + $0x54] sm:$0xf0]  ;;  %v6318_v41 = vor.u32 %v7936_v35, %v6315_v38  ;;  %v6214_v45 = vor.u32 %v7942_v32, %v6211_v39  ;;  %v7966_v14 = vld [vmem:[#allocation13 + $0x144] sm:$0xf]  ;;  %v6286_v32 = vor.u32 %v7928_v19, %v6283_v25  ;;  %v6361_v35 = vld [vmem:[#allocation13 + $0x130] sm:$0xf] }
 0x13e   : > { %2100 = vmatpush.bf16.msrb.mxu3 %v6334_v16  ;;  %1988 = vmatpush.bf16.msrb.mxu0 %v6210_v36  ;;  %v7929_v16 = vld [vmem:[#allocation13 + $0x14] sm:$0xf0]  ;;  %v6275_v39 = vld [vmem:[#allocation13 + $0x8] sm:$0xf0]  ;;  %v6274_v43 = vor.u32 %v7927_v30, %v6273_v29  ;;  %v8020_v19 = vld [vmem:[#allocation15 + $0xf0] sm:$0xff] }
 0x13f   : > { %2001 = vmatpush.bf16.msrb.mxu1 %v6214_v45  ;;  %v7965_v36 = vld [vmem:[#allocation13 + $0x134] sm:$0xf0]  ;;  %v8011_v22 = vld [vmem:[#allocation15 + $0xa8] sm:$0xff] }
 0x140   : > { %v6362_v44 = vor.u32 %v7965_v36, %v6361_v35  ;;  %v8019_v25 = vld [vmem:[#allocation15 + $0xe8] sm:$0xff]  ;;  %v7981_v30 = vld [vmem:[#allocation15 + $0x38] sm:$0xff] }
 0x141   : > { %v7979_v36 = vld [vmem:[#allocation15 + $0x28] sm:$0xff] }
 0x142   : > { %2101 = vmatpush.bf16.msrb.mxu3 %v6326_v28  ;;  %2212 = vmatpush.bf16.msra.mxu0 %v6394_v55  ;;  %v6282_v28 = vor.u32 %v7929_v16, %v6281_v13  ;;  %v6342_v16 = vor.u32 %v7958_v3, %v6339_v4  ;;  %v8035_v3 = vld [vmem:[#allocation15 + $0x268] sm:$0xff]  ;;  %v7993_v4 = vld [vmem:[#allocation15 + $0x198] sm:$0xff] }
 0x143   : > { %2225 = vmatpush.bf16.msra.mxu1 %v6398_v58  ;;  %v6358_v58 = vor.u32 %v7962_v51, %v6355_v52  ;;  %v8008_v51 = vld [vmem:[#allocation15 + $0x90] sm:$0xff] }
 0x144   : > { %v8016_v52 = vld [vmem:[#allocation15 + $0xd0] sm:$0xff] }
 0x145   : > { %1759 = vmatmul.bf16.vlgmr.msra.gmra.mxu2 %v1685_v37 }
 0x146   : > { %2102 = vmatpush.bf16.msrb.mxu3 %v6318_v41  ;;  %2213 = vmatpush.bf16.msra.mxu0 %v6386_v5  ;;  %v6363_v41 = vld [vmem:[#allocation13 + $0x138] sm:$0xf0] }
 0x147   : > { %2226 = vmatpush.bf16.msra.mxu1 %v6390_v9  ;;  %v6366_v47 = vor.u32 %v7964_v40, %v6363_v41  ;;  %v7986_v40 = vld [vmem:[#allocation15 + $0x60] sm:$0xff] }
 0x14a   : > { %2103 = vmatpush.bf16.msrb.mxu3 %v6310_v49  ;;  %2214 = vmatpush.bf16.msra.mxu0 %v6378_v17  ;;  %v7963_v49 = vld [vmem:[#allocation13 + $0x124] sm:$0xf0]  ;;  %v8013_v17 = vld [vmem:[#allocation15 + $0xb8] sm:$0xff] }
 0x14b   : > { %2227 = vmatpush.bf16.msra.mxu1 %v6382_v21  ;;  %v6354_v56 = vor.u32 %v7963_v49, %v6353_v48  ;;  %v8463_v21 = vld [vmem:[%s9783_s21] ss:$0 sm:$0xff]  ;;  %v7975_v49 = vld [vmem:[#allocation15 + $0x8] sm:$0xff]  ;;  %s9787_s21 = sld [smem:[#allocation37_spill]] }
 0x14c   : > { %v8017_v48 = vld [vmem:[#allocation15 + $0xd8] sm:$0xff] }
 0x14d   : > { %1840 = vmatmul.bf16.vlgmr.msra.gmra.mxu3 %v1685_v37  ;;  %v6314_v37 = vor.u32 %v7937_v34, %v6313_v33  ;;  %v7926_v33 = vld [vmem:[#allocation13 + $0x4] sm:$0xf]  ;;  %v6374_v34 = vor.u32 %v7966_v14, %v6371_v15 }
 0x14e   : > { %2104 = vmatpush.bf16.msrb.mxu3 %v6302_v0  ;;  %2215 = vmatpush.bf16.msra.mxu0 %v6370_v31  ;;  %v7989_v31 = vld [vmem:[#allocation15 + $0x78] sm:$0xff] }
 0x14f   : > { %2089 = vmatpush.bf16.msrb.mxu2 %v6314_v37  ;;  %2228 = vmatpush.bf16.msra.mxu1 %v6374_v34  ;;  %v7988_v34 = vld [vmem:[#allocation15 + $0x70] sm:$0xff] }
 0x151   : > { %s873_s28 = sand.u32 1, %s9787_s21   ;;  %s8815_s21 = scalar_lea.hbm %s8814_s23, 1 }
 0x152   : > { %2105 = vmatpush.bf16.msrb.mxu3 %v6294_v18  ;;  %2216 = vmatpush.bf16.msra.mxu0 %v6362_v44  ;;  %v8021_v18 = vld [vmem:[#allocation15 + $0xf8] sm:$0xff]  ;;  %s874_s4 = scalar_lea.vmem [#allocation28], %s873_s28  ;;  %s5578_s6 = scalar_lea.sflag [#allocation12], %s873_s28 }
 0x153   : > { %2090 = vmatpush.bf16.msrb.mxu2 %v6306_v46  ;;  %v6278_v46 = vor.u32 %v7926_v33, %v6275_v39  ;;  %2229 = vmatpush.bf16.msra.mxu1 %v6366_v47  ;;  %v7980_v33 = vld [vmem:[#allocation15 + $0x30] sm:$0xff]  ;;  %v7978_v39 = vld [vmem:[#allocation15 + $0x20] sm:$0xff]  ;;  %v8009_v47 = vld [vmem:[#allocation15 + $0x98] sm:$0xff]  ;;  %s5588_s1 = sshll.u32 %s874_s4, 4  ;;  %p8816_p0 = scmp.ne.s32.totalorder %s8814_s23, %s8815_s21  ;;  %s5589_s1 = int_to_ptr.vmem [resolvable:$true] %s5588_s1 }
 0x155   : > { %p8817_p1 = pnand %p8816_p0, %p9061_p5 }
 0x156   : > { %2106 = vmatpush.bf16.msrb.mxu3 %v6286_v32  ;;  %2217 = vmatpush.bf16.msra.mxu0 %v6354_v56  ;;  %v7997_v56 = vld [vmem:[#allocation15 + $0x1b8] sm:$0xff] }
 0x157   : > { %2091 = vmatpush.bf16.msrb.mxu2 %v6298_v60  ;;  %v6345_v60 = vld [vmem:[#allocation13 + $0x110] sm:$0xf]  ;;  %2230 = vmatpush.bf16.msra.mxu1 %v6358_v58  ;;  %v8007_v58 = vld [vmem:[#allocation15 + $0x88] sm:$0xff]  ;;  %p8818_p2 = pneg %p8817_p1 }
 0x15a   : > { %2107 = vmatpush.bf16.msrb.mxu3 %v6278_v46  ;;  %v7984_v46 = vld [vmem:[#allocation15 + $0x50] sm:$0xff] }
 0x15b   : > { %2092 = vmatpush.bf16.msrb.mxu2 %v6290_v12  ;;  %v6338_v12 = vor.u32 %v7959_v8, %v6337_v7  ;;  %2231 = vmatpush.bf16.msra.mxu1 %v6350_v6  ;;  %v8036_v6 = vld [vmem:[#allocation15 + $0x270] sm:$0xff]  ;;  %v7994_v7 = vld [vmem:[#allocation15 + $0x1a0] sm:$0xff] }
 0x15c   : > { %v8002_v8 = vld [vmem:[#allocation15 + $0x1e0] sm:$0xff] }
 0x15e   : > { %2502 = vmatpush.bf16.msra.mxu3 %v8021_v18  ;;  %v8025_v18 = vld [vmem:[#allocation15 + $0x218] sm:$0xff] }
 0x15f   : > { %2093 = vmatpush.bf16.msrb.mxu2 %v6282_v28  ;;  %2232 = vmatpush.bf16.msra.mxu1 %v6342_v16  ;;  %v8018_v28 = vld [vmem:[#allocation15 + $0xe0] sm:$0xff]  ;;  %v7992_v16 = vld [vmem:[#allocation15 + $0x190] sm:$0xff] }
 0x162   : > { %2503 = vmatpush.bf16.msra.mxu3 %v8020_v19  ;;  %v7991_v19 = vld [vmem:[#allocation15 + $0x188] sm:$0xff] }
 0x163   : > { %2094 = vmatpush.bf16.msrb.mxu2 %v6274_v43  ;;  %v7985_v43 = vld [vmem:[#allocation15 + $0x58] sm:$0xff] }
 0x166   : > { %2504 = vmatpush.bf16.msra.mxu3 %v8019_v25  ;;  %v8032_v25 = vld [vmem:[#allocation15 + $0x250] sm:$0xff] }
 0x167   : > { %2489 = vmatpush.bf16.msra.mxu2 %v8013_v17  ;;  %v8000_v17 = vld [vmem:[#allocation15 + $0x1d0] sm:$0xff] }
 0x16a   : > { %2505 = vmatpush.bf16.msra.mxu3 %v8018_v28  ;;  %v8031_v28 = vld [vmem:[#allocation15 + $0x248] sm:$0xff] }
 0x16e   : > { %2506 = vmatpush.bf16.msra.mxu3 %v8017_v48 }
 0x172   : > { %2507 = vmatpush.bf16.msra.mxu3 %v8016_v52 }
 0x1b2   : > { %v1616_v37 = vpop.f32.mrf.mxu0 }
 0x1b8   : > { %v9383_v26 = vpop.f32.mrf.mxu2 }
 0x1ba   : > { %v1678_v27 = vpop.f32.mrf.mxu1  ;;  %v1618_v63 = vpop.f32.mrf.mxu0 }
 0x1bb   : > { %v1679_v42 = vadd.f32 %v1678_v27, %v1616_v37  ;;  %v8010_v27 = vld [vmem:[#allocation15 + $0xa0] sm:$0xff]  ;;  %v7987_v37 = vld [vmem:[#allocation15 + $0x68] sm:$0xff] }
 0x1c0   : > { %v9385_v53 = vpop.f32.mrf.mxu3  ;;  %v9387_v59 = vpop.f32.mrf.mxu2 }
 0x1c1   : > { %v1538_v45 = vadd.f32 %v9385_v53, %v9383_v26  ;;  %v7961_v26 = vld [vmem:[#allocation13 + $0x114] sm:$0xf0] }
 0x1c2   : > { %v1680_v53 = vpop.f32.mrf.mxu1  ;;  %v6346_v1 = vor.u32 %v7961_v26, %v6345_v60  ;;  %v8015_v60 = vld [vmem:[#allocation15 + $0xc8] sm:$0xff]  ;;  %v7996_v26 = vld [vmem:[#allocation15 + $0x1b0] sm:$0xff] }
 0x1c3   : > { %v1681_v2 = vadd.f32 %v1680_v53, %v1618_v63  ;;  %2508 = vmatpush.bf16.msra.mxu3 %v8015_v60  ;;  %v8004_v53 = vld [vmem:[#allocation15 + $0x1f0] sm:$0xff]  ;;  %v8029_v63 = vld [vmem:[#allocation15 + $0x238] sm:$0xff] }
 0x1c4   : > { %2218 = vmatpush.bf16.msra.mxu0 %v6346_v1  ;;  %v7995_v1 = vld [vmem:[#allocation15 + $0x1a8] sm:$0xff] }
 0x1c7   : > { %2509 = vmatpush.bf16.msra.mxu3 %v8014_v62 }
 0x1c8   : > { %v1539_v24 = vpop.f32.mrf.mxu3  ;;  %v1760_v38 = vpop.f32.mrf.mxu2  ;;  %2219 = vmatpush.bf16.msra.mxu0 %v6338_v12  ;;  %v8026_v12 = vld [vmem:[#allocation15 + $0x220] sm:$0xff] }
 0x1c9   : > { %v1765_v54 = vadd.f32 %v1760_v38, %v1538_v45  ;;  %v1540_v5 = vadd.f32 %v1539_v24, %v9387_v59  ;;  %v8012_v59 = vld [vmem:[#allocation15 + $0xb0] sm:$0xff] }
 0x1ca   : > { %2490 = vmatpush.bf16.msra.mxu2 %v8012_v59  ;;  %v7976_v45 = vld [vmem:[#allocation15 + $0x10] sm:$0xff]  ;;  %v8033_v59 = vld [vmem:[#allocation15 + $0x258] sm:$0xff] }
 0x1ce   : > { %2491 = vmatpush.bf16.msra.mxu2 %v8011_v22 }
 0x1d0   : > { %v1841_v50 = vpop.f32.mrf.mxu3  ;;  %v1762_v0 = vpop.f32.mrf.mxu2 }
 0x1d1   : > { %v1846_v55 = vadd.f32 %v1841_v50, %v1679_v42  ;;  %v1766_v10 = vadd.f32 %v1762_v0, %v1540_v5  ;;  %v7977_v42 = vld [vmem:[#allocation15 + $0x18] sm:$0xff]  ;;  %v7983_v50 = vld [vmem:[#allocation15 + $0x48] sm:$0xff]  ;;  %v8028_v5 = vld [vmem:[#allocation15 + $0x230] sm:$0xff] }
 0x1d2   : > { %2492 = vmatpush.bf16.msra.mxu2 %v8010_v27  ;;  %v8037_v0 = vld [vmem:[#allocation15 + $0x278] sm:$0xff]  ;;  %v8023_v27 = vld [vmem:[#allocation15 + $0x208] sm:$0xff] }
 0x1d3   : > { %v1848_v57 = vmax.f32 %v1765_v54, %v1846_v55  ;;  %v7974_v54 = vld [vmem:[#allocation15] sm:$0xff] }
 0x1d4   : > { %v7982_v55 = vld [vmem:[#allocation15 + $0x40] sm:$0xff] }
 0x1d5   : > { %1850 = vst [vmem:[#allocation9] sm:$0xff] %v1848_v57  ;;  %v8005_v57 = vld [vmem:[#allocation15 + $0x1f8] sm:$0xff] }
 0x1d6   : > { %2493 = vmatpush.bf16.msra.mxu2 %v8009_v47 }
 0x1d8   : > { %v1843_v9 = vpop.f32.mrf.mxu3 }
 0x1d9   : > { %v1847_v11 = vadd.f32 %v1843_v9, %v1681_v2  ;;  %v8003_v2 = vld [vmem:[#allocation15 + $0x1e8] sm:$0xff] }
 0x1da   : > { %2494 = vmatpush.bf16.msra.mxu2 %v8008_v51  ;;  %v8027_v9 = vld [vmem:[#allocation15 + $0x228] sm:$0xff] }
 0x1db   : > { %v1849_v13 = vmax.f32 %v1766_v10, %v1847_v11  ;;  %v8001_v10 = vld [vmem:[#allocation15 + $0x1d8] sm:$0xff]  ;;  %v2250_v11 = vlaneseq }
 0x1dd   : > { %1851 = vst [vmem:[#allocation9 + $0x8] sm:$0xff] %v1849_v13  ;;  %v8034_v13 = vld [vmem:[#allocation15 + $0x260] sm:$0xff]  ;;  %vm2252_vm1 = vcmp.lt.s32.totalorder %v2250_v11, 256  ;;  %v8059_v11 = vld [vmem:[#allocation15 + $0x2a8] sm:$0xff] }
 0x1de   : > { %2495 = vmatpush.bf16.msra.mxu2 %v8007_v58  ;;  %2254 = vst.msk [vmem:[#allocation4] ss:$8 sm:$0x3] %vm2252_vm1, %v8902_v20 }
 0x1df   : > { %2257 = vst.msk [vmem:[#allocation4 + $0x11] ss:$8 sm:$0x3] %vm2252_vm1, %v8902_v20 }
 0x1e0   : > { %3638 = vst.msk [vmem:[#allocation6] ss:$8 sm:$0x3] %vm2252_vm1, %v8902_v20 }
 0x1e1   : > { %3641 = vst.msk [vmem:[#allocation6 + $0x5] ss:$8 sm:$0x3] %vm2252_vm1, %v8902_v20  ;;  %v8022_v20 = vld [vmem:[#allocation15 + $0x200] sm:$0xff] }
 0x1e2   : > { %2496 = vmatpush.bf16.msra.mxu2 %v8006_v61 }
 0x1e4   : > { %v1852_v23 = vld [vmem:[#allocation9] ss:$2 sm:$0xff]  ;;  %v1853_v24 = vld [vmem:[#allocation9 + $0x1] ss:$2 sm:$0xff] }
 0x1e5   : > { %v1854_v14 = vmax.f32 %v1852_v23, %v1853_v24  ;;  %v8024_v24 = vld [vmem:[#allocation15 + $0x210] sm:$0xff] }
 0x1e7   : > { %v1859_v15 = vadd.f32 %v8463_v21, %v1854_v14  ;;  %v7999_v21 = vld [vmem:[#allocation15 + $0x1c8] sm:$0xff]  ;;  %v7990_v14 = vld [vmem:[#allocation15 + $0x180] sm:$0xff] }
 0x1e9   : > { %v1860_v29 = vmax.f32 %v1859_v15, 0.0  ;;  %v7998_v15 = vld [vmem:[#allocation15 + $0x1c0] sm:$0xff] }
 0x1eb   : > { %1863 = vst [vmem:[#allocation3 + $0x1] sm:$0xff] %v1860_v29  ;;  %v1883_v32 = vpack.c.bf16 %v1860_v29, %v1860_v29 }
 0x1ed   : > { %1989 = vmatmul.bf16.vlgmr.msrb.gmra.mxu0 %v1883_v32  ;;  %2002 = vmatmul.bf16.vlgmr.msrb.gmra.mxu1 %v1883_v32  ;;  %v2240_v32 = vld [vmem:[%s9784_s26] sm:$0x3]  ;;  %s8819_s26 = scalar_lea.hbm %s9788_s2, 2 }
 0x1ee   : > { %2611 = vmatpush.bf16.msrb.mxu0 %v7981_v30  ;;  %2624 = vmatpush.bf16.msrb.mxu1 %v7989_v31  ;;  %v8030_v31 = vld [vmem:[#allocation15 + $0x240] sm:$0xff]  ;;  %p8821_p4 = scmp.lt.s32.totalorder %s8819_s26, %s8815_s21 }
 0x1f0   : > { %p8822_p7 = por %p8821_p4, %p8820_p3 }
 0x1f2   : > { %v1864_v35 = vld [vmem:[#allocation3] sm:$0xff]  ;;  %2612 = vmatpush.bf16.msrb.mxu0 %v7980_v33  ;;  %2625 = vmatpush.bf16.msrb.mxu1 %v7988_v34  ;;  %p8823_p8 = pnand %p8822_p7, %p8818_p2 }
 0x1f3   : > { %v1865_v38 = vpack.c.bf16 %v1864_v35, %v1864_v35  ;;  %v2113_v41 = vld [vmem:[#allocation3 + $0x2] sm:$0xff] }
 0x1f4   : > { %v2114_v44 = vpack.c.bf16 %v2113_v41, %v2113_v41 }
 0x1f5   : > { %2095 = vmatmul.bf16.vlgmr.msrb.gmra.mxu2 %v1865_v38  ;;  %2108 = vmatmul.bf16.vlgmr.msrb.gmra.mxu3 %v1865_v38  ;;  %v2243_v38 = vperm.slane %v2240_v32, 1 }
 0x1f6   : > { %2613 = vmatpush.bf16.msrb.mxu0 %v7979_v36  ;;  %2626 = vmatpush.bf16.msrb.mxu1 %v7987_v37  ;;  %v2242_v37 = vperm.slane %v2240_v32, 0 }
 0x1f7   : > { %2766 = vmatpush.bf16.msrb.mxu2 %v8029_v63  ;;  %2779 = vmatpush.bf16.msrb.mxu3 %v8037_v0  ;;  %v8060_v0 = vld [vmem:[#allocation15 + $0x2b0] sm:$0xff] }
 0x1fa   : > { %2614 = vmatpush.bf16.msrb.mxu0 %v7978_v39  ;;  %2627 = vmatpush.bf16.msrb.mxu1 %v7986_v40 }
 0x1fb   : > { %2767 = vmatpush.bf16.msrb.mxu2 %v8028_v5  ;;  %2780 = vmatpush.bf16.msrb.mxu3 %v8036_v6  ;;  %v8068_v5 = vld [vmem:[#allocation15 + $0x2f0] sm:$0xff] }
 0x1fd   : > { %2220 = vmatmul.bf16.vlgmr.msra.gmra.mxu0 %v2114_v44  ;;  %2233 = vmatmul.bf16.vlgmr.msra.gmra.mxu1 %v2114_v44 }
 0x1fe   : > { %2615 = vmatpush.bf16.msrb.mxu0 %v7977_v42  ;;  %2628 = vmatpush.bf16.msrb.mxu1 %v7985_v43 }
 0x1ff   : > { %2768 = vmatpush.bf16.msrb.mxu2 %v8027_v9  ;;  %2781 = vmatpush.bf16.msrb.mxu3 %v8035_v3  ;;  %v8045_v9 = vld [vmem:[#allocation15 + $0x138] sm:$0xff] }
 0x202   : > { %2616 = vmatpush.bf16.msrb.mxu0 %v7976_v45  ;;  %2629 = vmatpush.bf16.msrb.mxu1 %v7984_v46 }
 0x203   : > { %2769 = vmatpush.bf16.msrb.mxu2 %v8026_v12  ;;  %2782 = vmatpush.bf16.msrb.mxu3 %v8034_v13  ;;  %v8053_v12 = vld [vmem:[#allocation15 + $0x178] sm:$0xff] }
 0x206   : > { %2617 = vmatpush.bf16.msrb.mxu0 %v7975_v49  ;;  %2630 = vmatpush.bf16.msrb.mxu1 %v7983_v50 }
 0x207   : > { %2770 = vmatpush.bf16.msrb.mxu2 %v8025_v18  ;;  %2783 = vmatpush.bf16.msrb.mxu3 %v8033_v59  ;;  %v8058_v18 = vld [vmem:[#allocation15 + $0x2a0] sm:$0xff]  ;;  %v8052_v59 = vld [vmem:[#allocation15 + $0x170] sm:$0xff] }
 0x20a   : > { %2618 = vmatpush.bf16.msrb.mxu0 %v7974_v54  ;;  %2631 = vmatpush.bf16.msrb.mxu1 %v7982_v55  ;;  %v8061_v55 = vld [vmem:[#allocation15 + $0x2b8] sm:$0xff] }
 0x20b   : > { %2771 = vmatpush.bf16.msrb.mxu2 %v8024_v24  ;;  %2784 = vmatpush.bf16.msrb.mxu3 %v8032_v25  ;;  %v8065_v24 = vld [vmem:[#allocation15 + $0x2d8] sm:$0xff]  ;;  %v8042_v25 = vld [vmem:[#allocation15 + $0x120] sm:$0xff] }
 0x20e   : > { %2888 = vmatpush.bf16.msra.mxu0 %v7997_v56  ;;  %2901 = vmatpush.bf16.msra.mxu1 %v8005_v57 }
 0x20f   : > { %2772 = vmatpush.bf16.msrb.mxu2 %v8023_v27  ;;  %2785 = vmatpush.bf16.msrb.mxu3 %v8031_v28  ;;  %v8064_v27 = vld [vmem:[#allocation15 + $0x2d0] sm:$0xff]  ;;  %v8041_v28 = vld [vmem:[#allocation15 + $0x118] sm:$0xff] }
 0x212   : > { %2889 = vmatpush.bf16.msra.mxu0 %v7996_v26  ;;  %2902 = vmatpush.bf16.msra.mxu1 %v8004_v53  ;;  %v8069_v26 = vld [vmem:[#allocation15 + $0x2f8] sm:$0xff] }
 0x213   : > { %2773 = vmatpush.bf16.msrb.mxu2 %v8022_v20  ;;  %2786 = vmatpush.bf16.msrb.mxu3 %v8030_v31  ;;  %v8063_v20 = vld [vmem:[#allocation15 + $0x2c8] sm:$0xff] }
 0x216   : > { %2890 = vmatpush.bf16.msra.mxu0 %v7995_v1  ;;  %2903 = vmatpush.bf16.msra.mxu1 %v8003_v2 }
 0x21a   : > { %2891 = vmatpush.bf16.msra.mxu0 %v7994_v7  ;;  %2904 = vmatpush.bf16.msra.mxu1 %v8002_v8 }
 0x21e   : > { %2892 = vmatpush.bf16.msra.mxu0 %v7993_v4  ;;  %2905 = vmatpush.bf16.msra.mxu1 %v8001_v10 }
 0x222   : > { %2893 = vmatpush.bf16.msra.mxu0 %v7992_v16  ;;  %2906 = vmatpush.bf16.msra.mxu1 %v8000_v17  ;;  %v8067_v16 = vld [vmem:[#allocation15 + $0x2e8] sm:$0xff]  ;;  %v8044_v17 = vld [vmem:[#allocation15 + $0x130] sm:$0xff] }
 0x226   : > { %2894 = vmatpush.bf16.msra.mxu0 %v7991_v19  ;;  %2907 = vmatpush.bf16.msra.mxu1 %v7999_v21  ;;  %v8066_v19 = vld [vmem:[#allocation15 + $0x2e0] sm:$0xff]  ;;  %v8043_v21 = vld [vmem:[#allocation15 + $0x128] sm:$0xff] }
 0x22a   : > { %2895 = vmatpush.bf16.msra.mxu0 %v7990_v14  ;;  %2908 = vmatpush.bf16.msra.mxu1 %v7998_v15  ;;  %v8056_v14 = vld [vmem:[#allocation15 + $0x290] sm:$0xff]  ;;  %v8050_v15 = vld [vmem:[#allocation15 + $0x160] sm:$0xff] }
 0x26a   : > { %v1990_v22 = vpop.f32.mrf.mxu0  ;;  %v2003_v23 = vpop.f32.mrf.mxu1 }
 0x272   : > { %v1992_v29 = vpop.f32.mrf.mxu0  ;;  %v2005_v30 = vpop.f32.mrf.mxu1 }
 0x273   : > { %v8055_v29 = vld [vmem:[#allocation15 + $0x288] sm:$0xff]  ;;  %v8049_v30 = vld [vmem:[#allocation15 + $0x158] sm:$0xff] }
 0x278   : > { %v2096_v33 = vpop.f32.mrf.mxu2  ;;  %v2109_v34 = vpop.f32.mrf.mxu3 }
 0x279   : > { %v2097_v35 = vadd.f32 %v2096_v33, %v1990_v22  ;;  %v2110_v36 = vadd.f32 %v2109_v34, %v2003_v23  ;;  %v8057_v22 = vld [vmem:[#allocation15 + $0x298] sm:$0xff]  ;;  %v8051_v23 = vld [vmem:[#allocation15 + $0x168] sm:$0xff]  ;;  %v8040_v33 = vld [vmem:[#allocation15 + $0x110] sm:$0xff] }
 0x27a   : > { %v2221_v39 = vpop.f32.mrf.mxu0  ;;  %v2234_v40 = vpop.f32.mrf.mxu1  ;;  %v8054_v34 = vld [vmem:[#allocation15 + $0x280] sm:$0xff] }
 0x27b   : > { %v2238_v41 = vadd.f32 %v2221_v39, %v2097_v35  ;;  %v2239_v42 = vadd.f32 %v2234_v40, %v2110_v36  ;;  %v8062_v39 = vld [vmem:[#allocation15 + $0x2c0] sm:$0xff]  ;;  %v8039_v40 = vld [vmem:[#allocation15 + $0x108] sm:$0xff] }
 0x27d   : > { %v2246_v43 = vadd.f32 %v2242_v37, %v2238_v41  ;;  %v2247_v44 = vadd.f32 %v2243_v38, %v2239_v42  ;;  %v8048_v37 = vld [vmem:[#allocation15 + $0x150] sm:$0xff]  ;;  %v8047_v42 = vld [vmem:[#allocation15 + $0x148] sm:$0xff] }
 0x27f   : > { %v2248_v45 = vmax.f32 %v2246_v43, 0.0  ;;  %v2249_v46 = vmax.f32 %v2247_v44, 0.0 }
 0x280   : > { %v2098_v47 = vpop.f32.mrf.mxu2  ;;  %v2111_v48 = vpop.f32.mrf.mxu3 }
 0x281   : > { %v2261_v49 = vrot.slane %v2248_v45, 7  ;;  %v2262_v50 = vrot.slane %v2249_v46, 7  ;;  %v8038_v45 = vld [vmem:[#allocation15 + $0x100] sm:$0xff]  ;;  %v6841_v48 = vld [vmem:[#allocation16 + $0xf0] sm:$0xf] }
 0x282   : > { %v2223_v51 = vpop.f32.mrf.mxu0  ;;  %v2236_v52 = vpop.f32.mrf.mxu1  ;;  %v8046_v46 = vld [vmem:[#allocation15 + $0x140] sm:$0xff] }
 0x283   : > { %2265 = vst [vmem:[#allocation4] sm:$0xfe] %v2261_v49  ;;  %v6843_v52 = vld [vmem:[#allocation16 + $0xf8] sm:$0xf0] }
 0x284   : > { %2267 = vst [vmem:[#allocation4 + $0x10] sm:$0x1] %v2261_v49  ;;  %v8101_v49 = vld [vmem:[#allocation16 + $0xf4] sm:$0xf0] }
 0x285   : > { %2266 = vst [vmem:[#allocation4 + $0x8] sm:$0xfe] %v2262_v50  ;;  %v6842_v51 = vor.u32 %v8101_v49, %v6841_v48  ;;  %v6793_v48 = vld [vmem:[#allocation16 + $0x90] sm:$0xf]  ;;  %v8089_v49 = vld [vmem:[#allocation16 + $0x94] sm:$0xf0] }
 0x286   : > { %2268 = vst [vmem:[#allocation4 + $0x18] sm:$0x1] %v2262_v50  ;;  %v8100_v50 = vld [vmem:[#allocation16 + $0xf4] sm:$0xf] }
 0x28a   : > { %v2269_v54 = vld [vmem:[#allocation4] sm:$0xff] }
 0x28b   : > { %v2338_v56 = vld [vmem:[#allocation4] sm:$0xfe]  ;;  %v2271_v57 = vpack.c.bf16 %v2269_v54, %v2269_v54  ;;  %v2340_v58 = vld [vmem:[#allocation4 + $0x10] sm:$0x1] }
 0x28c   : > { %v2270_v60 = vld [vmem:[#allocation4 + $0x8] sm:$0xff]  ;;  %v2342_v53 = vpack.c.bf16 %v2340_v58, %v2338_v56  ;;  %v2914_v31 = vld [vmem:[#allocation4] sm:$0xfc]  ;;  %v2916_v32 = vld [vmem:[#allocation4 + $0x10] sm:$0x3] }
 0x28d   : > { %v2339_v61 = vld [vmem:[#allocation4 + $0x8] sm:$0xfe]  ;;  %2619 = vmatmul.bf16.vlgmr.msrb.gmra.mxu0 %v2271_v57  ;;  %v2272_v62 = vpack.c.bf16 %v2270_v60, %v2270_v60  ;;  %v2341_v63 = vld [vmem:[#allocation4 + $0x18] sm:$0x1]  ;;  %v2918_v38 = vpack.c.bf16 %v2916_v32, %v2914_v31  ;;  %v6833_v56 = vld [vmem:[#allocation16 + $0xe0] sm:$0xf] }
 0x28e   : > { %3211 = vmatpush.bf16.msrb.mxu0 %v8061_v55  ;;  %v2380_v1 = vshll.u32 %v2342_v53, 16  ;;  %v2343_v2 = vpack.c.bf16 %v2341_v63, %v2339_v61  ;;  %v2378_v6 = vshrl.u32 %v2342_v53, 16  ;;  %v2915_v35 = vld [vmem:[#allocation4 + $0x8] sm:$0xfc]  ;;  %v2917_v36 = vld [vmem:[#allocation4 + $0x18] sm:$0x3]  ;;  %v6846_v55 = vor.u32 %v8100_v50, %v6843_v52 }
 0x28f   : > { %2632 = vmatmul.bf16.vlgmr.msrb.gmra.mxu1 %v2272_v62  ;;  %v2919_v41 = vpack.c.bf16 %v2917_v36, %v2915_v35  ;;  %v2955_v43 = vrot.slane %v2918_v38, 1  ;;  %v8098_v58 = vld [vmem:[#allocation16 + $0xe4] sm:$0xf]  ;;  %v6825_v61 = vld [vmem:[#allocation16 + $0xd0] sm:$0xf]  ;;  %v6794_v52 = vor.u32 %v8089_v49, %v6793_v48 }
 0x290   : > { %3224 = vmatpush.bf16.msrb.mxu1 %v8069_v26  ;;  %v2382_v7 = vrot.slane %v2380_v1, 1  ;;  %v2387_v8 = vshll.u32 %v2343_v2, 16  ;;  %v2385_v4 = vshrl.u32 %v2343_v2, 16  ;;  %v6835_v26 = vld [vmem:[#allocation16 + $0xe8] sm:$0xf0] }
 0x291   : > { %v2956_v44 = vrot.slane %v2919_v41, 1  ;;  %v6838_v53 = vor.u32 %v8098_v58, %v6835_v26  ;;  %v8096_v63 = vld [vmem:[#allocation16 + $0xd4] sm:$0xf]  ;;  %v6827_v2 = vld [vmem:[#allocation16 + $0xd8] sm:$0xf0] }
 0x292   : > { %3212 = vmatpush.bf16.msrb.mxu0 %v8060_v0  ;;  %v2383_v3 = vor.u32 %v2382_v7, %v2378_v6  ;;  %v2389_v10 = vrot.slane %v2387_v8, 1  ;;  %v6817_v7 = vld [vmem:[#allocation16 + $0xc0] sm:$0xf]  ;;  %v8095_v8 = vld [vmem:[#allocation16 + $0xc4] sm:$0xf0] }
 0x293   : > { %v6899_v31 = vld [vmem:[#allocation16 + $0x68] sm:$0xf0]  ;;  %v8090_v35 = vld [vmem:[#allocation16 + $0xa4] sm:$0xf]  ;;  %v8088_v50 = vld [vmem:[#allocation16 + $0x94] sm:$0xf] }
 0x294   : > { %3225 = vmatpush.bf16.msrb.mxu1 %v8068_v5  ;;  %2497 = vmatmul.bf16.vlgmr.msra.gmra.mxu2 %v2383_v3  ;;  %v2390_v13 = vor.u32 %v2389_v10, %v2385_v4  ;;  %v6830_v5 = vor.u32 %v8096_v63, %v6827_v2  ;;  %v6819_v4 = vld [vmem:[#allocation16 + $0xc8] sm:$0xf0]  ;;  %v8078_v26 = vld [vmem:[#allocation16 + $0x44] sm:$0xf] }
 0x295   : > { %3055 = vmatpush.bf16.msra.mxu2 %v8045_v9  ;;  %v8094_v9 = vld [vmem:[#allocation16 + $0xc4] sm:$0xf]  ;;  %v6803_v38 = vld [vmem:[#allocation16 + $0xa8] sm:$0xf0] }
 0x296   : > { %2510 = vmatmul.bf16.vlgmr.msra.gmra.mxu3 %v2390_v13  ;;  %3213 = vmatpush.bf16.msrb.mxu0 %v8059_v11  ;;  %v6822_v10 = vor.u32 %v8094_v9, %v6819_v4  ;;  %v6806_v41 = vor.u32 %v8090_v35, %v6803_v38  ;;  %v6787_v2 = vld [vmem:[#allocation16 + $0x88] sm:$0xf0]  ;;  %v6875_v4 = vld [vmem:[#allocation16 + $0x38] sm:$0xf0]  ;;  %v6857_v35 = vld [vmem:[#allocation16 + $0x10] sm:$0xf] }
 0x297   : > { %3068 = vmatpush.bf16.msra.mxu3 %v8053_v12  ;;  %v6905_v12 = vld [vmem:[#allocation16 + $0x70] sm:$0xf] }
 0x298   : > { %3226 = vmatpush.bf16.msrb.mxu1 %v8067_v16  ;;  %v8084_v16 = vld [vmem:[#allocation16 + $0x74] sm:$0xf] }
 0x299   : > { %3056 = vmatpush.bf16.msra.mxu2 %v8044_v17 }
 0x29a   : > { %3214 = vmatpush.bf16.msrb.mxu0 %v8058_v18  ;;  %v6907_v18 = vld [vmem:[#allocation16 + $0x78] sm:$0xf0] }
 0x29b   : > { %3069 = vmatpush.bf16.msra.mxu3 %v8052_v59 }
 0x29c   : > { %3227 = vmatpush.bf16.msrb.mxu1 %v8066_v19  ;;  %v6910_v19 = vor.u32 %v8084_v16, %v6907_v18  ;;  %v8116_v18 = vld [vmem:[#allocation16 + $0x174] sm:$0xf] }
 0x29d   : > { %3057 = vmatpush.bf16.msra.mxu2 %v8043_v21  ;;  %2896 = vmatmul.bf16.vlgmr.msra.gmra.mxu0 %v2271_v57  ;;  %v8099_v57 = vld [vmem:[#allocation16 + $0xe4] sm:$0xf0] }
 0x29e   : > { %3215 = vmatpush.bf16.msrb.mxu0 %v8057_v22  ;;  %v6834_v60 = vor.u32 %v8099_v57, %v6833_v56  ;;  %v6809_v22 = vld [vmem:[#allocation16 + $0xb0] sm:$0xf]  ;;  %v6881_v56 = vld [vmem:[#allocation16 + $0x40] sm:$0xf]  ;;  %v8079_v57 = vld [vmem:[#allocation16 + $0x44] sm:$0xf0] }
 0x29f   : > { %3070 = vmatpush.bf16.msra.mxu3 %v8051_v23  ;;  %2909 = vmatmul.bf16.vlgmr.msra.gmra.mxu1 %v2272_v62  ;;  %v8097_v62 = vld [vmem:[#allocation16 + $0xd4] sm:$0xf0] }
 0x2a0   : > { %3228 = vmatpush.bf16.msrb.mxu1 %v8065_v24  ;;  %v6826_v1 = vor.u32 %v8097_v62, %v6825_v61  ;;  %v8093_v23 = vld [vmem:[#allocation16 + $0xb4] sm:$0xf0]  ;;  %v8092_v24 = vld [vmem:[#allocation16 + $0xb4] sm:$0xf]  ;;  %v6785_v61 = vld [vmem:[#allocation16 + $0x80] sm:$0xf] }
 0x2a1   : > { %3058 = vmatpush.bf16.msra.mxu2 %v8042_v25  ;;  %v6810_v25 = vor.u32 %v8093_v23, %v6809_v22  ;;  %v6865_v22 = vld [vmem:[#allocation16 + $0x20] sm:$0xf] }
 0x2a2   : > { %3216 = vmatpush.bf16.msrb.mxu0 %v8056_v14  ;;  %v6811_v14 = vld [vmem:[#allocation16 + $0xb8] sm:$0xf0] }
 0x2a3   : > { %3071 = vmatpush.bf16.msra.mxu3 %v8050_v15  ;;  %v6897_v15 = vld [vmem:[#allocation16 + $0x60] sm:$0xf] }
 0x2a4   : > { %3229 = vmatpush.bf16.msrb.mxu1 %v8064_v27  ;;  %2774 = vmatmul.bf16.vlgmr.msrb.gmra.mxu2 %v2383_v3  ;;  %v6818_v3 = vor.u32 %v8095_v8, %v6817_v7  ;;  %v8083_v27 = vld [vmem:[#allocation16 + $0x64] sm:$0xf0]  ;;  %v8077_v7 = vld [vmem:[#allocation16 + $0x34] sm:$0xf0]  ;;  %v8076_v8 = vld [vmem:[#allocation16 + $0x34] sm:$0xf] }
 0x2a5   : > { %3059 = vmatpush.bf16.msra.mxu2 %v8041_v28  ;;  %v6878_v16 = vor.u32 %v8076_v8, %v6875_v4 }
 0x2a6   : > { %2787 = vmatmul.bf16.vlgmr.msrb.gmra.mxu3 %v2390_v13  ;;  %3217 = vmatpush.bf16.msrb.mxu0 %v8055_v29  ;;  %v8085_v13 = vld [vmem:[#allocation16 + $0x74] sm:$0xf0]  ;;  %v6814_v29 = vor.u32 %v8092_v24, %v6811_v14  ;;  %v8075_v24 = vld [vmem:[#allocation16 + $0x24] sm:$0xf0]  ;;  %v6867_v14 = vld [vmem:[#allocation16 + $0x28] sm:$0xf0] }
 0x2a7   : > { %3072 = vmatpush.bf16.msra.mxu3 %v8049_v30  ;;  %v6906_v17 = vor.u32 %v8085_v13, %v6905_v12  ;;  %v6898_v30 = vor.u32 %v8083_v27, %v6897_v15  ;;  %v8117_v12 = vld [vmem:[#allocation16 + $0x174] sm:$0xf0]  ;;  %v6961_v27 = vld [vmem:[#allocation16 + $0x160] sm:$0xf] }
 0x2a8   : > { %3230 = vmatpush.bf16.msrb.mxu1 %v8063_v20  ;;  %v8082_v20 = vld [vmem:[#allocation16 + $0x64] sm:$0xf] }
 0x2a9   : > { %3060 = vmatpush.bf16.msra.mxu2 %v8040_v33  ;;  %v6902_v32 = vor.u32 %v8082_v20, %v6899_v31  ;;  %v6801_v33 = vld [vmem:[#allocation16 + $0xa0] sm:$0xf]  ;;  %v6866_v31 = vor.u32 %v8075_v24, %v6865_v22 }
 0x2aa   : > { %3218 = vmatpush.bf16.msrb.mxu0 %v8054_v34  ;;  %v8091_v34 = vld [vmem:[#allocation16 + $0xa4] sm:$0xf0] }
 0x2ab   : > { %3073 = vmatpush.bf16.msra.mxu3 %v8048_v37  ;;  %v6802_v37 = vor.u32 %v8091_v34, %v6801_v33 }
 0x2ac   : > { %3231 = vmatpush.bf16.msrb.mxu1 %v8062_v39  ;;  %v6889_v39 = vld [vmem:[#allocation16 + $0x50] sm:$0xf] }
 0x2ad   : > { %3061 = vmatpush.bf16.msra.mxu2 %v8039_v40  ;;  %3219 = vmatmul.bf16.vlgmr.msrb.gmra.mxu0 %v2955_v43  ;;  %v8081_v40 = vld [vmem:[#allocation16 + $0x54] sm:$0xf0] }
 0x2ae   : > { %3475 = vmatpush.bf16.msra.mxu0 %v6906_v17 }
 0x2af   : > { %3074 = vmatpush.bf16.msra.mxu3 %v8047_v42  ;;  %3232 = vmatmul.bf16.vlgmr.msrb.gmra.mxu1 %v2956_v44  ;;  %v6890_v42 = vor.u32 %v8081_v40, %v6889_v39  ;;  %v6859_v40 = vld [vmem:[#allocation16 + $0x18] sm:$0xf0] }
 0x2b0   : > { %3488 = vmatpush.bf16.msra.mxu1 %v6910_v19  ;;  %v6971_v19 = vld [vmem:[#allocation16 + $0x178] sm:$0xf0] }
 0x2b1   : > { %3062 = vmatpush.bf16.msra.mxu2 %v8038_v45  ;;  %v6974_v23 = vor.u32 %v8116_v18, %v6971_v19  ;;  %v8107_v18 = vld [vmem:[#allocation16 + $0x124] sm:$0xf0]  ;;  %v8106_v19 = vld [vmem:[#allocation16 + $0x124] sm:$0xf] }
 0x2b2   : > { %3476 = vmatpush.bf16.msra.mxu0 %v6898_v30  ;;  %v8114_v30 = vld [vmem:[#allocation16 + $0x164] sm:$0xf] }
 0x2b3   : > { %3075 = vmatpush.bf16.msra.mxu3 %v8046_v46 }
 0x2b4   : > { %3063 = vmatmul.bf16.vlgmr.msra.gmra.mxu2 %v2955_v43  ;;  %3489 = vmatpush.bf16.msra.mxu1 %v6902_v32  ;;  %v8080_v43 = vld [vmem:[#allocation16 + $0x54] sm:$0xf]  ;;  %v6963_v32 = vld [vmem:[#allocation16 + $0x168] sm:$0xf0] }
 0x2b5   : > { %3369 = vmatpush.bf16.msrb.mxu2 %v6842_v51  ;;  %v6966_v39 = vor.u32 %v8114_v30, %v6963_v32  ;;  %v6923_v30 = vld [vmem:[#allocation16 + $0x118] sm:$0xf0] }
 0x2b6   : > { %3076 = vmatmul.bf16.vlgmr.msra.gmra.mxu3 %v2956_v44  ;;  %v6891_v44 = vld [vmem:[#allocation16 + $0x58] sm:$0xf0]  ;;  %3477 = vmatpush.bf16.msra.mxu0 %v6890_v42  ;;  %v8113_v42 = vld [vmem:[#allocation16 + $0x154] sm:$0xf0] }
 0x2b7   : > { %3382 = vmatpush.bf16.msrb.mxu3 %v6846_v55  ;;  %v6894_v46 = vor.u32 %v8080_v43, %v6891_v44  ;;  %v6795_v55 = vld [vmem:[#allocation16 + $0x98] sm:$0xf0]  ;;  %v8112_v43 = vld [vmem:[#allocation16 + $0x154] sm:$0xf] }
 0x2b8   : > { %v6798_v58 = vor.u32 %v8088_v50, %v6795_v55  ;;  %v6955_v44 = vld [vmem:[#allocation16 + $0x158] sm:$0xf0]  ;;  %v6849_v50 = vld [vmem:[#allocation16] sm:$0xf] }
 0x2b9   : > { %3370 = vmatpush.bf16.msrb.mxu2 %v6834_v60  ;;  %3490 = vmatpush.bf16.msra.mxu1 %v6894_v46  ;;  %v6882_v60 = vor.u32 %v8079_v57, %v6881_v56  ;;  %v6958_v56 = vor.u32 %v8112_v43, %v6955_v44  ;;  %v6851_v57 = vld [vmem:[#allocation16 + $0x8] sm:$0xf0]  ;;  %v8157_v44 = vld [vmem:[#allocation18 + $0xb8] sm:$0xff] }
 0x2bb   : > { %3383 = vmatpush.bf16.msrb.mxu3 %v6838_v53  ;;  %v6883_v53 = vld [vmem:[#allocation16 + $0x48] sm:$0xf0]  ;;  %3478 = vmatpush.bf16.msra.mxu0 %v6882_v60  ;;  %v8111_v60 = vld [vmem:[#allocation16 + $0x144] sm:$0xf0] }
 0x2bc   : > { %v6886_v63 = vor.u32 %v8078_v26, %v6883_v53  ;;  %v8110_v53 = vld [vmem:[#allocation16 + $0x144] sm:$0xf] }
 0x2bd   : > { %3371 = vmatpush.bf16.msrb.mxu2 %v6826_v1  ;;  %v8086_v1 = vld [vmem:[#allocation16 + $0x84] sm:$0xf] }
 0x2be   : > { %v6790_v9 = vor.u32 %v8086_v1, %v6787_v2  ;;  %3491 = vmatpush.bf16.msra.mxu1 %v6886_v63 }
 0x2bf   : > { %3384 = vmatpush.bf16.msrb.mxu3 %v6830_v5 }
 0x2c1   : > { %3372 = vmatpush.bf16.msrb.mxu2 %v6818_v3 }
 0x2c2   : > { %3492 = vmatpush.bf16.msra.mxu1 %v6878_v16 }
 0x2c3   : > { %3385 = vmatpush.bf16.msrb.mxu3 %v6822_v10  ;;  %v6969_v10 = vld [vmem:[#allocation16 + $0x170] sm:$0xf] }
 0x2c4   : > { %v6970_v17 = vor.u32 %v8117_v12, %v6969_v10 }
 0x2c5   : > { %3373 = vmatpush.bf16.msrb.mxu2 %v6810_v25  ;;  %v8074_v25 = vld [vmem:[#allocation16 + $0x24] sm:$0xf] }
 0x2c6   : > { %v6870_v33 = vor.u32 %v8074_v25, %v6867_v14 }
 0x2c7   : > { %3386 = vmatpush.bf16.msrb.mxu3 %v6814_v29  ;;  %v8115_v29 = vld [vmem:[#allocation16 + $0x164] sm:$0xf0] }
 0x2c8   : > { %v6962_v34 = vor.u32 %v8115_v29, %v6961_v27  ;;  %3493 = vmatpush.bf16.msra.mxu1 %v6870_v33  ;;  %v8105_v27 = vld [vmem:[#allocation16 + $0x114] sm:$0xf0]  ;;  %v8104_v29 = vld [vmem:[#allocation16 + $0x114] sm:$0xf] }
 0x2c9   : > { %3374 = vmatpush.bf16.msrb.mxu2 %v6802_v37  ;;  %v8072_v37 = vld [vmem:[#allocation16 + $0x14] sm:$0xf]  ;;  %v6926_v33 = vor.u32 %v8104_v29, %v6923_v30  ;;  %v8147_v29 = vld [vmem:[#allocation18 + $0x1e8] sm:$0xff] }
 0x2ca   : > { %v6862_v48 = vor.u32 %v8072_v37, %v6859_v40  ;;  %v6915_v37 = vld [vmem:[#allocation16 + $0x108] sm:$0xf0]  ;;  %v8464_v40 = vld [vmem:[%s9724_s8] ss:$0 sm:$0xff]  ;;  %v8172_v30 = vld [vmem:[#allocation18 + $0x230] sm:$0xff] }
 0x2cb   : > { %3387 = vmatpush.bf16.msrb.mxu3 %v6806_v41  ;;  %v6953_v41 = vld [vmem:[#allocation16 + $0x150] sm:$0xf] }
 0x2cc   : > { %v6954_v49 = vor.u32 %v8113_v42, %v6953_v41  ;;  %3494 = vmatpush.bf16.msra.mxu1 %v6862_v48  ;;  %v8156_v48 = vld [vmem:[#allocation18 + $0xb0] sm:$0xff] }
 0x2cd   : > { %3375 = vmatpush.bf16.msrb.mxu2 %v6794_v52  ;;  %v8070_v52 = vld [vmem:[#allocation16 + $0x4] sm:$0xf] }
 0x2ce   : > { %v6854_v1 = vor.u32 %v8070_v52, %v6851_v57  ;;  %v8163_v52 = vld [vmem:[#allocation18 + $0xe8] sm:$0xff] }
 0x2cf   : > { %3388 = vmatpush.bf16.msrb.mxu3 %v6798_v58  ;;  %v6945_v58 = vld [vmem:[#allocation16 + $0x140] sm:$0xf] }
 0x2d0   : > { %v6946_v2 = vor.u32 %v8111_v60, %v6945_v58  ;;  %3495 = vmatpush.bf16.msra.mxu1 %v6854_v1  ;;  %v8125_v60 = vld [vmem:[#allocation18 + $0x38] sm:$0xff]  ;;  %v8130_v1 = vld [vmem:[#allocation18 + $0x60] sm:$0xff] }
 0x2d3   : > { %3389 = vmatpush.bf16.msrb.mxu3 %v6790_v9 }
 0x2d7   : > { %3613 = vmatpush.bf16.msra.mxu3 %v6974_v23  ;;  %v6931_v23 = vld [vmem:[#allocation16 + $0x128] sm:$0xf0] }
 0x2db   : > { %3614 = vmatpush.bf16.msra.mxu3 %v6966_v39 }
 0x2df   : > { %3615 = vmatpush.bf16.msra.mxu3 %v6958_v56 }
 0x30a   : > { %v9402_v47 = vpop.f32.mrf.mxu0 }
 0x30c   : > { %v9404_v54 = vpop.f32.mrf.mxu1 }
 0x312   : > { %v2622_v0 = vpop.f32.mrf.mxu0 }
 0x313   : > { %v8087_v0 = vld [vmem:[#allocation16 + $0x84] sm:$0xf0] }
 0x314   : > { %v2635_v6 = vpop.f32.mrf.mxu1  ;;  %v6786_v5 = vor.u32 %v8087_v0, %v6785_v61  ;;  %v6947_v61 = vld [vmem:[#allocation16 + $0x148] sm:$0xf0] }
 0x315   : > { %v6873_v6 = vld [vmem:[#allocation16 + $0x30] sm:$0xf] }
 0x316   : > { %v6874_v3 = vor.u32 %v8077_v7, %v6873_v6  ;;  %3376 = vmatpush.bf16.msrb.mxu2 %v6786_v5  ;;  %v6950_v7 = vor.u32 %v8110_v53, %v6947_v61  ;;  %v8124_v53 = vld [vmem:[#allocation18 + $0x30] sm:$0xff] }
 0x317   : > { %v9406_v11 = vpop.f32.mrf.mxu2  ;;  %v8132_v61 = vld [vmem:[#allocation18 + $0x70] sm:$0xff] }
 0x318   : > { %3479 = vmatpush.bf16.msra.mxu0 %v6874_v3  ;;  %v6937_v3 = vld [vmem:[#allocation16 + $0x130] sm:$0xf]  ;;  %3616 = vmatpush.bf16.msra.mxu3 %v6950_v7  ;;  %v8129_v7 = vld [vmem:[#allocation18 + $0x58] sm:$0xff] }
 0x319   : > { %v9408_v59 = vpop.f32.mrf.mxu3 }
 0x31a   : > { %v9410_v21 = vpop.f32.mrf.mxu0  ;;  %3600 = vmatpush.bf16.msra.mxu2 %v6970_v17  ;;  %v6929_v17 = vld [vmem:[#allocation16 + $0x120] sm:$0xf] }
 0x31b   : > { %v6930_v24 = vor.u32 %v8107_v18, %v6929_v17  ;;  %v8126_v17 = vld [vmem:[#allocation18 + $0x40] sm:$0xff]  ;;  %v8141_v18 = vld [vmem:[#allocation18 + $0x1b8] sm:$0xff] }
 0x31c   : > { %v9412_v28 = vpop.f32.mrf.mxu1  ;;  %3480 = vmatpush.bf16.msra.mxu0 %v6866_v31 }
 0x31e   : > { %3601 = vmatpush.bf16.msra.mxu2 %v6962_v34  ;;  %v8103_v34 = vld [vmem:[#allocation16 + $0x104] sm:$0xf0] }
 0x31f   : > { %v2500_v36 = vpop.f32.mrf.mxu2 }
 0x320   : > { %v8073_v36 = vld [vmem:[#allocation16 + $0x14] sm:$0xf0] }
 0x321   : > { %v2513_v45 = vpop.f32.mrf.mxu3 }
 0x322   : > { %v2899_v51 = vpop.f32.mrf.mxu0  ;;  %v6858_v45 = vor.u32 %v8073_v36, %v6857_v35  ;;  %3602 = vmatpush.bf16.msra.mxu2 %v6954_v49  ;;  %v8102_v36 = vld [vmem:[#allocation16 + $0x104] sm:$0xf]  ;;  %v8164_v49 = vld [vmem:[#allocation18 + $0xf0] sm:$0xff] }
 0x323   : > { %v8071_v51 = vld [vmem:[#allocation16 + $0x4] sm:$0xf0]  ;;  %v6918_v39 = vor.u32 %v8102_v36, %v6915_v37  ;;  %v8170_v36 = vld [vmem:[#allocation18 + $0x220] sm:$0xff] }
 0x324   : > { %v2912_v62 = vpop.f32.mrf.mxu1  ;;  %3481 = vmatpush.bf16.msra.mxu0 %v6858_v45  ;;  %v6850_v0 = vor.u32 %v8071_v51, %v6849_v50  ;;  %v8165_v45 = vld [vmem:[#allocation18 + $0xf8] sm:$0xff]  ;;  %v8155_v51 = vld [vmem:[#allocation18 + $0xa8] sm:$0xff]  ;;  %v8178_v37 = vld [vmem:[#allocation18 + $0x260] sm:$0xff] }
 0x325   : > { %v2512_v62 = vadd.f32 %v9408_v59, %v9406_v11  ;;  %v8109_v11 = vld [vmem:[#allocation16 + $0x134] sm:$0xf0]  ;;  %v8108_v59 = vld [vmem:[#allocation16 + $0x134] sm:$0xf]  ;;  %3882 = vmatpush.bf16.msrb.mxu1 %v8165_v45  ;;  %v8143_v45 = vld [vmem:[#allocation18 + $0x1c8] sm:$0xff] }
 0x326   : > { %3603 = vmatpush.bf16.msra.mxu2 %v6946_v2  ;;  %v6938_v12 = vor.u32 %v8109_v11, %v6937_v3  ;;  %v8120_v3 = vld [vmem:[#allocation18 + $0x10] sm:$0xff] }
 0x327   : > { %v2775_v13 = vpop.f32.mrf.mxu2  ;;  %v2621_v8 = vadd.f32 %v9402_v47, %v2512_v62  ;;  %v8123_v62 = vld [vmem:[#allocation18 + $0x28] sm:$0xff]  ;;  %v8128_v11 = vld [vmem:[#allocation18 + $0x50] sm:$0xff] }
 0x328   : > { %3482 = vmatpush.bf16.msra.mxu0 %v6850_v0  ;;  %v8122_v0 = vld [vmem:[#allocation18 + $0x20] sm:$0xff] }
 0x329   : > { %v2788_v15 = vpop.f32.mrf.mxu3  ;;  %v2634_v47 = vadd.f32 %v9404_v54, %v2621_v8  ;;  %v6913_v54 = vld [vmem:[#allocation16 + $0x100] sm:$0xf]  ;;  %3883 = vmatpush.bf16.msrb.mxu1 %v8164_v49 }
 0x32a   : > { %v3220_v20 = vpop.f32.mrf.mxu0  ;;  %v2789_v55 = vadd.f32 %v2788_v15, %v2775_v13  ;;  %v6939_v13 = vld [vmem:[#allocation16 + $0x138] sm:$0xf0]  ;;  %3604 = vmatpush.bf16.msra.mxu2 %v6938_v12  ;;  %v6934_v15 = vor.u32 %v8106_v19, %v6931_v23  ;;  %v8154_v8 = vld [vmem:[#allocation18 + $0xa0] sm:$0xff]  ;;  %v8127_v12 = vld [vmem:[#allocation18 + $0x48] sm:$0xff] }
 0x32b   : > { %v8149_v19 = vld [vmem:[#allocation18 + $0x1f8] sm:$0xff]  ;;  %v8140_v23 = vld [vmem:[#allocation18 + $0x1b0] sm:$0xff] }
 0x32c   : > { %v3233_v38 = vpop.f32.mrf.mxu1  ;;  %v2898_v5 = vadd.f32 %v9410_v21, %v2789_v55  ;;  %v6942_v21 = vor.u32 %v8108_v59, %v6939_v13  ;;  %3869 = vmatpush.bf16.msrb.mxu0 %v8157_v44  ;;  %v8153_v59 = vld [vmem:[#allocation18 + $0x98] sm:$0xff]  ;;  %v8152_v13 = vld [vmem:[#allocation18 + $0x90] sm:$0xff]  ;;  %v8135_v44 = vld [vmem:[#allocation18 + $0x188] sm:$0xff] }
 0x32d   : > { %v3234_v10 = vadd.f32 %v3233_v38, %v3220_v20  ;;  %v6914_v38 = vor.u32 %v8103_v34, %v6913_v54  ;;  %3884 = vmatpush.bf16.msrb.mxu1 %v8163_v52  ;;  %v8179_v54 = vld [vmem:[#allocation18 + $0x268] sm:$0xff]  ;;  %v8137_v34 = vld [vmem:[#allocation18 + $0x198] sm:$0xff]  ;;  %v8142_v52 = vld [vmem:[#allocation18 + $0x1c0] sm:$0xff] }
 0x32e   : > { %v2911_v4 = vadd.f32 %v9412_v28, %v2898_v5  ;;  %3617 = vmatpush.bf16.msra.mxu3 %v6942_v21  ;;  %v6921_v28 = vld [vmem:[#allocation16 + $0x110] sm:$0xf]  ;;  %3605 = vmatpush.bf16.msra.mxu2 %v6930_v24  ;;  %v8118_v21 = vld [vmem:[#allocation18] sm:$0xff] }
 0x32f   : > { %v2777_v46 = vpop.f32.mrf.mxu2  ;;  %v6922_v32 = vor.u32 %v8105_v27, %v6921_v28  ;;  %v8148_v24 = vld [vmem:[#allocation18 + $0x1f0] sm:$0xff]  ;;  %v8181_v28 = vld [vmem:[#allocation18 + $0x278] sm:$0xff]  ;;  %v8139_v27 = vld [vmem:[#allocation18 + $0x1a8] sm:$0xff] }
 0x330   : > { %v3237_v25 = vadd.f32 %v3234_v10, %v2911_v4  ;;  %3870 = vmatpush.bf16.msrb.mxu0 %v8156_v48  ;;  %v8161_v4 = vld [vmem:[#allocation18 + $0xd8] sm:$0xff]  ;;  %v8119_v10 = vld [vmem:[#allocation18 + $0x8] sm:$0xff]  ;;  %v8176_v48 = vld [vmem:[#allocation18 + $0x250] sm:$0xff] }
 0x331   : > { %v2790_v26 = vpop.f32.mrf.mxu3 }
 0x332   : > { %v3222_v63 = vpop.f32.mrf.mxu0  ;;  %3618 = vmatpush.bf16.msra.mxu3 %v6934_v15  ;;  %3606 = vmatpush.bf16.msra.mxu2 %v6922_v32  ;;  %v8133_v26 = vld [vmem:[#allocation18 + $0x78] sm:$0xff]  ;;  %v8146_v32 = vld [vmem:[#allocation18 + $0x1e0] sm:$0xff] }
 0x333   : > { %v8131_v63 = vld [vmem:[#allocation18 + $0x68] sm:$0xff]  ;;  %v8173_v15 = vld [vmem:[#allocation18 + $0x238] sm:$0xff] }
 0x334   : > { %v3235_v6 = vpop.f32.mrf.mxu1  ;;  %3871 = vmatpush.bf16.msrb.mxu0 %v8155_v51  ;;  %v8134_v51 = vld [vmem:[#allocation18 + $0x180] sm:$0xff] }
 0x335   : > { %v8121_v6 = vld [vmem:[#allocation18 + $0x18] sm:$0xff] }
 0x336   : > { %3619 = vmatpush.bf16.msra.mxu3 %v6926_v33  ;;  %3607 = vmatpush.bf16.msra.mxu2 %v6914_v38  ;;  %v8171_v33 = vld [vmem:[#allocation18 + $0x228] sm:$0xff]  ;;  %v8136_v38 = vld [vmem:[#allocation18 + $0x190] sm:$0xff] }
 0x337   : > { %v3064_v9 = vpop.f32.mrf.mxu2 }
 0x338   : > { %3872 = vmatpush.bf16.msrb.mxu0 %v8154_v8 }
 0x339   : > { %v3077_v16 = vpop.f32.mrf.mxu3 }
 0x33a   : > { %v3078_v22 = vadd.f32 %v3077_v16, %v3064_v9  ;;  %3620 = vmatpush.bf16.msra.mxu3 %v6918_v39  ;;  %v8162_v9 = vld [vmem:[#allocation18 + $0xe0] sm:$0xff]  ;;  %v8160_v16 = vld [vmem:[#allocation18 + $0xd0] sm:$0xff] }
 0x33b   : > { %3885 = vmatpush.bf16.msrb.mxu1 %v8162_v9  ;;  %v8144_v39 = vld [vmem:[#allocation18 + $0x1d0] sm:$0xff] }
 0x33c   : > { %v3081_v14 = vadd.f32 %v3078_v22, %v2634_v47  ;;  %3873 = vmatpush.bf16.msrb.mxu0 %v8153_v59  ;;  %v8151_v47 = vld [vmem:[#allocation18 + $0x88] sm:$0xff] }
 0x33d   : > { %v8159_v22 = vld [vmem:[#allocation18 + $0xc8] sm:$0xff] }
 0x33e   : > { %v3238_v20 = vmax.f32 %v3081_v14, %v3237_v25  ;;  %v8150_v25 = vld [vmem:[#allocation18 + $0x80] sm:$0xff] }
 0x33f   : > { %v3066_v31 = vpop.f32.mrf.mxu2  ;;  %3886 = vmatpush.bf16.msrb.mxu1 %v8161_v4  ;;  %v8158_v14 = vld [vmem:[#allocation18 + $0xc0] sm:$0xff] }
 0x340   : > { %3239 = vst [vmem:[#allocation9] sm:$0xff] %v3238_v20  ;;  %3874 = vmatpush.bf16.msrb.mxu0 %v8152_v13  ;;  %v8180_v20 = vld [vmem:[#allocation18 + $0x270] sm:$0xff]  ;;  %v8138_v31 = vld [vmem:[#allocation18 + $0x1a0] sm:$0xff] }
 0x341   : > { %v3079_v35 = vpop.f32.mrf.mxu3 }
 0x342   : > { %v8145_v35 = vld [vmem:[#allocation18 + $0x1d8] sm:$0xff] }
 0x343   : > { %3887 = vmatpush.bf16.msrb.mxu1 %v8160_v16 }
 0x344   : > { %3875 = vmatpush.bf16.msrb.mxu0 %v8151_v47  ;;  %v8213_v47 = vld [vmem:[#allocation18 + $0x2f8] sm:$0xff] }
 0x347   : > { %v3240_v41 = vld [vmem:[#allocation9] ss:$2 sm:$0xf]  ;;  %v3241_v42 = vld [vmem:[#allocation9 + $0x1] ss:$2 sm:$0xf]  ;;  %3888 = vmatpush.bf16.msrb.mxu1 %v8159_v22 }
 0x348   : > { %v3242_v43 = vmax.f32 %v3240_v41, %v3241_v42  ;;  %3876 = vmatpush.bf16.msrb.mxu0 %v8150_v25 }
 0x34a   : > { %v3247_v46 = vadd.f32 %v8464_v40, %v3242_v43  ;;  %v8169_v40 = vld [vmem:[#allocation18 + $0x218] sm:$0xff] }
 0x34b   : > { %3889 = vmatpush.bf16.msrb.mxu1 %v8158_v14  ;;  %v8177_v43 = vld [vmem:[#allocation18 + $0x258] sm:$0xff] }
 0x34c   : > { %v3248_v50 = vmax.f32 %v3247_v46, 0.0  ;;  %v8168_v46 = vld [vmem:[#allocation18 + $0x210] sm:$0xff] }
 0x34e   : > { %3251 = vst [vmem:[#allocation5 + $0x1] sm:$0xf] %v3248_v50 }
 0x355   : > { %v3270_v55 = vld [vmem:[#allocation5 + $0x1] sm:$0xf] }
 0x356   : > { %v3252_v56 = vld [vmem:[#allocation5] sm:$0xf]  ;;  %v3271_v57 = vpack.c.bf16 %v3270_v55, %v3270_v55 }
 0x357   : > { %v3253_v58 = vpack.c.bf16 %v3252_v56, %v3252_v56  ;;  %v3501_v2 = vld [vmem:[#allocation5 + $0x2] sm:$0xf] }
 0x358   : > { %3377 = vmatmul.bf16.vlgmr.msrb.gmra.mxu2 %v3271_v57  ;;  %3390 = vmatmul.bf16.vlgmr.msrb.gmra.mxu3 %v3271_v57  ;;  %v3502_v5 = vpack.c.bf16 %v3501_v2, %v3501_v2  ;;  %v8167_v57 = vld [vmem:[#allocation18 + $0x208] sm:$0xff] }
 0x359   : > { %3483 = vmatmul.bf16.vlgmr.msra.gmra.mxu0 %v3253_v58  ;;  %3496 = vmatmul.bf16.vlgmr.msra.gmra.mxu1 %v3253_v58  ;;  %v8175_v58 = vld [vmem:[#allocation18 + $0x248] sm:$0xff] }
 0x35a   : > { %3991 = vmatpush.bf16.msrb.mxu2 %v8125_v60  ;;  %4004 = vmatpush.bf16.msrb.mxu3 %v8133_v26 }
 0x35b   : > { %4146 = vmatpush.bf16.msra.mxu0 %v8173_v15  ;;  %4159 = vmatpush.bf16.msra.mxu1 %v8181_v28  ;;  %v8204_v15 = vld [vmem:[#allocation18 + $0x2b0] sm:$0xff] }
 0x35e   : > { %3992 = vmatpush.bf16.msrb.mxu2 %v8124_v53  ;;  %4005 = vmatpush.bf16.msrb.mxu3 %v8132_v61  ;;  %v8166_v53 = vld [vmem:[#allocation18 + $0x200] sm:$0xff] }
 0x35f   : > { %4147 = vmatpush.bf16.msra.mxu0 %v8172_v30  ;;  %4160 = vmatpush.bf16.msra.mxu1 %v8180_v20  ;;  %v8174_v61 = vld [vmem:[#allocation18 + $0x240] sm:$0xff] }
 0x362   : > { %3993 = vmatpush.bf16.msrb.mxu2 %v8123_v62  ;;  %4006 = vmatpush.bf16.msrb.mxu3 %v8131_v63  ;;  %v3628_v62 = vld [vmem:[%s9726_s10] sm:$0x3] }
 0x363   : > { %4148 = vmatpush.bf16.msra.mxu0 %v8171_v33  ;;  %4161 = vmatpush.bf16.msra.mxu1 %v8179_v54  ;;  %v3631_v2 = vperm.slane %v3628_v62, 1  ;;  %v8197_v54 = vld [vmem:[#allocation18 + $0x178] sm:$0xff] }
 0x366   : > { %3994 = vmatpush.bf16.msrb.mxu2 %v8122_v0  ;;  %4007 = vmatpush.bf16.msrb.mxu3 %v8130_v1  ;;  %v3630_v1 = vperm.slane %v3628_v62, 0  ;;  %v8183_v62 = vld [vmem:[#allocation18 + $0x108] sm:$0xff] }
 0x367   : > { %4149 = vmatpush.bf16.msra.mxu0 %v8170_v36  ;;  %4162 = vmatpush.bf16.msra.mxu1 %v8178_v37  ;;  %v8211_v36 = vld [vmem:[#allocation18 + $0x2e8] sm:$0xff]  ;;  %v8188_v37 = vld [vmem:[#allocation18 + $0x130] sm:$0xff] }
 0x368   : > { %3608 = vmatmul.bf16.vlgmr.msra.gmra.mxu2 %v3502_v5  ;;  %3621 = vmatmul.bf16.vlgmr.msra.gmra.mxu3 %v3502_v5 }
 0x36a   : > { %3995 = vmatpush.bf16.msrb.mxu2 %v8121_v6  ;;  %4008 = vmatpush.bf16.msrb.mxu3 %v8129_v7 }
 0x36b   : > { %4150 = vmatpush.bf16.msra.mxu0 %v8169_v40  ;;  %4163 = vmatpush.bf16.msra.mxu1 %v8177_v43  ;;  %v8210_v40 = vld [vmem:[#allocation18 + $0x2e0] sm:$0xff]  ;;  %v8201_v43 = vld [vmem:[#allocation18 + $0x298] sm:$0xff] }
 0x36e   : > { %3996 = vmatpush.bf16.msrb.mxu2 %v8120_v3  ;;  %4009 = vmatpush.bf16.msrb.mxu3 %v8128_v11 }
 0x36f   : > { %4151 = vmatpush.bf16.msra.mxu0 %v8168_v46  ;;  %4164 = vmatpush.bf16.msra.mxu1 %v8176_v48  ;;  %v8194_v46 = vld [vmem:[#allocation18 + $0x160] sm:$0xff]  ;;  %v8200_v48 = vld [vmem:[#allocation18 + $0x290] sm:$0xff] }
 0x372   : > { %3997 = vmatpush.bf16.msrb.mxu2 %v8119_v10  ;;  %4010 = vmatpush.bf16.msrb.mxu3 %v8127_v12 }
 0x373   : > { %4152 = vmatpush.bf16.msra.mxu0 %v8167_v57  ;;  %4165 = vmatpush.bf16.msra.mxu1 %v8175_v58  ;;  %v8192_v58 = vld [vmem:[#allocation18 + $0x150] sm:$0xff] }
 0x376   : > { %3998 = vmatpush.bf16.msrb.mxu2 %v8118_v21  ;;  %4011 = vmatpush.bf16.msrb.mxu3 %v8126_v17  ;;  %v8205_v21 = vld [vmem:[#allocation18 + $0x2b8] sm:$0xff] }
 0x377   : > { %4153 = vmatpush.bf16.msra.mxu0 %v8166_v53  ;;  %4166 = vmatpush.bf16.msra.mxu1 %v8174_v61  ;;  %v8206_v53 = vld [vmem:[#allocation18 + $0x2c0] sm:$0xff] }
 0x37a   : > { %4268 = vmatpush.bf16.msra.mxu2 %v8141_v18  ;;  %4281 = vmatpush.bf16.msra.mxu3 %v8149_v19 }
 0x37e   : > { %4269 = vmatpush.bf16.msra.mxu2 %v8140_v23  ;;  %4282 = vmatpush.bf16.msra.mxu3 %v8148_v24 }
 0x382   : > { %4270 = vmatpush.bf16.msra.mxu2 %v8139_v27  ;;  %4283 = vmatpush.bf16.msra.mxu3 %v8147_v29  ;;  %v8212_v27 = vld [vmem:[#allocation18 + $0x2f0] sm:$0xff] }
 0x386   : > { %4271 = vmatpush.bf16.msra.mxu2 %v8138_v31  ;;  %4284 = vmatpush.bf16.msra.mxu3 %v8146_v32  ;;  %v8189_v32 = vld [vmem:[#allocation18 + $0x138] sm:$0xff] }
 0x38a   : > { %4272 = vmatpush.bf16.msra.mxu2 %v8137_v34  ;;  %4285 = vmatpush.bf16.msra.mxu3 %v8145_v35  ;;  %v8203_v35 = vld [vmem:[#allocation18 + $0x2a8] sm:$0xff] }
 0x38e   : > { %4273 = vmatpush.bf16.msra.mxu2 %v8136_v38  ;;  %4286 = vmatpush.bf16.msra.mxu3 %v8144_v39  ;;  %v8196_v38 = vld [vmem:[#allocation18 + $0x170] sm:$0xff]  ;;  %v8202_v39 = vld [vmem:[#allocation18 + $0x2a0] sm:$0xff] }
 0x392   : > { %4274 = vmatpush.bf16.msra.mxu2 %v8135_v44  ;;  %4287 = vmatpush.bf16.msra.mxu3 %v8143_v45  ;;  %v8209_v44 = vld [vmem:[#allocation18 + $0x2d8] sm:$0xff]  ;;  %v8186_v45 = vld [vmem:[#allocation18 + $0x120] sm:$0xff] }
 0x396   : > { %4275 = vmatpush.bf16.msra.mxu2 %v8134_v51  ;;  %4288 = vmatpush.bf16.msra.mxu3 %v8142_v52  ;;  %v8193_v51 = vld [vmem:[#allocation18 + $0x158] sm:$0xff]  ;;  %v8199_v52 = vld [vmem:[#allocation18 + $0x288] sm:$0xff] }
 0x3d6   : > { %v3484_v41 = vpop.f32.mrf.mxu0  ;;  %v3497_v42 = vpop.f32.mrf.mxu1 }
 0x3db   : > { %v3378_v49 = vpop.f32.mrf.mxu2  ;;  %v3391_v50 = vpop.f32.mrf.mxu3 }
 0x3dc   : > { %v3485_v63 = vadd.f32 %v3484_v41, %v3378_v49  ;;  %v3498_v0 = vadd.f32 %v3497_v42, %v3391_v50  ;;  %v8187_v41 = vld [vmem:[#allocation18 + $0x128] sm:$0xff]  ;;  %v8208_v49 = vld [vmem:[#allocation18 + $0x2d0] sm:$0xff]  ;;  %v8185_v50 = vld [vmem:[#allocation18 + $0x118] sm:$0xff] }
 0x3dd   : > { %v8195_v42 = vld [vmem:[#allocation18 + $0x168] sm:$0xff] }
 0x3de   : > { %v3486_v55 = vpop.f32.mrf.mxu0  ;;  %v3499_v56 = vpop.f32.mrf.mxu1 }
 0x3df   : > { %v8207_v55 = vld [vmem:[#allocation18 + $0x2c8] sm:$0xff]  ;;  %v8184_v56 = vld [vmem:[#allocation18 + $0x110] sm:$0xff] }
 0x3e3   : > { %v3380_v60 = vpop.f32.mrf.mxu2  ;;  %v3393_v26 = vpop.f32.mrf.mxu3 }
 0x3e4   : > { %v8198_v26 = vld [vmem:[#allocation18 + $0x280] sm:$0xff] }
 0x3eb   : > { %v3609_v5 = vpop.f32.mrf.mxu2  ;;  %v3622_v6 = vpop.f32.mrf.mxu3 }
 0x3ec   : > { %v3626_v7 = vadd.f32 %v3609_v5, %v3485_v63  ;;  %v3627_v8 = vadd.f32 %v3622_v6, %v3498_v0  ;;  %v8191_v0 = vld [vmem:[#allocation18 + $0x148] sm:$0xff]  ;;  %v8182_v5 = vld [vmem:[#allocation18 + $0x100] sm:$0xff] }
 0x3ed   : > { %v8190_v6 = vld [vmem:[#allocation18 + $0x140] sm:$0xff] }
 0x3ee   : > { %v3634_v9 = vadd.f32 %v3630_v1, %v3626_v7  ;;  %v3635_v3 = vadd.f32 %v3631_v2, %v3627_v8 }
 0x3f0   : > { %v3636_v11 = vmax.f32 %v3634_v9, 0.0  ;;  %v3637_v59 = vmax.f32 %v3635_v3, 0.0  ;;  %v8229_v9 = vld [vmem:[%s9729_s13 + $0x78] sm:$0xff] }
 0x3f1   : > { %v8221_v3 = vld [vmem:[%s9729_s13 + $0x38] sm:$0xff] }
 0x3f2   : > { %v3645_v4 = vrot.slane %v3636_v11, 7  ;;  %v3646_v10 = vrot.slane %v3637_v59, 7  ;;  %v8237_v11 = vld [vmem:[%s9729_s13 + $0xb8] sm:$0xff] }
 0x3f3   : > { %v3611_v12 = vpop.f32.mrf.mxu2  ;;  %v3624_v13 = vpop.f32.mrf.mxu3 }
 0x3f4   : > { %3649 = vst [vmem:[#allocation6] sm:$0x1e] %v3645_v4  ;;  %v8220_v12 = vld [vmem:[%s9729_s13 + $0x30] sm:$0xff] }
 0x3f5   : > { %3650 = vst [vmem:[#allocation6 + $0x8] sm:$0x1e] %v3646_v10  ;;  %v8228_v10 = vld [vmem:[%s9729_s13 + $0x70] sm:$0xff] }
 0x3f6   : > { %v8236_v13 = vld [vmem:[%s9729_s13 + $0xb0] sm:$0xff] }
 0x3fb   : > { %v3651_v16 = vld [vmem:[#allocation6] sm:$0xf] }
 0x3fc   : > { %v3720_v17 = vld [vmem:[#allocation6] sm:$0x1e]  ;;  %v3653_v18 = vpack.c.bf16 %v3651_v16, %v3651_v16  ;;  %v3652_v19 = vld [vmem:[#allocation6 + $0x8] sm:$0xf] }
 0x3fd   : > { %v3722_v22 = vpack.c.bf16 %v3720_v17, %v3720_v17  ;;  %v3721_v23 = vld [vmem:[#allocation6 + $0x8] sm:$0x1e]  ;;  %v3654_v24 = vpack.c.bf16 %v3652_v19, %v3652_v19  ;;  %v4294_v57 = vld [vmem:[#allocation6] sm:$0x3c]  ;;  %v8227_v17 = vld [vmem:[%s9729_s13 + $0x68] sm:$0xff] }
 0x3fe   : > { %v3723_v25 = vpack.c.bf16 %v3721_v23, %v3721_v23  ;;  %3999 = vmatmul.bf16.vlgmr.msrb.gmra.mxu2 %v3653_v18  ;;  %v4295_v60 = vld [vmem:[#allocation6 + $0x8] sm:$0x3c]  ;;  %v4296_v61 = vpack.c.bf16 %v4294_v57, %v4294_v57  ;;  %v8235_v19 = vld [vmem:[%s9729_s13 + $0xa8] sm:$0xff]  ;;  %v8226_v23 = vld [vmem:[%s9729_s13 + $0x60] sm:$0xff] }
 0x3ff   : > { %v3760_v14 = vshll.u32 %v3722_v22, 16  ;;  %4012 = vmatmul.bf16.vlgmr.msrb.gmra.mxu3 %v3654_v24  ;;  %4589 = vmatpush.bf16.msrb.mxu2 %v8205_v21  ;;  %v3758_v29 = vshrl.u32 %v3722_v22, 16  ;;  %v4297_v63 = vpack.c.bf16 %v4295_v60, %v4295_v60 }
 0x400   : > { %v3767_v28 = vshll.u32 %v3723_v25, 16  ;;  %4602 = vmatpush.bf16.msrb.mxu3 %v8213_v47  ;;  %v3765_v20 = vshrl.u32 %v3723_v25, 16  ;;  %v4333_v1 = vrot.slane %v4296_v61, 1  ;;  %v8234_v25 = vld [vmem:[%s9729_s13 + $0xa0] sm:$0xff]  ;;  %v8269_v61 = vld [vmem:[%s9731_s15 + $0x138] sm:$0xff] }
 0x401   : > { %v3762_v30 = vrot.slane %v3760_v14, 1  ;;  %v4334_v2 = vrot.slane %v4297_v63, 1  ;;  %v8225_v14 = vld [vmem:[%s9729_s13 + $0x58] sm:$0xff] }
 0x402   : > { %v3769_v31 = vrot.slane %v3767_v28, 1  ;;  %v8233_v28 = vld [vmem:[%s9729_s13 + $0x98] sm:$0xff] }
 0x403   : > { %v3763_v33 = vor.u32 %v3762_v30, %v3758_v29  ;;  %4590 = vmatpush.bf16.msrb.mxu2 %v8204_v15  ;;  %v8217_v15 = vld [vmem:[%s9729_s13 + $0x18] sm:$0xff] }
 0x404   : > { %v3770_v34 = vor.u32 %v3769_v31, %v3765_v20  ;;  %4603 = vmatpush.bf16.msrb.mxu3 %v8212_v27  ;;  %v8224_v31 = vld [vmem:[%s9729_s13 + $0x50] sm:$0xff] }
 0x405   : > { %3877 = vmatmul.bf16.vlgmr.msrb.gmra.mxu0 %v3763_v33 }
 0x406   : > { %3890 = vmatmul.bf16.vlgmr.msrb.gmra.mxu1 %v3770_v34  ;;  %4433 = vmatpush.bf16.msrb.mxu0 %v8189_v32  ;;  %v8216_v32 = vld [vmem:[%s9729_s13 + $0x10] sm:$0xff] }
 0x407   : > { %4446 = vmatpush.bf16.msrb.mxu1 %v8197_v54  ;;  %4591 = vmatpush.bf16.msrb.mxu2 %v8203_v35  ;;  %v8223_v54 = vld [vmem:[%s9729_s13 + $0x48] sm:$0xff] }
 0x408   : > { %4604 = vmatpush.bf16.msrb.mxu3 %v8211_v36  ;;  %v8231_v35 = vld [vmem:[%s9729_s13 + $0x88] sm:$0xff] }
 0x40a   : > { %4434 = vmatpush.bf16.msrb.mxu0 %v8188_v37 }
 0x40b   : > { %4447 = vmatpush.bf16.msrb.mxu1 %v8196_v38  ;;  %4592 = vmatpush.bf16.msrb.mxu2 %v8202_v39 }
 0x40c   : > { %4605 = vmatpush.bf16.msrb.mxu3 %v8210_v40 }
 0x40e   : > { %4435 = vmatpush.bf16.msrb.mxu0 %v8187_v41  ;;  %4276 = vmatmul.bf16.vlgmr.msra.gmra.mxu2 %v3653_v18  ;;  %v8219_v18 = vld [vmem:[%s9729_s13 + $0x28] sm:$0xff] }
 0x40f   : > { %4448 = vmatpush.bf16.msrb.mxu1 %v8195_v42  ;;  %4289 = vmatmul.bf16.vlgmr.msra.gmra.mxu3 %v3654_v24  ;;  %v8218_v24 = vld [vmem:[%s9729_s13 + $0x20] sm:$0xff] }
 0x410   : > { %4593 = vmatpush.bf16.msrb.mxu2 %v8201_v43  ;;  %4606 = vmatpush.bf16.msrb.mxu3 %v8209_v44  ;;  %v8222_v42 = vld [vmem:[%s9729_s13 + $0x40] sm:$0xff] }
 0x411   : > { %v8214_v43 = vld [vmem:[%s9729_s13] sm:$0xff] }
 0x412   : > { %4436 = vmatpush.bf16.msrb.mxu0 %v8186_v45  ;;  %v8230_v44 = vld [vmem:[%s9729_s13 + $0x80] sm:$0xff] }
 0x413   : > { %4449 = vmatpush.bf16.msrb.mxu1 %v8194_v46 }
 0x414   : > { %4594 = vmatpush.bf16.msrb.mxu2 %v8200_v48  ;;  %4607 = vmatpush.bf16.msrb.mxu3 %v8208_v49 }
 0x415   : > { %4154 = vmatmul.bf16.vlgmr.msra.gmra.mxu0 %v3763_v33  ;;  %v8232_v33 = vld [vmem:[%s9729_s13 + $0x90] sm:$0xff] }
 0x416   : > { %4167 = vmatmul.bf16.vlgmr.msra.gmra.mxu1 %v3770_v34  ;;  %4437 = vmatpush.bf16.msrb.mxu0 %v8185_v50  ;;  %v8215_v34 = vld [vmem:[%s9729_s13 + $0x8] sm:$0xff] }
 0x417   : > { %4450 = vmatpush.bf16.msrb.mxu1 %v8193_v51 }
 0x418   : > { %4595 = vmatpush.bf16.msrb.mxu2 %v8199_v52  ;;  %4608 = vmatpush.bf16.msrb.mxu3 %v8207_v55  ;;  %v8261_v52 = vld [vmem:[%s9731_s15 + $0x78] sm:$0xff] }
 0x419   : > { %v8245_v55 = vld [vmem:[%s9731_s15 + $0x38] sm:$0xff] }
 0x41a   : > { %4438 = vmatpush.bf16.msrb.mxu0 %v8184_v56 }
 0x41b   : > { %4451 = vmatpush.bf16.msrb.mxu1 %v8192_v58 }
 0x41c   : > { %4596 = vmatpush.bf16.msrb.mxu2 %v8198_v26  ;;  %4609 = vmatpush.bf16.msrb.mxu3 %v8206_v53  ;;  %v8260_v26 = vld [vmem:[%s9731_s15 + $0x70] sm:$0xff] }
 0x41d   : > { %v8244_v53 = vld [vmem:[%s9731_s15 + $0x30] sm:$0xff] }
 0x41e   : > { %4439 = vmatpush.bf16.msrb.mxu0 %v8183_v62 }
 0x41f   : > { %4452 = vmatpush.bf16.msrb.mxu1 %v8191_v0  ;;  %4597 = vmatmul.bf16.vlgmr.msrb.gmra.mxu2 %v4333_v1  ;;  %v8253_v0 = vld [vmem:[%s9731_s15 + $0xf8] sm:$0xff] }
 0x420   : > { %4610 = vmatmul.bf16.vlgmr.msrb.gmra.mxu3 %v4334_v2  ;;  %4856 = vmatpush.bf16.msra.mxu2 %v8237_v11 }
 0x421   : > { %4981 = vmatpush.bf16.msra.mxu3 %v8261_v52  ;;  %v8281_v52 = vld [vmem:[%s9731_s15 + $0x158] sm:$0xff] }
 0x422   : > { %4440 = vmatpush.bf16.msrb.mxu0 %v8182_v5  ;;  %v8252_v5 = vld [vmem:[%s9731_s15 + $0xf0] sm:$0xff] }
 0x423   : > { %4453 = vmatpush.bf16.msrb.mxu1 %v8190_v6  ;;  %v8259_v6 = vld [vmem:[%s9731_s15 + $0x68] sm:$0xff] }
 0x424   : > { %4857 = vmatpush.bf16.msra.mxu2 %v8236_v13  ;;  %v8241_v13 = vld [vmem:[%s9731_s15 + $0x18] sm:$0xff] }
 0x425   : > { %4441 = vmatmul.bf16.vlgmr.msrb.gmra.mxu0 %v4333_v1  ;;  %v8268_v1 = vld [vmem:[%s9731_s15 + $0x130] sm:$0xff]  ;;  %4982 = vmatpush.bf16.msra.mxu3 %v8260_v26 }
 0x426   : > { %4454 = vmatmul.bf16.vlgmr.msrb.gmra.mxu1 %v4334_v2  ;;  %4715 = vmatpush.bf16.msra.mxu0 %v8229_v9 }
 0x427   : > { %4776 = vmatpush.bf16.msra.mxu1 %v8221_v3 }
 0x428   : > { %4858 = vmatpush.bf16.msra.mxu2 %v8235_v19  ;;  %v8256_v19 = vld [vmem:[%s9731_s15 + $0x50] sm:$0xff] }
 0x429   : > { %4983 = vmatpush.bf16.msra.mxu3 %v8259_v6 }
 0x42a   : > { %4716 = vmatpush.bf16.msra.mxu0 %v8228_v10  ;;  %v8465_v10 = vld [vmem:[%s9728_s12] ss:$0 sm:$0xff] }
 0x42b   : > { %4777 = vmatpush.bf16.msra.mxu1 %v8220_v12  ;;  %v8257_v12 = vld [vmem:[%s9731_s15 + $0x58] sm:$0xff] }
 0x42c   : > { %4859 = vmatpush.bf16.msra.mxu2 %v8234_v25 }
 0x42e   : > { %4717 = vmatpush.bf16.msra.mxu0 %v8227_v17 }
 0x42f   : > { %4778 = vmatpush.bf16.msra.mxu1 %v8219_v18 }
 0x430   : > { %4860 = vmatpush.bf16.msra.mxu2 %v8233_v28 }
 0x432   : > { %4718 = vmatpush.bf16.msra.mxu0 %v8226_v23 }
 0x433   : > { %4779 = vmatpush.bf16.msra.mxu1 %v8218_v24 }
 0x434   : > { %4861 = vmatpush.bf16.msra.mxu2 %v8232_v33  ;;  %v8254_v33 = vld [vmem:[%s9731_s15 + $0x40] sm:$0xff] }
 0x436   : > { %4719 = vmatpush.bf16.msra.mxu0 %v8225_v14 }
 0x437   : > { %4780 = vmatpush.bf16.msra.mxu1 %v8217_v15 }
 0x438   : > { %4862 = vmatpush.bf16.msra.mxu2 %v8231_v35  ;;  %v8249_v35 = vld [vmem:[%s9731_s15 + $0xd8] sm:$0xff] }
 0x43a   : > { %4720 = vmatpush.bf16.msra.mxu0 %v8224_v31  ;;  %v8266_v31 = vld [vmem:[%s9731_s15 + $0x120] sm:$0xff] }
 0x43b   : > { %4781 = vmatpush.bf16.msra.mxu1 %v8216_v32  ;;  %v8250_v32 = vld [vmem:[%s9731_s15 + $0xe0] sm:$0xff] }
 0x43c   : > { %4863 = vmatpush.bf16.msra.mxu2 %v8230_v44  ;;  %v8275_v44 = vld [vmem:[%s9731_s15 + $0xa8] sm:$0xff] }
 0x43e   : > { %4721 = vmatpush.bf16.msra.mxu0 %v8223_v54  ;;  %v8238_v54 = vld [vmem:[%s9731_s15] sm:$0xff] }
 0x43f   : > { %4782 = vmatpush.bf16.msra.mxu1 %v8215_v34  ;;  %v8265_v34 = vld [vmem:[%s9731_s15 + $0x118] sm:$0xff] }
 0x440   : > { %5181 = vmatpush.bf16.msrb.mxu2 %v8253_v0 }
 0x442   : > { %4722 = vmatpush.bf16.msra.mxu0 %v8222_v42  ;;  %v8263_v42 = vld [vmem:[%s9731_s15 + $0x108] sm:$0xff] }
 0x443   : > { %4783 = vmatpush.bf16.msra.mxu1 %v8214_v43  ;;  %v8247_v43 = vld [vmem:[%s9731_s15 + $0xc8] sm:$0xff] }
 0x444   : > { %5182 = vmatpush.bf16.msrb.mxu2 %v8252_v5 }
 0x446   : > { %5042 = vmatpush.bf16.msrb.mxu0 %v8245_v55  ;;  %v8272_v55 = vld [vmem:[%s9731_s15 + $0x90] sm:$0xff] }
 0x447   : > { %5120 = vmatpush.bf16.msrb.mxu1 %v8269_v61  ;;  %v8278_v61 = vld [vmem:[%s9731_s15 + $0x140] sm:$0xff] }
 0x44a   : > { %5043 = vmatpush.bf16.msrb.mxu0 %v8244_v53  ;;  %v8270_v53 = vld [vmem:[%s9731_s15 + $0x80] sm:$0xff] }
 0x44b   : > { %5121 = vmatpush.bf16.msrb.mxu1 %v8268_v1 }
 0x481   : > { %v4000_v8 = vpop.f32.mrf.mxu2 }
 0x482   : > { %v3878_v7 = vpop.f32.mrf.mxu0  ;;  %v9435_v4 = vpop.f32.mrf.mxu3 }
 0x483   : > { %v3891_v59 = vpop.f32.mrf.mxu1 }
 0x484   : > { %v3892_v40 = vadd.f32 %v3891_v59, %v3878_v7  ;;  %v8243_v7 = vld [vmem:[%s9731_s15 + $0x28] sm:$0xff]  ;;  %v8258_v59 = vld [vmem:[%s9731_s15 + $0x60] sm:$0xff] }
 0x485   : > { %5044 = vmatpush.bf16.msrb.mxu0 %v8243_v7  ;;  %4984 = vmatpush.bf16.msra.mxu3 %v8258_v59 }
 0x486   : > { %v4001_v45 = vadd.f32 %v4000_v8, %v3892_v40  ;;  %v8276_v40 = vld [vmem:[%s9731_s15 + $0xb0] sm:$0xff] }
 0x488   : > { %v4014_v56 = vadd.f32 %v9435_v4, %v4001_v45  ;;  %v8242_v4 = vld [vmem:[%s9731_s15 + $0x20] sm:$0xff]  ;;  %v8283_v45 = vld [vmem:[%s9731_s15 + $0x168] sm:$0xff] }
 0x489   : > { %v4002_v21 = vpop.f32.mrf.mxu2  ;;  %5045 = vmatpush.bf16.msrb.mxu0 %v8242_v4  ;;  %4985 = vmatpush.bf16.msra.mxu3 %v8257_v12  ;;  %v8289_v12 = vld [vmem:[%s9733_s17 + $0x18] sm:$0xff] }
 0x48a   : > { %v3880_v16 = vpop.f32.mrf.mxu0  ;;  %v4015_v22 = vpop.f32.mrf.mxu3 }
 0x48b   : > { %v3893_v47 = vpop.f32.mrf.mxu1 }
 0x48c   : > { %v8240_v47 = vld [vmem:[%s9731_s15 + $0x10] sm:$0xff] }
 0x48d   : > { %5046 = vmatpush.bf16.msrb.mxu0 %v8241_v13  ;;  %4986 = vmatpush.bf16.msra.mxu3 %v8256_v19  ;;  %v8288_v13 = vld [vmem:[%s9733_s17 + $0x10] sm:$0xff] }
 0x491   : > { %v4277_v29 = vpop.f32.mrf.mxu2  ;;  %5047 = vmatpush.bf16.msrb.mxu0 %v8240_v47 }
 0x492   : > { %v4155_v27 = vpop.f32.mrf.mxu0  ;;  %v4290_v20 = vpop.f32.mrf.mxu3 }
 0x493   : > { %v4168_v30 = vpop.f32.mrf.mxu1 }
 0x494   : > { %v4169_v41 = vadd.f32 %v4168_v30, %v4155_v27  ;;  %v8267_v27 = vld [vmem:[%s9731_s15 + $0x128] sm:$0xff] }
 0x495   : > { %5122 = vmatpush.bf16.msrb.mxu1 %v8267_v27  ;;  %v8255_v30 = vld [vmem:[%s9731_s15 + $0x48] sm:$0xff]  ;;  %v8295_v27 = vld [vmem:[#allocation24 + $0x28] sm:$0xff] }
 0x496   : > { %v4278_v46 = vadd.f32 %v4277_v29, %v4169_v41  ;;  %v8251_v29 = vld [vmem:[%s9731_s15 + $0xe8] sm:$0xff]  ;;  %4987 = vmatpush.bf16.msra.mxu3 %v8255_v30  ;;  %v8284_v41 = vld [vmem:[%s9731_s15 + $0x170] sm:$0xff] }
 0x497   : > { %5183 = vmatpush.bf16.msrb.mxu2 %v8251_v29 }
 0x498   : > { %v4291_v57 = vadd.f32 %v4290_v20, %v4278_v46  ;;  %v8239_v20 = vld [vmem:[%s9731_s15 + $0x8] sm:$0xff]  ;;  %v8262_v46 = vld [vmem:[%s9731_s15 + $0x100] sm:$0xff] }
 0x499   : > { %v4279_v37 = vpop.f32.mrf.mxu2  ;;  %5048 = vmatpush.bf16.msrb.mxu0 %v8239_v20  ;;  %5123 = vmatpush.bf16.msrb.mxu1 %v8266_v31  ;;  %v8294_v20 = vld [vmem:[#allocation24 + $0x20] sm:$0xff] }
 0x49a   : > { %v4157_v36 = vpop.f32.mrf.mxu0  ;;  %v4292_v39 = vpop.f32.mrf.mxu3  ;;  %4988 = vmatpush.bf16.msra.mxu3 %v8254_v33  ;;  %v8285_v37 = vld [vmem:[%s9731_s15 + $0x178] sm:$0xff] }
 0x49b   : > { %v4170_v38 = vpop.f32.mrf.mxu1  ;;  %5184 = vmatpush.bf16.msrb.mxu2 %v8250_v32  ;;  %v8277_v36 = vld [vmem:[%s9731_s15 + $0xb8] sm:$0xff]  ;;  %v8248_v39 = vld [vmem:[%s9731_s15 + $0xd0] sm:$0xff] }
 0x49c   : > { %v8264_v38 = vld [vmem:[%s9731_s15 + $0x110] sm:$0xff] }
 0x49d   : > { %5049 = vmatpush.bf16.msrb.mxu0 %v8238_v54  ;;  %5124 = vmatpush.bf16.msrb.mxu1 %v8265_v34 }
 0x49e   : > { %5261 = vmatpush.bf16.msrb.mxu3 %v8277_v36  ;;  %v8292_v36 = vld [vmem:[#allocation24 + $0x10] sm:$0xff] }
 0x49f   : > { %5185 = vmatpush.bf16.msrb.mxu2 %v8249_v35  ;;  %v8293_v35 = vld [vmem:[#allocation24 + $0x18] sm:$0xff] }
 0x4a1   : > { %5125 = vmatpush.bf16.msrb.mxu1 %v8264_v38  ;;  %v5360_v38 = vld [vmem:[#allocation21] sm:$0x1] }
 0x4a2   : > { %v4442_v48 = vpop.f32.mrf.mxu0  ;;  %v4598_v49 = vpop.f32.mrf.mxu2  ;;  %5262 = vmatpush.bf16.msrb.mxu3 %v8276_v40 }
 0x4a3   : > { %v4455_v50 = vpop.f32.mrf.mxu1  ;;  %v4611_v51 = vpop.f32.mrf.mxu3  ;;  %5186 = vmatpush.bf16.msrb.mxu2 %v8248_v39 }
 0x4a4   : > { %v4456_v58 = vadd.f32 %v4455_v50, %v4442_v48  ;;  %v4612_v60 = vadd.f32 %v4611_v51, %v4598_v49  ;;  %v8246_v48 = vld [vmem:[%s9731_s15 + $0xc0] sm:$0xff]  ;;  %v8273_v51 = vld [vmem:[%s9731_s15 + $0x98] sm:$0xff] }
 0x4a5   : > { %5126 = vmatpush.bf16.msrb.mxu1 %v8263_v42  ;;  %v8274_v49 = vld [vmem:[%s9731_s15 + $0xa0] sm:$0xff] }
 0x4a6   : > { %v4459_v62 = vadd.f32 %v4456_v58, %v4014_v56  ;;  %v4615_v63 = vadd.f32 %v4612_v60, %v4291_v57  ;;  %5263 = vmatpush.bf16.msrb.mxu3 %v8275_v44  ;;  %v8282_v50 = vld [vmem:[%s9731_s15 + $0x160] sm:$0xff]  ;;  %v8280_v56 = vld [vmem:[%s9731_s15 + $0x150] sm:$0xff]  ;;  %v8271_v57 = vld [vmem:[%s9731_s15 + $0x88] sm:$0xff] }
 0x4a7   : > { %5187 = vmatpush.bf16.msrb.mxu2 %v8247_v43  ;;  %v8279_v58 = vld [vmem:[%s9731_s15 + $0x148] sm:$0xff] }
 0x4a8   : > { %v4616_v2 = vmax.f32 %v4459_v62, %v4615_v63  ;;  %v8466_v63 = vld [vmem:[#allocation19] ss:$0 sm:$0xff] }
 0x4a9   : > { %5127 = vmatpush.bf16.msrb.mxu1 %v8262_v46  ;;  %v8290_v46 = vld [vmem:[#allocation24] sm:$0xff] }
 0x4aa   : > { %4617 = vst [vmem:[#allocation9] sm:$0xf] %v4616_v2  ;;  %v4444_v8 = vpop.f32.mrf.mxu0  ;;  %v4600_v9 = vpop.f32.mrf.mxu2  ;;  %5264 = vmatpush.bf16.msrb.mxu3 %v8274_v49  ;;  %v8304_v49 = vld [vmem:[%s9786_s29 + $0x30] sm:$0xff] }
 0x4ab   : > { %v4457_v3 = vpop.f32.mrf.mxu1  ;;  %v4613_v11 = vpop.f32.mrf.mxu3  ;;  %5188 = vmatpush.bf16.msrb.mxu2 %v8246_v48  ;;  %v8305_v48 = vld [vmem:[%s9785_s24 + $0x38] sm:$0xff] }
 0x4ae   : > { %5265 = vmatpush.bf16.msrb.mxu3 %v8273_v51  ;;  %v8302_v51 = vld [vmem:[%s9786_s29 + $0x20] sm:$0xff] }
 0x4b1   : > { %v4618_v16 = vld [vmem:[#allocation9] ss:$2 sm:$0x3]  ;;  %v4619_v21 = vld [vmem:[#allocation9 + $0x1] ss:$2 sm:$0x3] }
 0x4b2   : > { %v4620_v17 = vmax.f32 %v4618_v16, %v4619_v21  ;;  %5266 = vmatpush.bf16.msrb.mxu3 %v8272_v55  ;;  %v8300_v55 = vld [vmem:[%s9786_s29 + $0x10] sm:$0xff] }
 0x4b4   : > { %v4625_v18 = vadd.f32 %v8465_v10, %v4620_v17  ;;  %v8287_v17 = vld [vmem:[%s9733_s17 + $0x8] sm:$0xff] }
 0x4b6   : > { %v4626_v22 = vmax.f32 %v4625_v18, 0.0  ;;  %5267 = vmatpush.bf16.msrb.mxu3 %v8271_v57  ;;  %v8286_v18 = vld [vmem:[%s9733_s17] sm:$0xff] }
 0x4b8   : > { %4629 = vst [vmem:[#allocation7 + $0x1] sm:$0x3] %v4626_v22 }
 0x4ba   : > { %5268 = vmatpush.bf16.msrb.mxu3 %v8270_v53 }
 0x4bf   : > { %v4648_v23 = vld [vmem:[#allocation7 + $0x1] sm:$0x3] }
 0x4c0   : > { %v4630_v24 = vld [vmem:[#allocation7] sm:$0x3]  ;;  %v4789_v25 = vld [vmem:[#allocation7 + $0x2] sm:$0x3]  ;;  %v4649_v14 = vpack.c.bf16 %v4648_v23, %v4648_v23 }
 0x4c1   : > { %v4631_v15 = vpack.c.bf16 %v4630_v24, %v4630_v24  ;;  %v4790_v28 = vpack.c.bf16 %v4789_v25, %v4789_v25  ;;  %v8297_v24 = vld [vmem:[#allocation24 + $0x38] sm:$0xff]  ;;  %v8296_v25 = vld [vmem:[#allocation24 + $0x30] sm:$0xff] }
 0x4c2   : > { %4723 = vmatmul.bf16.vlgmr.msra.gmra.mxu0 %v4649_v14 }
 0x4c3   : > { %4784 = vmatmul.bf16.vlgmr.msra.gmra.mxu1 %v4631_v15  ;;  %4864 = vmatmul.bf16.vlgmr.msra.gmra.mxu2 %v4790_v28 }
 0x4c4   : > { %5340 = vmatpush.bf16.msra.mxu0 %v8285_v37  ;;  %5405 = vmatpush.bf16.msra.mxu1 %v8289_v12 }
 0x4c5   : > { %5481 = vmatpush.bf16.msra.mxu2 %v8297_v24 }
 0x4c8   : > { %5341 = vmatpush.bf16.msra.mxu0 %v8284_v41  ;;  %5406 = vmatpush.bf16.msra.mxu1 %v8288_v13 }
 0x4c9   : > { %5482 = vmatpush.bf16.msra.mxu2 %v8296_v25 }
 0x4cc   : > { %5342 = vmatpush.bf16.msra.mxu0 %v8283_v45  ;;  %5407 = vmatpush.bf16.msra.mxu1 %v8287_v17  ;;  %v8291_v45 = vld [vmem:[#allocation24 + $0x8] sm:$0xff] }
 0x4cd   : > { %5483 = vmatpush.bf16.msra.mxu2 %v8295_v27 }
 0x4d0   : > { %5343 = vmatpush.bf16.msra.mxu0 %v8282_v50  ;;  %5408 = vmatpush.bf16.msra.mxu1 %v8286_v18  ;;  %v8303_v50 = vld [vmem:[%s9786_s29 + $0x28] sm:$0xff] }
 0x4d1   : > { %5484 = vmatpush.bf16.msra.mxu2 %v8294_v20 }
 0x4d4   : > { %5344 = vmatpush.bf16.msra.mxu0 %v8281_v52  ;;  %v8301_v52 = vld [vmem:[%s9786_s29 + $0x18] sm:$0xff] }
 0x4d5   : > { %5485 = vmatpush.bf16.msra.mxu2 %v8293_v35 }
 0x4d8   : > { %5345 = vmatpush.bf16.msra.mxu0 %v8280_v56  ;;  %v5372_v56 = vld [vmem:[#allocation22] sm:$0x1] }
 0x4d9   : > { %5486 = vmatpush.bf16.msra.mxu2 %v8292_v36 }
 0x4dc   : > { %5346 = vmatpush.bf16.msra.mxu0 %v8279_v58 }
 0x4dd   : > { %5487 = vmatpush.bf16.msra.mxu2 %v8291_v45 }
 0x4e0   : > { %5347 = vmatpush.bf16.msra.mxu0 %v8278_v61  ;;  %v8299_v61 = vld [vmem:[%s9786_s29 + $0x8] sm:$0xff] }
 0x4e1   : > { %5488 = vmatpush.bf16.msra.mxu2 %v8290_v46 }
 0x53f   : > { %v4724_v60 = vpop.f32.mrf.mxu0 }
 0x540   : > { %v4785_v26 = vpop.f32.mrf.mxu1 }
 0x541   : > { %v4786_v62 = vadd.f32 %v4785_v26, %v4724_v60 }
 0x546   : > { %v4865_v0 = vpop.f32.mrf.mxu2 }
 0x547   : > { %v4869_v1 = vadd.f32 %v4865_v0, %v4786_v62  ;;  %v4726_v2 = vpop.f32.mrf.mxu0  ;;  %v8298_v62 = vld [vmem:[%s9786_s29] sm:$0xff] }
 0x548   : > { %v4787_v5 = vpop.f32.mrf.mxu1 }
 0x549   : > { %v4874_v6 = vadd.f32 %v8466_v63, %v4869_v1  ;;  %v5432_v63 = vld [vmem:[#allocation25] sm:$0x1] }
 0x54b   : > { %v4875_v7 = vmax.f32 %v4874_v6, 0.0 }
 0x54d   : > { %4878 = vst [vmem:[#allocation8 + $0x1] sm:$0x3] %v4875_v7  ;;  %v5512_v7 = vld [vmem:[#allocation27] sm:$0x1] }
 0x54e   : > { %v4867_v8 = vpop.f32.mrf.mxu2 }
 0x554   : > { %v4914_v9 = vld [vmem:[#allocation8 + $0x1] sm:$0x3] }
 0x555   : > { %v4879_v3 = vld [vmem:[#allocation8] sm:$0x3]  ;;  %v4915_v11 = vpack.c.bf16 %v4914_v9, %v4914_v9  ;;  %v5194_v4 = vld [vmem:[#allocation8 + $0x2] sm:$0x3] }
 0x556   : > { %v4880_v59 = vpack.c.bf16 %v4879_v3, %v4879_v3  ;;  %v5195_v10 = vpack.c.bf16 %v5194_v4, %v5194_v4 }
 0x557   : > { %4989 = vmatmul.bf16.vlgmr.msra.gmra.mxu3 %v4915_v11  ;;  %5128 = vmatmul.bf16.vlgmr.msrb.gmra.mxu1 %v4915_v11 }
 0x558   : > { %5050 = vmatmul.bf16.vlgmr.msrb.gmra.mxu0 %v4880_v59  ;;  %5189 = vmatmul.bf16.vlgmr.msrb.gmra.mxu2 %v4880_v59 }
 0x559   : > { %5561 = vmatpush.bf16.msra.mxu3 %v8305_v48 }
 0x55d   : > { %5562 = vmatpush.bf16.msra.mxu3 %v8304_v49 }
 0x561   : > { %5563 = vmatpush.bf16.msra.mxu3 %v8303_v50 }
 0x565   : > { %5564 = vmatpush.bf16.msra.mxu3 %v8302_v51 }
 0x567   : > { %5269 = vmatmul.bf16.vlgmr.msrb.gmra.mxu3 %v5195_v10 }
 0x568   : > { %5348 = vmatmul.bf16.vlgmr.msra.gmra.mxu0 %v5195_v10 }
 0x569   : > { %5565 = vmatpush.bf16.msra.mxu3 %v8301_v52 }
 0x56d   : > { %5566 = vmatpush.bf16.msra.mxu3 %v8300_v55 }
 0x571   : > { %5567 = vmatpush.bf16.msra.mxu3 %v8299_v61 }
 0x575   : > { %5568 = vmatpush.bf16.msra.mxu3 %v8298_v62 }
 0x5d4   : > { %v5129_v21 = vpop.f32.mrf.mxu1 }
 0x5d5   : > { %v5051_v16 = vpop.f32.mrf.mxu0 }
 0x5da   : > { %v4990_v19 = vpop.f32.mrf.mxu3 }
 0x5db   : > { %v5190_v47 = vpop.f32.mrf.mxu2  ;;  %v5052_v29 = vadd.f32 %v5051_v16, %v4990_v19 }
 0x5dc   : > { %v5131_v23 = vpop.f32.mrf.mxu1  ;;  %v5191_v30 = vadd.f32 %v5190_v47, %v5129_v21 }
 0x5dd   : > { %v5053_v22 = vpop.f32.mrf.mxu0 }
 0x5e2   : > { %v4992_v14 = vpop.f32.mrf.mxu3 }
 0x5e3   : > { %v5192_v15 = vpop.f32.mrf.mxu2 }
 0x5e5   : > { %v5349_v28 = vpop.f32.mrf.mxu0 }
 0x5e6   : > { %v5353_v32 = vadd.f32 %v5349_v28, %v5191_v30 }
 0x5ea   : > { %v5270_v31 = vpop.f32.mrf.mxu3 }
 0x5eb   : > { %v5274_v33 = vadd.f32 %v5270_v31, %v5052_v29 }
 0x5ed   : > { %v5351_v54 = vpop.f32.mrf.mxu0  ;;  %v5354_v34 = vmax.f32 %v5274_v33, %v5353_v32 }
 0x5ef   : > { %5356 = vst.msk [vmem:[#allocation9] sm:$0x3] %vm5355_vm2, %v5354_v34 }
 0x5f2   : > { %v5272_v37 = vpop.f32.mrf.mxu3 }
 0x5f6   : > { %v5357_v39 = vld [vmem:[#allocation9] ss:$2 sm:$0x1]  ;;  %v5358_v40 = vld [vmem:[#allocation9 + $0x1] ss:$2 sm:$0x1] }
 0x5f7   : > { %v5359_v41 = vmax.f32 %v5357_v39, %v5358_v40 }
 0x5f9   : > { %v5361_v42 = vadd.f32 %v5360_v38, %v5359_v41 }
 0x5fb   : > { %v5362_v43 = vmax.f32 %v5361_v42, 0.0 }
 0x5fd   : > { %v5363_v44 = vpack.c.bf16 %v5362_v43, %v5362_v43 }
 0x5ff   : > { %7775 = vmatmul.msk.bf16.vlgmr.msra.gmra.mxu1 %vm5397_vm3, %v5363_v44 }
 0x67c   : > { %v5410_v57 = vpop.f32.mrf.mxu1 }
 0x67d   : > { %v5411_v58 = vadd.f32 %v5410_v57, %v5372_v56 }
 0x67f   : > { %v5414_v60 = vmax.f32 %v5411_v58, 0.0 }
 0x681   : > { %v5415_v26 = vpack.c.bf16 %v5414_v60, %v5414_v60 }
 0x683   : > { %5489 = vmatmul.bf16.vlgmr.msra.gmra.mxu2 %v5415_v26 }
 0x684   : > { %v5412_v53 = vpop.f32.mrf.mxu1 }
 0x706   : > { %v5490_v0 = vpop.f32.mrf.mxu2 }
 0x707   : > { %v5491_v1 = vadd.f32 %v5490_v0, %v5432_v63 }
 0x709   : > { %v5494_v2 = vmax.f32 %v5491_v1, 0.0 }
 0x70b   : > { %v5495_v5 = vpack.c.bf16 %v5494_v2, %v5494_v2 }
 0x70d   : > { %5569 = vmatmul.bf16.vlgmr.msra.gmra.mxu3 %v5495_v5 }
 0x70e   : > { %v5492_v6 = vpop.f32.mrf.mxu2 }
 0x790   : > { %v5570_v8 = vpop.f32.mrf.mxu3 }
 0x791   : > { %v5571_v9 = vadd.f32 %v5570_v8, %v5512_v7 }
 0x793   : > { %8467 = vtanh.f32 %v5571_v9 }
 0x798   : > { %v5572_v3 = vpop.f32.mrf.mxu3 }
 0x799   : > { %v8468_v11 = vpop.eup %8467 }
 0x79a   : > { %5576 = vst.msk [vmem:[%s874_s4] sm:$0x1] %vm5575_vm4, %v8468_v11 }
 0x79b   : > { %8826 = shalt.err (!%p8823_p8)
}
 0x79c   : > { %8351 = dma.vmem_to_hbm [thread:$0]  (%p9061_p5), %s5589_s1, 16, %s5591_s0, %s5578_s6  }
 0x79d PF: > { %s9790_s28 = sld [smem:[#allocation39_spill]] }
 0x79e   : > { %s9791_s9 = sld [smem:[#allocation36_spill]] }
 0x7a3   : > { %p8413_p9 = scmp.ge.s32.totalorder %s9790_s28, 2 }
 0x7a4   : > { %s5602_s4 = sand.u32 1, %s9791_s9  }
 0x7a5   : > { %p8388_p10 = pnand %p8413_p9, %p9065_p6  ;;  %s5603_s5 = scalar_lea.sflag [#allocation12], %s5602_s4 }
 0x7a7   : > { %p8389_p11 = pneg %p8388_p10 }
 0x7a9   : > { %8868 = dma.done.wait (%p8389_p11), %s5603_s5, 16  }
 0x7aa   : > { %8870 = vsyncadd (%p8389_p11), %s5603_s5, 4294967280  ;;  %s9793_s25 = sld [smem:[#allocation40_spill]] }
 0x7ab   : > { %s9794_s4 = sld [smem:[#allocation37_spill]] }
 0x7ac   : > { %s9795_s30 = sld [smem:[#allocation38_spill]] }
 0x7ad   : > { %s9796_s24 = sld [smem:[#allocation41_spill]] }
 0x7b0   : > { %p39_p12 = scmp.ge.s32.totalorder %s9793_s25, 4  }
 0x7b2   :  { %41 = sbr.rel (!%p39_p12) target bundleno = 21 (0x15), region = 228 }
 0x7b7   :  { %5608 = vsyncpa [#allocation11], 1 }
 0x7b8   :  { %5610 = vsyncpa [#allocation11 + $0x1], 1 }
 0x7b9   :  { %5611 = vsyncpa [#allocation14], 1 }
 0x7ba   :  { %5612 = vsyncpa [#allocation17], 1 }
 0x7bb   :  { %5613 = vsyncpa [#allocation20], 1 }
 0x7bc   :  { %5614 = vsyncpa [#allocation23], 1 }
 0x7bd   :  { %5615 = vsyncpa [#allocation26], 1 }
 0x7be   :  { %5616 = vsyncpa [#allocation12], 1 }
 0x7bf   :  { %5618 = vsyncpa [#allocation12 + $0x1], 1 }

</bundles_post_ra>
